<compile_context>
chip_gen: v7x
topology: tpu7x:2x2x1
jax: 0.10.0
libtpu: 0.0.40
codegen_flags: <defaults>
</compile_context>

<pallas_src>
import functools

import jax
import jax.numpy as jnp
from jax.experimental import pallas as pl
from jax.experimental.pallas import tpu as pltpu


def autopad(k, p=None):
    if p is None:
        p = k // 2 if isinstance(k, int) else [x // 2 for x in k]
    return p


def _round_up(x, m):
    return ((x + m - 1) // m) * m


def _vmem_capacity_bytes():
    try:
        cap = getattr(pltpu.get_tpu_info(), "vmem_capacity_bytes", None)
        if cap:
            return int(cap)
    except Exception:
        pass
    return 128 * 1024 * 1024          # v5e/v6e-sized fallback


def _conv_bn_silu_kernel(x_ref, w_ref, b_ref, o_ref, *, k, s, Wpr, L, tm,
                         merge_taps):
    """One (image, C2-tile) grid step.

    x_ref: (s*s, FL, C1)   bf16  flattened padded-NHWC phases of one image
    w_ref: (k*k*C1, tn)    bf16  merged tap-major weights      (merge_taps)
           (k*k, C1, tn)   bf16  per-tap weights               (otherwise)
    b_ref: (1, tn)         f32   folded BN bias
    o_ref: (1, L, tn)      bf16  L = Ho*Wpr (junk Wpr-Wo cols sliced later)
    """
    tn = o_ref.shape[-1]
    Q = (k - 1) // s
    bias = b_ref[...]                                    # hoisted, 1 vreg

    n_chunks = (L + tm - 1) // tm                        # static
    for c in range(n_chunks):                            # unrolled at trace
        r0 = c * tm
        rows = min(tm, L - r0)                           # multiple of 16
        # --- stage one shifted slab per (phase, dxo); dy sub-slices aligned --
        slabs = {}
        patches = []
        for dy in range(k):
            for dx in range(k):
                ph = (dy % s) * s + (dx % s)
                dyo, dxo = dy // s, dx // s
                key = (ph, dxo)
                if key not in slabs:
                    slabs[key] = x_ref[ph, r0 + dxo:r0 + dxo + rows + Q * Wpr, :]
                patches.append(slabs[key][dyo * Wpr:dyo * Wpr + rows, :])

        if merge_taps:
            # K-merged: one matmul with K = k*k*C1 (tap-major concat order
            # matches the wrapper's (k*k, C1, C2p) -> (k*k*C1, C2p) reshape).
            lhs = patches[0] if len(patches) == 1 else jnp.concatenate(
                patches, axis=-1)
            acc = jnp.dot(lhs, w_ref[...], preferred_element_type=jnp.float32)
        else:
            acc = None
            for tap, patch in enumerate(patches):
                d = jnp.dot(patch, w_ref[tap],
                            preferred_element_type=jnp.float32)
                acc = d if acc is None else acc + d

        y = acc + bias                                   # folded BN bias (f32)
        y = y * jax.nn.sigmoid(y)                        # SiLU (f32, EUP)
        o_ref[0, r0:r0 + rows, :] = y.astype(o_ref.dtype)


def _fold_bn(weight, gamma, beta, running_mean, running_var, eps):
    inv_std = gamma / jnp.sqrt(running_var + eps)
    w_folded = weight * inv_std[:, None, None, None]     # (C2, C1, k, k)
    bias = beta - running_mean * inv_std                 # (C2,)
    return w_folded.astype(jnp.float32), bias.astype(jnp.float32)


def _prep_activation(x, *, k, s, p, Hph, Wph, Wpr, FL):
    """NCHW -> bf16 NHWC, spatial pad, stride-phase split, row-stride pad."""
    N, C1, H, W = x.shape
    xh = jnp.transpose(x, (0, 2, 3, 1)).astype(jnp.bfloat16)     # (N,H,W,C1)
    xp = jnp.pad(xh, ((0, 0), (p, p), (p, p), (0, 0)))
    if s == 1:
        phases = xp[:, None]                                     # (N,1,Hph,Wph,C1)
    else:
        Hp, Wp = H + 2 * p, W + 2 * p
        xp = jnp.pad(xp, ((0, 0), (0, max(0, Hph * s - Hp)),
                          (0, max(0, Wph * s - Wp)), (0, 0)))
        phases = jnp.stack(
            [xp[:, ry::s, rx::s, :][:, :Hph, :Wph, :]
             for ry in range(s) for rx in range(s)],
            axis=1)                                              # (N,s*s,Hph,Wph,C1)
    # pad stored row width Wph -> Wpr (sublane/bf16-pack aligned row stride)
    phases = jnp.pad(phases, ((0, 0), (0, 0), (0, 0), (0, Wpr - Wph), (0, 0)))
    x_flat = phases.reshape(N * phases.shape[1], Hph * Wpr, C1)
    if FL > Hph * Wpr:
        x_flat = jnp.pad(x_flat, ((0, 0), (0, FL - Hph * Wpr), (0, 0)))
    return x_flat


@functools.partial(jax.jit, static_argnames=("k", "s", "p", "merge_taps"))
def _conv_bn_silu_impl(x, weight, gamma, beta, running_mean, running_var, eps,
                       *, k, s, p, merge_taps):
    N, C1, H, W = x.shape
    C2 = weight.shape[0]
    Ho = (H + 2 * p - k) // s + 1
    Wo = (W + 2 * p - k) // s + 1
    Q = (k - 1) // s                       # max per-phase tap offset
    Hph, Wph = Ho + Q, Wo + Q              # per-phase spatial extent used
    Wpr = _round_up(Wph, 16)               # aligned stored row stride (bf16)
    L = Ho * Wpr                           # per-image matmul M (junk cols incl.)
    FL = _round_up(Hph * Wpr + Q, 16)      # flat rows incl. last-tap overhang
    tm = 512                               # per-chunk M tile (mult. of 16)

    # --- fold BatchNorm (inference) into weights / bias ----------------------
    w_folded, bias = _fold_bn(weight, gamma, beta, running_mean, running_var,
                              eps)

    # --- lane-dense channel padding + C2 tiling -------------------------------
    C2p = _round_up(C2, 128)
    vmem_cap = _vmem_capacity_bytes()
    x_blk = s * s * FL * C1 * 2
    tn = 128
    for cand in (512, 256):
        if C2p % cand == 0:
            blocks = 2 * (x_blk + k * k * C1 * cand * 2 + cand * 4
                          + L * cand * 2)
            if blocks <= 0.5 * vmem_cap:
                tn = cand
                break

    # weight -> tap-major (dy*k+dx), C2-padded, bf16
    w_taps = jnp.transpose(w_folded, (2, 3, 1, 0)).reshape(k * k, C1, C2)
    w_taps = jnp.pad(w_taps, ((0, 0), (0, 0), (0, C2p - C2))).astype(
        jnp.bfloat16)
    if merge_taps:
        w_arr = w_taps.reshape(k * k * C1, C2p)                 # K-merged
        w_spec = pl.BlockSpec((k * k * C1, tn), lambda n, j: (0, j))
    else:
        w_arr = w_taps                                          # per-tap
        w_spec = pl.BlockSpec((k * k, C1, tn), lambda n, j: (0, 0, j))
    bias_p = jnp.pad(bias, (0, C2p - C2)).reshape(1, C2p)

    # --- activation prep ------------------------------------------------------
    x_flat = _prep_activation(x, k=k, s=s, p=p, Hph=Hph, Wph=Wph, Wpr=Wpr,
                              FL=FL)

    # --- VMEM budget (generation-aware) ---------------------------------------
    w_blk = k * k * C1 * tn * 2
    o_blk = L * tn * 2                     # bf16 output block
    blocks = 2 * (x_blk + w_blk + tn * 4 + o_blk)        # double-buffered
    tm_eff = min(tm, L)
    n_keys = k * min(s, k)                 # staged shifted slabs per chunk
    tmp = (n_keys * (tm_eff + Q * Wpr) * C1 * 2
           + tm_eff * k * k * C1 * 2       # merged LHS
           + 2 * tm_eff * tn * 4)          # f32 acc + epilogue temps
    est = blocks + tmp + (2 << 20)
    vmem_limit = int(max(min(2 * est, int(0.75 * vmem_cap)), 32 * 1024 * 1024))
    vmem_limit = int(max(vmem_limit, min(est + (4 << 20),
                                         int(0.9 * vmem_cap))))

    kernel = functools.partial(_conv_bn_silu_kernel, k=k, s=s, Wpr=Wpr, L=L,
                               tm=tm, merge_taps=merge_taps)
    out = pl.pallas_call(
        kernel,
        out_shape=jax.ShapeDtypeStruct((N, L, C2p), jnp.bfloat16),
        grid_spec=pltpu.PrefetchScalarGridSpec(
            num_scalar_prefetch=0,
            grid=(N, C2p // tn),
            in_specs=[
                pl.BlockSpec((s * s, FL, C1), lambda n, j: (n, 0, 0)),
                w_spec,
                pl.BlockSpec((1, tn), lambda n, j: (0, j)),
            ],
            out_specs=pl.BlockSpec((1, L, tn), lambda n, j: (n, 0, j)),
        ),
        compiler_params=pltpu.CompilerParams(
            # N first so megacore prefers splitting images (x is the largest
            # operand); both axes are safe to shard.
            dimension_semantics=("parallel", "parallel"),
            vmem_limit_bytes=vmem_limit),
    )(x_flat, w_arr, bias_p)

    # (N, Ho*Wpr, C2p) -> drop junk cols / padded channels -> NCHW, x.dtype
    y = out.reshape(N, Ho, Wpr, C2p)[:, :, :Wo, :C2]
    return jnp.transpose(y, (0, 3, 1, 2)).astype(x.dtype)


def conv_bn_silu(x, weight, gamma, beta, running_mean, running_var,
                 *, k=1, s=1, p=None, eps=1e-5):
    """x: (N, C1, H, W); weight: (C2, C1, k, k) -> (N, C2, Ho, Wo)."""
    p = autopad(k, p)
    C1 = x.shape[1]
    args = (x, weight, gamma, beta, running_mean, running_var, eps)
    if k > 1 and C1 < 128:
        try:
            return _conv_bn_silu_impl(*args, k=k, s=s, p=p, merge_taps=True)
        except Exception:
            # TODO(synk): drop this fallback once unaligned minor-dim (lane)
            # concatenation is confirmed on every deployed Mosaic toolchain.
            pass
    return _conv_bn_silu_impl(*args, k=k, s=s, p=p, merge_taps=False)


def _reference(x, w_folded, bias, *, k, s, p):
    p = autopad(k, p)
    y = jax.lax.conv_general_dilated(
        x, w_folded, window_strides=(s, s), padding=[(p, p), (p, p)],
        dimension_numbers=("NCHW", "OIHW", "NCHW"),
        precision=jax.lax.Precision.HIGHEST)
    y = y + bias.reshape(1, -1, 1, 1)
    return y * jax.nn.sigmoid(y)


if __name__ == "__main__":
    N, C1, H, W = 2, 4, 16, 16
    key = jax.random.PRNGKey(0)

    for (C2, k, s) in [(8, 3, 1), (16, 1, 1), (8, 3, 2)]:
        kx, kw, kg, kb, km, kv, key = jax.random.split(key, 7)
        x = jax.random.normal(kx, (N, C1, H, W), dtype=jnp.float32)
        weight = jax.random.normal(kw, (C2, C1, k, k), dtype=jnp.float32) * 0.1
        gamma = 1.0 + 0.1 * jax.random.normal(kg, (C2,), dtype=jnp.float32)
        beta = 0.1 * jax.random.normal(kb, (C2,), dtype=jnp.float32)
        running_mean = 0.1 * jax.random.normal(km, (C2,), dtype=jnp.float32)
        running_var = 1.0 + 0.1 * jax.random.uniform(kv, (C2,),
                                                     dtype=jnp.float32)

        out = conv_bn_silu(x, weight, gamma, beta, running_mean, running_var,
                           k=k, s=s, p=None)
        out = jax.block_until_ready(out)

        pp = autopad(k, None)
        Ho = (H + 2 * pp - k) // s + 1
        Wo = (W + 2 * pp - k) // s + 1
        assert out.shape == (N, C2, Ho, Wo), (out.shape, (N, C2, Ho, Wo))

        # Tight check: reference fed the same bf16-quantized activation /
        # folded-weight streams (f32 accumulate on both paths); kernel output
        # additionally carries one bf16 rounding of the final activation.
        w_folded, bias = _fold_bn(weight, gamma, beta, running_mean,
                                  running_var, 1e-5)
        xq = x.astype(jnp.bfloat16).astype(jnp.float32)
        wq = w_folded.astype(jnp.bfloat16).astype(jnp.float32)
        ref_q = _reference(xq, wq, bias, k=k, s=s, p=None)
        err_q = float(jnp.max(jnp.abs(out - ref_q)))
        assert jnp.allclose(out, ref_q, rtol=2e-2, atol=2e-2), (C2, k, s, err_q)

        # Loose sanity check vs. full-f32 module semantics (bf16 rounding of
        # the streams and of the stored activation is the only difference).
        ref_f32 = _reference(x, w_folded, bias, k=k, s=s, p=None)
        err_f = float(jnp.max(jnp.abs(out - ref_f32)))
        assert err_f < 0.15, (C2, k, s, err_f)

    print("KERNEL_OK")
</pallas_src>

<mosaic_0001>
module attributes {stable_mosaic.version = 11 : i64} {
  func.func @_conv_bn_silu_kernel(%arg0: i32, %arg1: i32, %arg2: memref<1x592x4xbf16, #tpu.memory_space<vmem>>, %arg3: memref<36x128xbf16, #tpu.memory_space<vmem>>, %arg4: memref<1x128xf32, #tpu.memory_space<vmem>>, %arg5: memref<1x512x128xbf16, #tpu.memory_space<vmem>>) attributes {dimension_semantics = [#tpu.dimension_semantics<parallel>, #tpu.dimension_semantics<parallel>], iteration_bounds = array<i64: 2, 1>, scalar_prefetch = 0 : i64, scratch_operands = 0 : i64, tpu.core_type = #tpu.core_type<tc>, window_params = [{transform_indices = @transform_0, window_bounds = array<i64: 1, 592, 4>}, {transform_indices = @transform_1, window_bounds = array<i64: 36, 128>}, {transform_indices = @transform_2, window_bounds = array<i64: 1, 128>}, {transform_indices = @transform_3, window_bounds = array<i64: 1, 512, 128>}]} {
    %c0 = arith.constant 0 : index
    %c0_0 = arith.constant 0 : index
    %0 = vector.load %arg4[%c0, %c0_0] : memref<1x128xf32, #tpu.memory_space<vmem>>, vector<1x128xf32>
    %c0_1 = arith.constant 0 : index
    %c0_2 = arith.constant 0 : index
    %c0_3 = arith.constant 0 : index
    %1 = vector.load %arg2[%c0_1, %c0_2, %c0_3] : memref<1x592x4xbf16, #tpu.memory_space<vmem>>, vector<1x576x4xbf16>
    %2 = vector.shape_cast %1 : vector<1x576x4xbf16> to vector<576x4xbf16>
    %3 = vector.extract_strided_slice %2 {offsets = [0, 0], sizes = [512, 4], strides = [1, 1]} : vector<576x4xbf16> to vector<512x4xbf16>
    %c0_4 = arith.constant 0 : index
    %c1 = arith.constant 1 : index
    %c0_5 = arith.constant 0 : index
    %4 = vector.load %arg2[%c0_4, %c1, %c0_5] : memref<1x592x4xbf16, #tpu.memory_space<vmem>>, vector<1x576x4xbf16>
    %5 = vector.shape_cast %4 : vector<1x576x4xbf16> to vector<576x4xbf16>
    %6 = vector.extract_strided_slice %5 {offsets = [0, 0], sizes = [512, 4], strides = [1, 1]} : vector<576x4xbf16> to vector<512x4xbf16>
    %c0_6 = arith.constant 0 : index
    %c2 = arith.constant 2 : index
    %c0_7 = arith.constant 0 : index
    %7 = vector.load %arg2[%c0_6, %c2, %c0_7] : memref<1x592x4xbf16, #tpu.memory_space<vmem>>, vector<1x576x4xbf16>
    %8 = vector.shape_cast %7 : vector<1x576x4xbf16> to vector<576x4xbf16>
    %9 = vector.extract_strided_slice %8 {offsets = [0, 0], sizes = [512, 4], strides = [1, 1]} : vector<576x4xbf16> to vector<512x4xbf16>
    %10 = vector.extract_strided_slice %2 {offsets = [32, 0], sizes = [512, 4], strides = [1, 1]} : vector<576x4xbf16> to vector<512x4xbf16>
    %11 = vector.extract_strided_slice %5 {offsets = [32, 0], sizes = [512, 4], strides = [1, 1]} : vector<576x4xbf16> to vector<512x4xbf16>
    %12 = vector.extract_strided_slice %8 {offsets = [32, 0], sizes = [512, 4], strides = [1, 1]} : vector<576x4xbf16> to vector<512x4xbf16>
    %13 = vector.extract_strided_slice %2 {offsets = [64, 0], sizes = [512, 4], strides = [1, 1]} : vector<576x4xbf16> to vector<512x4xbf16>
    %14 = vector.extract_strided_slice %5 {offsets = [64, 0], sizes = [512, 4], strides = [1, 1]} : vector<576x4xbf16> to vector<512x4xbf16>
    %15 = vector.extract_strided_slice %8 {offsets = [64, 0], sizes = [512, 4], strides = [1, 1]} : vector<576x4xbf16> to vector<512x4xbf16>
    %16 = tpu.concatenate %3, %6, %9, %10, %11, %12, %13, %14, %15 in 1 : vector<512x4xbf16>, vector<512x4xbf16>, vector<512x4xbf16>, vector<512x4xbf16>, vector<512x4xbf16>, vector<512x4xbf16>, vector<512x4xbf16>, vector<512x4xbf16>, vector<512x4xbf16> -> vector<512x36xbf16>
    %c0_8 = arith.constant 0 : index
    %c0_9 = arith.constant 0 : index
    %17 = vector.load %arg3[%c0_8, %c0_9] : memref<36x128xbf16, #tpu.memory_space<vmem>>, vector<36x128xbf16>
    %cst = arith.constant dense<0.000000e+00> : vector<512x128xf32>
    %18 = tpu.matmul %16, %17, %cst {dimension_numbers = #tpu.dot_dimension_numbers<[1], [0], [0], [1], [0, 0, 1, 1], [], []>} : vector<512x36xbf16>, vector<36x128xbf16>, vector<512x128xf32> -> vector<512x128xf32>
    %19 = vector.broadcast %0 : vector<1x128xf32> to vector<512x128xf32>
    %20 = arith.addf %18, %19 : vector<512x128xf32>
    %21 = arith.negf %20 : vector<512x128xf32>
    %22 = math.exp %21 : vector<512x128xf32>
    %cst_10 = arith.constant 1.000000e+00 : f32
    %23 = vector.broadcast %cst_10 : f32 to vector<512x128xf32>
    %24 = arith.addf %23, %22 : vector<512x128xf32>
    %25 = arith.divf %23, %24 : vector<512x128xf32>
    %26 = arith.mulf %20, %25 : vector<512x128xf32>
    %27 = arith.truncf %26 : vector<512x128xf32> to vector<512x128xbf16>
    %c0_11 = arith.constant 0 : index
    %c0_12 = arith.constant 0 : index
    %c0_13 = arith.constant 0 : index
    %28 = vector.load %arg5[%c0_11, %c0_12, %c0_13] : memref<1x512x128xbf16, #tpu.memory_space<vmem>>, vector<1x512x128xbf16>
    %29 = vector.shape_cast %28 : vector<1x512x128xbf16> to vector<512x128xbf16>
    %30 = vector.shape_cast %27 : vector<512x128xbf16> to vector<1x512x128xbf16>
    tpu.vector_store %arg5[%c0_11, %c0_12, %c0_13], %30 {strides = array<i32>} : memref<1x512x128xbf16, #tpu.memory_space<vmem>>, vector<1x512x128xbf16>,
    return
  }
  func.func @transform_0(%arg0: i32, %arg1: i32) -> (i32, i32, i32) {
    %c0_i32 = arith.constant 0 : i32
    %c0_i32_0 = arith.constant 0 : i32
    %c0_i32_1 = arith.constant 0 : i32
    return %arg0, %c0_i32, %c0_i32_0 : i32, i32, i32
  }
  func.func @transform_1(%arg0: i32, %arg1: i32) -> (i32, i32) {
    %c0_i32 = arith.constant 0 : i32
    %c0_i32_0 = arith.constant 0 : i32
    return %c0_i32, %arg1 : i32, i32
  }
  func.func @transform_2(%arg0: i32, %arg1: i32) -> (i32, i32) {
    %c0_i32 = arith.constant 0 : i32
    %c0_i32_0 = arith.constant 0 : i32
    return %c0_i32, %arg1 : i32, i32
  }
  func.func @transform_3(%arg0: i32, %arg1: i32) -> (i32, i32, i32) {
    %c0_i32 = arith.constant 0 : i32
    %c0_i32_0 = arith.constant 0 : i32
    return %arg0, %c0_i32, %arg1 : i32, i32, i32
  }
}

module attributes {stable_mosaic.version = 11 : i64} {
  func.func @_conv_bn_silu_kernel(%arg0: i32, %arg1: i32, %arg2: memref<1x592x4xbf16, #tpu.memory_space<vmem>>, %arg3: memref<9x4x128xbf16, #tpu.memory_space<vmem>>, %arg4: memref<1x128xf32, #tpu.memory_space<vmem>>, %arg5: memref<1x512x128xbf16, #tpu.memory_space<vmem>>) attributes {dimension_semantics = [#tpu.dimension_semantics<parallel>, #tpu.dimension_semantics<parallel>], iteration_bounds = array<i64: 2, 1>, scalar_prefetch = 0 : i64, scratch_operands = 0 : i64, tpu.core_type = #tpu.core_type<tc>, window_params = [{transform_indices = @transform_0, window_bounds = array<i64: 1, 592, 4>}, {transform_indices = @transform_1, window_bounds = array<i64: 9, 4, 128>}, {transform_indices = @transform_2, window_bounds = array<i64: 1, 128>}, {transform_indices = @transform_3, window_bounds = array<i64: 1, 512, 128>}]} {
    %c0 = arith.constant 0 : index
    %c0_0 = arith.constant 0 : index
    %0 = vector.load %arg4[%c0, %c0_0] : memref<1x128xf32, #tpu.memory_space<vmem>>, vector<1x128xf32>
    %c0_1 = arith.constant 0 : index
    %c0_2 = arith.constant 0 : index
    %c0_3 = arith.constant 0 : index
    %1 = vector.load %arg2[%c0_1, %c0_2, %c0_3] : memref<1x592x4xbf16, #tpu.memory_space<vmem>>, vector<1x576x4xbf16>
    %2 = vector.shape_cast %1 : vector<1x576x4xbf16> to vector<576x4xbf16>
    %3 = vector.extract_strided_slice %2 {offsets = [0, 0], sizes = [512, 4], strides = [1, 1]} : vector<576x4xbf16> to vector<512x4xbf16>
    %c0_4 = arith.constant 0 : index
    %c1 = arith.constant 1 : index
    %c0_5 = arith.constant 0 : index
    %4 = vector.load %arg2[%c0_4, %c1, %c0_5] : memref<1x592x4xbf16, #tpu.memory_space<vmem>>, vector<1x576x4xbf16>
    %5 = vector.shape_cast %4 : vector<1x576x4xbf16> to vector<576x4xbf16>
    %6 = vector.extract_strided_slice %5 {offsets = [0, 0], sizes = [512, 4], strides = [1, 1]} : vector<576x4xbf16> to vector<512x4xbf16>
    %c0_6 = arith.constant 0 : index
    %c2 = arith.constant 2 : index
    %c0_7 = arith.constant 0 : index
    %7 = vector.load %arg2[%c0_6, %c2, %c0_7] : memref<1x592x4xbf16, #tpu.memory_space<vmem>>, vector<1x576x4xbf16>
    %8 = vector.shape_cast %7 : vector<1x576x4xbf16> to vector<576x4xbf16>
    %9 = vector.extract_strided_slice %8 {offsets = [0, 0], sizes = [512, 4], strides = [1, 1]} : vector<576x4xbf16> to vector<512x4xbf16>
    %10 = vector.extract_strided_slice %2 {offsets = [32, 0], sizes = [512, 4], strides = [1, 1]} : vector<576x4xbf16> to vector<512x4xbf16>
    %11 = vector.extract_strided_slice %5 {offsets = [32, 0], sizes = [512, 4], strides = [1, 1]} : vector<576x4xbf16> to vector<512x4xbf16>
    %12 = vector.extract_strided_slice %8 {offsets = [32, 0], sizes = [512, 4], strides = [1, 1]} : vector<576x4xbf16> to vector<512x4xbf16>
    %13 = vector.extract_strided_slice %2 {offsets = [64, 0], sizes = [512, 4], strides = [1, 1]} : vector<576x4xbf16> to vector<512x4xbf16>
    %14 = vector.extract_strided_slice %5 {offsets = [64, 0], sizes = [512, 4], strides = [1, 1]} : vector<576x4xbf16> to vector<512x4xbf16>
    %15 = vector.extract_strided_slice %8 {offsets = [64, 0], sizes = [512, 4], strides = [1, 1]} : vector<576x4xbf16> to vector<512x4xbf16>
    %c0_8 = arith.constant 0 : index
    %c0_9 = arith.constant 0 : index
    %c0_10 = arith.constant 0 : index
    %16 = vector.load %arg3[%c0_8, %c0_9, %c0_10] : memref<9x4x128xbf16, #tpu.memory_space<vmem>>, vector<1x4x128xbf16>
    %17 = vector.shape_cast %16 : vector<1x4x128xbf16> to vector<4x128xbf16>
    %cst = arith.constant dense<0.000000e+00> : vector<512x128xf32>
    %18 = tpu.matmul %3, %17, %cst {dimension_numbers = #tpu.dot_dimension_numbers<[1], [0], [0], [1], [0, 0, 1, 1], [], []>} : vector<512x4xbf16>, vector<4x128xbf16>, vector<512x128xf32> -> vector<512x128xf32>
    %c1_11 = arith.constant 1 : index
    %c0_12 = arith.constant 0 : index
    %c0_13 = arith.constant 0 : index
    %19 = vector.load %arg3[%c1_11, %c0_12, %c0_13] : memref<9x4x128xbf16, #tpu.memory_space<vmem>>, vector<1x4x128xbf16>
    %20 = vector.shape_cast %19 : vector<1x4x128xbf16> to vector<4x128xbf16>
    %cst_14 = arith.constant dense<0.000000e+00> : vector<512x128xf32>
    %21 = tpu.matmul %6, %20, %cst_14 {dimension_numbers = #tpu.dot_dimension_numbers<[1], [0], [0], [1], [0, 0, 1, 1], [], []>} : vector<512x4xbf16>, vector<4x128xbf16>, vector<512x128xf32> -> vector<512x128xf32>
    %22 = arith.addf %18, %21 : vector<512x128xf32>
    %c2_15 = arith.constant 2 : index
    %c0_16 = arith.constant 0 : index
    %c0_17 = arith.constant 0 : index
    %23 = vector.load %arg3[%c2_15, %c0_16, %c0_17] : memref<9x4x128xbf16, #tpu.memory_space<vmem>>, vector<1x4x128xbf16>
    %24 = vector.shape_cast %23 : vector<1x4x128xbf16> to vector<4x128xbf16>
    %cst_18 = arith.constant dense<0.000000e+00> : vector<512x128xf32>
    %25 = tpu.matmul %9, %24, %cst_18 {dimension_numbers = #tpu.dot_dimension_numbers<[1], [0], [0], [1], [0, 0, 1, 1], [], []>} : vector<512x4xbf16>, vector<4x128xbf16>, vector<512x128xf32> -> vector<512x128xf32>
    %26 = arith.addf %22, %25 : vector<512x128xf32>
    %c3 = arith.constant 3 : index
    %c0_19 = arith.constant 0 : index
    %c0_20 = arith.constant 0 : index
    %27 = vector.load %arg3[%c3, %c0_19, %c0_20] : memref<9x4x128xbf16, #tpu.memory_space<vmem>>, vector<1x4x128xbf16>
    %28 = vector.shape_cast %27 : vector<1x4x128xbf16> to vector<4x128xbf16>
    %cst_21 = arith.constant dense<0.000000e+00> : vector<512x128xf32>
    %29 = tpu.matmul %10, %28, %cst_21 {dimension_numbers = #tpu.dot_dimension_numbers<[1], [0], [0], [1], [0, 0, 1, 1], [], []>} : vector<512x4xbf16>, vector<4x128xbf16>, vector<512x128xf32> -> vector<512x128xf32>
    %30 = arith.addf %26, %29 : vector<512x128xf32>
    %c4 = arith.constant 4 : index
    %c0_22 = arith.constant 0 : index
    %c0_23 = arith.constant 0 : index
    %31 = vector.load %arg3[%c4, %c0_22, %c0_23] : memref<9x4x128xbf16, #tpu.memory_space<vmem>>, vector<1x4x128xbf16>
    %32 = vector.shape_cast %31 : vector<1x4x128xbf16> to vector<4x128xbf16>
    %cst_24 = arith.constant dense<0.000000e+00> : vector<512x128xf32>
    %33 = tpu.matmul %11, %32, %cst_24 {dimension_numbers = #tpu.dot_dimension_numbers<[1], [0], [0], [1], [0, 0, 1, 1], [], []>} : vector<512x4xbf16>, vector<4x128xbf16>, vector<512x128xf32> -> vector<512x128xf32>
    %34 = arith.addf %30, %33 : vector<512x128xf32>
    %c5 = arith.constant 5 : index
    %c0_25 = arith.constant 0 : index
    %c0_26 = arith.constant 0 : index
    %35 = vector.load %arg3[%c5, %c0_25, %c0_26] : memref<9x4x128xbf16, #tpu.memory_space<vmem>>, vector<1x4x128xbf16>
    %36 = vector.shape_cast %35 : vector<1x4x128xbf16> to vector<4x128xbf16>
    %cst_27 = arith.constant dense<0.000000e+00> : vector<512x128xf32>
    %37 = tpu.matmul %12, %36, %cst_27 {dimension_numbers = #tpu.dot_dimension_numbers<[1], [0], [0], [1], [0, 0, 1, 1], [], []>} : vector<512x4xbf16>, vector<4x128xbf16>, vector<512x128xf32> -> vector<512x128xf32>
    %38 = arith.addf %34, %37 : vector<512x128xf32>
    %c6 = arith.constant 6 : index
    %c0_28 = arith.constant 0 : index
    %c0_29 = arith.constant 0 : index
    %39 = vector.load %arg3[%c6, %c0_28, %c0_29] : memref<9x4x128xbf16, #tpu.memory_space<vmem>>, vector<1x4x128xbf16>
    %40 = vector.shape_cast %39 : vector<1x4x128xbf16> to vector<4x128xbf16>
    %cst_30 = arith.constant dense<0.000000e+00> : vector<512x128xf32>
    %41 = tpu.matmul %13, %40, %cst_30 {dimension_numbers = #tpu.dot_dimension_numbers<[1], [0], [0], [1], [0, 0, 1, 1], [], []>} : vector<512x4xbf16>, vector<4x128xbf16>, vector<512x128xf32> -> vector<512x128xf32>
    %42 = arith.addf %38, %41 : vector<512x128xf32>
    %c7 = arith.constant 7 : index
    %c0_31 = arith.constant 0 : index
    %c0_32 = arith.constant 0 : index
    %43 = vector.load %arg3[%c7, %c0_31, %c0_32] : memref<9x4x128xbf16, #tpu.memory_space<vmem>>, vector<1x4x128xbf16>
    %44 = vector.shape_cast %43 : vector<1x4x128xbf16> to vector<4x128xbf16>
    %cst_33 = arith.constant dense<0.000000e+00> : vector<512x128xf32>
    %45 = tpu.matmul %14, %44, %cst_33 {dimension_numbers = #tpu.dot_dimension_numbers<[1], [0], [0], [1], [0, 0, 1, 1], [], []>} : vector<512x4xbf16>, vector<4x128xbf16>, vector<512x128xf32> -> vector<512x128xf32>
    %46 = arith.addf %42, %45 : vector<512x128xf32>
    %c8 = arith.constant 8 : index
    %c0_34 = arith.constant 0 : index
    %c0_35 = arith.constant 0 : index
    %47 = vector.load %arg3[%c8, %c0_34, %c0_35] : memref<9x4x128xbf16, #tpu.memory_space<vmem>>, vector<1x4x128xbf16>
    %48 = vector.shape_cast %47 : vector<1x4x128xbf16> to vector<4x128xbf16>
    %cst_36 = arith.constant dense<0.000000e+00> : vector<512x128xf32>
    %49 = tpu.matmul %15, %48, %cst_36 {dimension_numbers = #tpu.dot_dimension_numbers<[1], [0], [0], [1], [0, 0, 1, 1], [], []>} : vector<512x4xbf16>, vector<4x128xbf16>, vector<512x128xf32> -> vector<512x128xf32>
    %50 = arith.addf %46, %49 : vector<512x128xf32>
    %51 = vector.broadcast %0 : vector<1x128xf32> to vector<512x128xf32>
    %52 = arith.addf %50, %51 : vector<512x128xf32>
    %53 = arith.negf %52 : vector<512x128xf32>
    %54 = math.exp %53 : vector<512x128xf32>
    %cst_37 = arith.constant 1.000000e+00 : f32
    %55 = vector.broadcast %cst_37 : f32 to vector<512x128xf32>
    %56 = arith.addf %55, %54 : vector<512x128xf32>
    %57 = arith.divf %55, %56 : vector<512x128xf32>
    %58 = arith.mulf %52, %57 : vector<512x128xf32>
    %59 = arith.truncf %58 : vector<512x128xf32> to vector<512x128xbf16>
    %c0_38 = arith.constant 0 : index
    %c0_39 = arith.constant 0 : index
    %c0_40 = arith.constant 0 : index
    %60 = vector.load %arg5[%c0_38, %c0_39, %c0_40] : memref<1x512x128xbf16, #tpu.memory_space<vmem>>, vector<1x512x128xbf16>
    %61 = vector.shape_cast %60 : vector<1x512x128xbf16> to vector<512x128xbf16>
    %62 = vector.shape_cast %59 : vector<512x128xbf16> to vector<1x512x128xbf16>
    tpu.vector_store %arg5[%c0_38, %c0_39, %c0_40], %62 {strides = array<i32>} : memref<1x512x128xbf16, #tpu.memory_space<vmem>>, vector<1x512x128xbf16>,
    return
  }
  func.func @transform_0(%arg0: i32, %arg1: i32) -> (i32, i32, i32) {
    %c0_i32 = arith.constant 0 : i32
    %c0_i32_0 = arith.constant 0 : i32
    %c0_i32_1 = arith.constant 0 : i32
    return %arg0, %c0_i32, %c0_i32_0 : i32, i32, i32
  }
  func.func @transform_1(%arg0: i32, %arg1: i32) -> (i32, i32, i32) {
    %c0_i32 = arith.constant 0 : i32
    %c0_i32_0 = arith.constant 0 : i32
    %c0_i32_1 = arith.constant 0 : i32
    return %c0_i32, %c0_i32_0, %arg1 : i32, i32, i32
  }
  func.func @transform_2(%arg0: i32, %arg1: i32) -> (i32, i32) {
    %c0_i32 = arith.constant 0 : i32
    %c0_i32_0 = arith.constant 0 : i32
    return %c0_i32, %arg1 : i32, i32
  }
  func.func @transform_3(%arg0: i32, %arg1: i32) -> (i32, i32, i32) {
    %c0_i32 = arith.constant 0 : i32
    %c0_i32_0 = arith.constant 0 : i32
    return %arg0, %c0_i32, %arg1 : i32, i32, i32
  }
}

</mosaic_0001>

<bundles_post_ra>
// kernel: _conv_bn_silu_impl.1
= control target key start
LH: loop header
LB: loop body
LE: loop exit
PB: predicated region body
PF: predicated region fallthrough
CT: control target
= control target key end

     0   :  { %s4146_s12 = smov 0   ;;  %s4148_s13 = smov 0   ;;  %s6003_s0 = inlined_call_operand.vmem [shape: bf16[2,592,4], index: 0, kind: input, shape index: {}]   ;;  %s6004_s1 = inlined_call_operand.vmem [shape: bf16[36,128], index: 1, kind: input, shape index: {}]   ;;  %s6005_s2 = inlined_call_operand.vmem [shape: f32[1,128], index: 2, kind: input, shape index: {}]   ;;  %s6006_s3 = inlined_call_operand.vmem [shape: bf16[2,512,128], index: 3, kind: output, shape index: {}]  }
   0x1   :  { %s4150_s14 = smov 0  }
   0x2 LB: > { %s25_s15 = sadd.s32 1, %s4112_s13  ;;  %p3162_p0 = scmp.ge.s32.totalorder %s4116_s14, 1  ;;  %s4116_s14 = sphi %s4150_s14, %s13_s14   ;;  %s4112_s13 = sphi %s4148_s13, %s6215_s13   ;;  %s4108_s12 = sphi %s4146_s12, %s6214_s12  }
   0x3   : > { %p27_p1 = scmp.ge.s32.totalorder %s25_s15, 2  ;;  %p168_p2 = scmp.lt.s32.totalorder %s4116_s14, 3 }
   0x5   : > { %s6217_s15 = smov (%p27_p1, %s25_s15), 0  ;;  %p169_p3 = pnand %p3162_p0, %p168_p2 }
   0x7   : > { %172 = sbr.rel (%p169_p3) target bundleno = 905 (0x389), region = 32 }
   0xe   : > { %p202_p4 = scmp.lt.s32.totalorder %s4108_s12, 1  ;;  %vm461_vm0 = vsmask.f32 7424  ;;  %s4118_s20 = smov 4   ;;  %vm789_vm1 = vcmask 1046528   ;;  %vm1990_vm2 = vcmask 1041408  }
   0xf   : > { %s4119_s21 = smov 8   ;;  %s4120_s22 = smov 12   ;;  %vm1379_vm3 = vcmask 31744   ;;  %vm1444_vm4 = vcmask 64512   ;;  %vm1574_vm5 = vcmask 130048   ;;  %vm1509_vm6 = vcmask 97280  }
  0x10   : > { %s6219_s12 = smov (!%p202_p4, %s4108_s12), 1  ;;  %s4121_s23 = smov 16   ;;  %vm1639_vm7 = vcmask 162816   ;;  %vm1704_vm8 = vcmask 195584   ;;  %vm1769_vm9 = vcmask 228352   ;;  %vm1834_vm10 = vcmask 261120  }
  0x11   : > { %s3741_s16 = smul.u32 296, %s6219_s12  ;;  %s4122_s24 = smov 20   ;;  %vm1925_vm11 = vcmask 293888  }
  0x12   : > { %s4123_s29 = smov 24   ;;  %s4124_s5 = smov 28  }
  0x13   : > { %s4170_s19 = scalar_lea.vmem %s6003_s0, %s3741_s16  ;;  %s4125_s6 = smov 32  }
  0x14   : > { %v4173_v0 = vld [vmem:[%s4170_s19 + $0x10] sm:$0xff]   ;;  %v4176_v1 = vld [vmem:[%s4170_s19 + $0x18] sm:$0xff]   ;;  %v224_v2 = vld [vmem:[%s4170_s19] sm:$0xf]  ;;  %s3372_s9 = sshll.u32 %s6219_s12, 8 }
  0x15   : > { %v4180_v3 = vld [vmem:[%s4170_s19 + $0x4] sm:$0xf]  ;;  %v478_v4 = vshll.u32 %v4173_v0, 16  ;;  %v482_v5 = vshrl.u32 %v4173_v0, 16  ;;  %v486_v6 = vshll.u32 %v4176_v1, 16  ;;  %v4189_v8 = vld [vmem:[%s4170_s19 + $0x8] sm:$0xff]   ;;  %s5679_s16 = scalar_lea.vmem %s6006_s3, %s3372_s9 }
  0x16   : > { %v4186_v7 = vcombine.low %v224_v2, %v4180_v3  ;;  %v4192_v9 = vld [vmem:[%s4170_s19 + $0x20] sm:$0xff]   ;;  %v490_v10 = vshrl.u32 %v4176_v1, 16  ;;  %v470_v15 = vshll.u32 %v4189_v8, 16  ;;  %v474_v17 = vshrl.u32 %v4189_v8, 16  ;;  %v4201_v18 = vld [vmem:[%s4170_s19 + $0x28] sm:$0xff]   ;;  %v4204_v22 = vld [vmem:[%s4170_s19 + $0x30] sm:$0xff]  }
  0x17   : > { %v480_v11 = vrot.slane %v478_v4, 1  ;;  %v488_v12 = vrot.slane %v486_v6, 1  ;;  %v494_v16 = vshll.u32 %v4192_v9, 16  ;;  %v502_v25 = vshll.u32 %v4201_v18, 16  ;;  %v4216_v33 = vld [vmem:[%s4170_s19 + $0x38] sm:$0xff]   ;;  %v4219_v34 = vld [vmem:[%s4170_s19 + $0x40] sm:$0xff]  }
  0x18   : > { %6088 = vst [vmem:[#allocation2_spill] sm:$0xff] %v4186_v7  ;;  %v463_v13 = vshrl.u32 %v4186_v7, 16  ;;  %v465_v14 = vshll.u32 %v4186_v7, 16  ;;  %v472_v23 = vrot.slane %v470_v15, 1  ;;  %v506_v26 = vshrl.u32 %v4201_v18, 16  ;;  %v4227_v39 = vld [vmem:[%s4170_s19 + $0x48] sm:$0xff]  }
  0x19   : > { %v484_v19 = vor.u32 %v482_v5, %v480_v11  ;;  %v492_v21 = vor.u32 %v490_v10, %v488_v12  ;;  %v496_v24 = vrot.slane %v494_v16, 1  ;;  %v510_v29 = vshll.u32 %v4204_v22, 16  ;;  %v4235_v46 = vld [vmem:[%s4170_s19 + $0x50] sm:$0xff]   ;;  %v4239_v48 = vld [vmem:[%s4170_s19 + $0x58] sm:$0xff]   ;;  %v4248_v52 = vld [vmem:[%s4170_s19 + $0x60] sm:$0xff]  }
  0x1a   : > { %v467_v20 = vrot.slane %v465_v14, 1  ;;  %v498_v30 = vshrl.u32 %v4192_v9, 16  ;;  %v476_v31 = vor.u32 %v474_v17, %v472_v23  ;;  %v504_v32 = vrot.slane %v502_v25, 1  ;;  %v4262_v2 = vld [vmem:[%s4170_s19 + $0x68] sm:$0xff]   ;;  %v4265_v4 = vld [vmem:[%s4170_s19 + $0x70] sm:$0xff]   ;;  %v4281_v16 = vld [vmem:[%s4170_s19 + $0x80] sm:$0xff]  }
  0x1b   : > { %v4209_v27 = vsel %vm461_vm0, %v484_v19, %v488_v12  ;;  %v514_v35 = vshrl.u32 %v4204_v22, 16  ;;  %v4224_v37 = vsel %vm461_vm0, %v492_v21, %v496_v24  ;;  %v512_v38 = vrot.slane %v510_v29, 1  ;;  %v4288_v21 = vld [vmem:[%s4170_s19 + $0x88] sm:$0xff]  }
  0x1c   : > { %v468_v28 = vor.u32 %v467_v20, %v463_v13  ;;  %726 = vrot.lane.b32.xlu1 %v4209_v27, %s4118_s20  ;;  %v508_v40 = vor.u32 %v506_v26, %v504_v32  ;;  %v518_v41 = vshll.u32 %v4216_v33, 16  ;;  %v522_v42 = vshrl.u32 %v4216_v33, 16 }
  0x1d   : > { %v481_v43 = vsel %vm461_vm0, %v476_v31, %v480_v11  ;;  %v500_v44 = vor.u32 %v498_v30, %v496_v24  ;;  %v526_v45 = vshll.u32 %v4219_v34, 16  ;;  %v534_v47 = vshll.u32 %v4227_v39, 16  ;;  %v4271_v11 = vld [vmem:[%s4170_s19 + $0x78] sm:$0xff]  }
  0x1e   : > { %v473_v36 = vsel %vm461_vm0, %v468_v28, %v472_v23  ;;  %v4244_v49 = vsel %vm461_vm0, %v508_v40, %v512_v38  ;;  %v520_v50 = vrot.slane %v518_v41, 1  ;;  %v538_v51 = vshrl.u32 %v4227_v39, 16 }
  0x1f   : > { %722 = vrot.lane.b32.xlu0 %v473_v36, %s4118_s20  ;;  %v528_v53 = vrot.slane %v526_v45, 1  ;;  %v536_v54 = vrot.slane %v534_v47, 1  ;;  %v542_v55 = vshll.u32 %v4235_v46, 16  ;;  %v550_v56 = vshll.u32 %v4239_v48, 16  ;;  %v4305_v36 = vld [vmem:[%s4170_s19 + $0x90] sm:$0xff]  }
  0x20   : > { %728 = vrot.lane.b32.xlu1 %v4224_v37, %s4118_s20  ;;  %v524_v57 = vor.u32 %v522_v42, %v520_v50  ;;  %v4254_v58 = vsel %vm461_vm0, %v500_v44, %v504_v32  ;;  %v516_v59 = vor.u32 %v514_v35, %v512_v38  ;;  %v530_v60 = vshrl.u32 %v4219_v34, 16 }
  0x21   : > { %v554_v61 = vshrl.u32 %v4239_v48, 16  ;;  %v544_v62 = vrot.slane %v542_v55, 1  ;;  %v558_v63 = vshll.u32 %v4248_v52, 16  ;;  %v540_v6 = vor.u32 %v538_v51, %v536_v54 }
  0x22   : > { %v4268_v5 = vsel %vm461_vm0, %v524_v57, %v528_v53  ;;  %v552_v10 = vrot.slane %v550_v56, 1  ;;  %v566_v12 = vshll.u32 %v4262_v2, 16  ;;  %v4277_v13 = vsel %vm461_vm0, %v516_v59, %v520_v50  ;;  %v4331_v59 = vld [vmem:[%s4170_s19 + $0xa0] sm:$0xff]  }
  0x23   : > { %724 = vrot.lane.b32.xlu0 %v481_v43, %s4118_s20  ;;  %6089 = vst [vmem:[#allocation3_spill] sm:$0xff] %v4268_v5  ;;  %v532_v14 = vor.u32 %v530_v60, %v528_v53  ;;  %v546_v15 = vshrl.u32 %v4235_v46, 16  ;;  %v560_v17 = vrot.slane %v558_v63, 1  ;;  %v570_v19 = vshrl.u32 %v4262_v2, 16  ;;  %v4312_v43 = vld [vmem:[%s4170_s19 + $0x98] sm:$0xff]   ;;  %v4322_v53 = vld [vmem:[%s4170_s19 + $0xa8] sm:$0xff]  }
  0x24   : > { %732 = vrot.lane.b32.xlu1 %v4244_v49, %s4118_s20  ;;  %v574_v20 = vshll.u32 %v4265_v4, 16  ;;  %v4291_v23 = vsel %vm461_vm0, %v540_v6, %v544_v62  ;;  %v556_v24 = vor.u32 %v554_v61, %v552_v10  ;;  %v568_v25 = vrot.slane %v566_v12, 1  ;;  %v4341_v6 = vld [vmem:[%s4170_s19 + $0xb0] sm:$0xff]  }
  0x25   : > { %6090 = vst [vmem:[#allocation4_spill] sm:$0xff] %v4291_v23  ;;  %v582_v26 = vshll.u32 %v4271_v11, 16  ;;  %v4297_v28 = vsel %vm461_vm0, %v532_v14, %v536_v54  ;;  %v548_v29 = vor.u32 %v546_v15, %v544_v62  ;;  %v562_v30 = vshrl.u32 %v4248_v52, 16  ;;  %v4348_v15 = vld [vmem:[%s4170_s19 + $0xb8] sm:$0xff]  }
  0x26   : > { %6091 = vst [vmem:[#allocation5_spill] sm:$0xff] %v4297_v28  ;;  %v590_v31 = vshll.u32 %v4281_v16, 16  ;;  %v576_v32 = vrot.slane %v574_v20, 1  ;;  %v586_v35 = vshrl.u32 %v4271_v11, 16  ;;  %v598_v38 = vshll.u32 %v4288_v21, 16 }
  0x27   : > { %730 = vrot.lane.b32.xlu0 %v4254_v58, %s4118_s20  ;;  %v4309_v40 = vsel %vm461_vm0, %v556_v24, %v560_v17  ;;  %v572_v41 = vor.u32 %v570_v19, %v568_v25  ;;  %v584_v42 = vrot.slane %v582_v26, 1  ;;  %v578_v44 = vshrl.u32 %v4265_v4, 16 }
  0x28   : > { %736 = vrot.lane.b32.xlu1 %v4268_v5, %s4118_s20  ;;  %6092 = vst [vmem:[#allocation6_spill] sm:$0xff] %v4309_v40  ;;  %v4318_v45 = vsel %vm461_vm0, %v548_v29, %v552_v10  ;;  %v564_v47 = vor.u32 %v562_v30, %v560_v17  ;;  %v592_v50 = vrot.slane %v590_v31, 1  ;;  %v602_v51 = vshrl.u32 %v4288_v21, 16 }
  0x29   : > { %6093 = vst [vmem:[#allocation7_spill] sm:$0xff] %v4318_v45  ;;  %v600_v54 = vrot.slane %v598_v38, 1  ;;  %v606_v55 = vshll.u32 %v4305_v36, 16  ;;  %v4328_v56 = vsel %vm461_vm0, %v572_v41, %v576_v32  ;;  %v588_v57 = vor.u32 %v586_v35, %v584_v42  ;;  %v4365_v35 = vld [vmem:[%s4170_s19 + $0xc0] sm:$0xff]  }
  0x2a   : > { %6094 = vst [vmem:[#allocation8_spill] sm:$0xff] %v4328_v56  ;;  %v614_v60 = vshll.u32 %v4312_v43, 16  ;;  %v580_v61 = vor.u32 %v578_v44, %v576_v32  ;;  %v594_v62 = vshrl.u32 %v4281_v16, 16  ;;  %v4338_v63 = vsel %vm461_vm0, %v564_v47, %v568_v25  ;;  %v4372_v47 = vld [vmem:[%s4170_s19 + $0xc8] sm:$0xff]  }
  0x2b   : > { %734 = vrot.lane.b32.xlu0 %v4277_v13, %s4118_s20  ;;  %6095 = vst [vmem:[#allocation9_spill] sm:$0xff] %v4338_v63  ;;  %v630_v10 = vshll.u32 %v4322_v53, 16  ;;  %v608_v12 = vrot.slane %v606_v55, 1  ;;  %v618_v14 = vshrl.u32 %v4312_v43, 16  ;;  %v4351_v17 = vsel %vm461_vm0, %v588_v57, %v592_v50 }
  0x2c   : > { %740 = vrot.lane.b32.xlu1 %v4291_v23, %s4118_s20  ;;  %6096 = vst [vmem:[#allocation10_spill] sm:$0xff] %v4351_v17  ;;  %v604_v19 = vor.u32 %v602_v51, %v600_v54  ;;  %v616_v20 = vrot.slane %v614_v60, 1  ;;  %v622_v24 = vshll.u32 %v4331_v59, 16  ;;  %v4357_v25 = vsel %vm461_vm0, %v580_v61, %v584_v42 }
  0x2d   : > { %6097 = vst [vmem:[#allocation11_spill] sm:$0xff] %v4357_v25  ;;  %v596_v26 = vor.u32 %v594_v62, %v592_v50  ;;  %v610_v29 = vshrl.u32 %v4305_v36, 16  ;;  %v632_v30 = vrot.slane %v630_v10, 1  ;;  %v634_v31 = vshrl.u32 %v4322_v53, 16  ;;  %v4384_v10 = vld [vmem:[%s4170_s19 + $0xd8] sm:$0xff]  }
  0x2e   : > { %v638_v32 = vshll.u32 %v4341_v6, 16  ;;  %v646_v38 = vshll.u32 %v4348_v15, 16  ;;  %v4369_v41 = vsel %vm461_vm0, %v604_v19, %v608_v12  ;;  %v620_v42 = vor.u32 %v618_v14, %v616_v20 }
  0x2f   : > { %738 = vrot.lane.b32.xlu0 %v4297_v28, %s4118_s20  ;;  %6098 = vst [vmem:[#allocation12_spill] sm:$0xff] %v4369_v41  ;;  %v624_v44 = vrot.slane %v622_v24, 1  ;;  %v4377_v50 = vsel %vm461_vm0, %v596_v26, %v600_v54  ;;  %v612_v51 = vor.u32 %v610_v29, %v608_v12  ;;  %v626_v55 = vshrl.u32 %v4331_v59, 16  ;;  %v4391_v12 = vld [vmem:[%s4170_s19 + $0xd0] sm:$0xff]  }
  0x30   : > { %744 = vrot.lane.b32.xlu1 %v4309_v40, %s4118_s20  ;;  %6099 = vst [vmem:[#allocation13_spill] sm:$0xff] %v4377_v50  ;;  %v636_v57 = vor.u32 %v634_v31, %v632_v30  ;;  %v640_v60 = vrot.slane %v638_v32, 1  ;;  %v648_v61 = vrot.slane %v646_v38, 1  ;;  %v650_v62 = vshrl.u32 %v4348_v15, 16  ;;  %v4406_v38 = vld [vmem:[%s4170_s19 + $0xe0] sm:$0xff]  }
  0x31   : > { %v4387_v14 = vsel %vm461_vm0, %v620_v42, %v624_v44  ;;  %v654_v54 = vshll.u32 %v4365_v35, 16  ;;  %v662_v19 = vshll.u32 %v4372_v47, 16  ;;  %v4397_v24 = vsel %vm461_vm0, %v612_v51, %v616_v20 }
  0x32   : > { %6100 = vst [vmem:[#allocation14_spill] sm:$0xff] %v4387_v14  ;;  %6101 = vst [vmem:[#allocation15_spill] sm:$0xff] %v4397_v24  ;;  %v628_v26 = vor.u32 %v626_v55, %v624_v44  ;;  %v642_v29 = vshrl.u32 %v4341_v6, 16  ;;  %v4403_v31 = vsel %vm461_vm0, %v636_v57, %v640_v60  ;;  %v652_v32 = vor.u32 %v650_v62, %v648_v61 }
  0x33   : > { %742 = vrot.lane.b32.xlu0 %v4318_v45, %s4118_s20  ;;  %v678_v42 = vshll.u32 %v4384_v10, 16  ;;  %v664_v20 = vrot.slane %v662_v19, 1  ;;  %v666_v44 = vshrl.u32 %v4372_v47, 16  ;;  %v670_v51 = vshll.u32 %v4391_v12, 16 }
  0x34   : > { %748 = vrot.lane.b32.xlu1 %v4328_v56, %s4118_s20  ;;  %v4417_v55 = vsel %vm461_vm0, %v628_v26, %v632_v30  ;;  %v644_v57 = vor.u32 %v642_v29, %v640_v60  ;;  %v658_v62 = vshrl.u32 %v4365_v35, 16  ;;  %v682_v19 = vshrl.u32 %v4384_v10, 16  ;;  %v4429_v30 = vld [vmem:[%s4170_s19 + $0xf0] sm:$0xff]   ;;  %v4432_v60 = vld [vmem:[%s4170_s19 + $0xf8] sm:$0xff]   ;;  %v288_v26 = vld [vmem:[%s4170_s19 + $0x100] sm:$0xf] }
  0x35   : > { %v672_v40 = vrot.slane %v670_v51, 1  ;;  %6103 = vst [vmem:[#allocation17_spill] sm:$0xff] %v4429_v30  ;;  %6104 = vst [vmem:[#allocation18_spill] sm:$0xff] %v4432_v60  ;;  %v674_v45 = vshrl.u32 %v4391_v12, 16  ;;  %v702_v28 = vshll.u32 %v4429_v30, 16  ;;  %v4448_v5 = vcombine.low %v288_v26, %v288_v26 }
  0x36   : > { %v4438_v29 = vsel %vm461_vm0, %v644_v57, %v648_v61  ;;  %v710_v61 = vshll.u32 %v4432_v60, 16  ;;  %v714_v26 = vshrl.u32 %v4432_v60, 16 }
  0x37   : > { %746 = vrot.lane.b32.xlu0 %v4338_v63, %s4118_s20  ;;  %v668_v63 = vor.u32 %v666_v44, %v664_v20 }
  0x38   : > { %752 = vrot.lane.b32.xlu1 %v4351_v17, %s4118_s20  ;;  %v686_v17 = vshll.u32 %v4406_v38, 16 }
  0x39   : > { %v4445_v23 = vsel %vm461_vm0, %v668_v63, %v672_v40 }
  0x3a   : > { %v688_v44 = vrot.slane %v686_v17, 1  ;;  %6105 = vst [vmem:[#allocation19_spill] sm:$0xff] %v4445_v23  ;;  %v676_v17 = vor.u32 %v674_v45, %v672_v40 }
  0x3b   : > { %750 = vrot.lane.b32.xlu0 %v4357_v25, %s4118_s20 }
  0x3c   : > { %756 = vrot.lane.b32.xlu1 %v4369_v41, %s4118_s20  ;;  %v4410_v41 = vld [vmem:[%s4170_s19 + $0xe8] sm:$0xff]  }
  0x3d   : > { %v694_v25 = vshll.u32 %v4410_v41, 16  ;;  %v698_v7 = vshrl.u32 %v4410_v41, 16 }
  0x3f   : > { %754 = vrot.lane.b32.xlu0 %v4377_v50, %s4118_s20  ;;  %v656_v50 = vrot.slane %v654_v54, 1  ;;  %v680_v54 = vrot.slane %v678_v42, 1  ;;  %v696_v51 = vrot.slane %v694_v25, 1  ;;  %v690_v25 = vshrl.u32 %v4406_v38, 16 }
  0x40   : > { %760 = vrot.lane.b32.xlu1 %v4387_v14, %s4118_s20 }
  0x41   : > { %v4426_v56 = vsel %vm461_vm0, %v652_v32, %v656_v50  ;;  %v660_v42 = vor.u32 %v658_v62, %v656_v50  ;;  %v684_v32 = vor.u32 %v682_v19, %v680_v54  ;;  %v700_v57 = vor.u32 %v698_v7, %v696_v51 }
  0x42   : > { %6102 = vst [vmem:[#allocation16_spill] sm:$0xff] %v4426_v56  ;;  %v704_v62 = vrot.slane %v702_v28, 1  ;;  %v712_v19 = vrot.slane %v710_v61, 1  ;;  %v4467_v40 = vsel %vm461_vm0, %v676_v17, %v680_v54  ;;  %v692_v45 = vor.u32 %v690_v25, %v688_v44 }
  0x43   : > { %758 = vrot.lane.b32.xlu0 %v4397_v24, %s4118_s20  ;;  %v4454_v50 = vsel %vm461_vm0, %v660_v42, %v664_v20  ;;  %v4460_v63 = vsel %vm461_vm0, %v684_v32, %v688_v44  ;;  %6108 = vst [vmem:[#allocation22_spill] sm:$0xff] %v4467_v40  ;;  %v706_v20 = vshrl.u32 %v4429_v30, 16  ;;  %v297_v42 = vld [vmem:[%s4170_s19] sm:$0xe]  ;;  %v791_v25 = vrot.slane %v4189_v8, 1 }
  0x44   : > { %764 = vrot.lane.b32.xlu1 %v4403_v31, %s4118_s20  ;;  %6106 = vst [vmem:[#allocation20_spill] sm:$0xff] %v4454_v50  ;;  %6107 = vst [vmem:[#allocation21_spill] sm:$0xff] %v4460_v63  ;;  %v4474_v7 = vsel %vm461_vm0, %v700_v57, %v704_v62  ;;  %v4476_v28 = vor.u32 %v714_v26, %v712_v19  ;;  %v4481_v61 = vsel %vm461_vm0, %v692_v45, %v696_v51 }
  0x45   : > { %6109 = vst [vmem:[#allocation23_spill] sm:$0xff] %v4474_v7  ;;  %6111 = vst [vmem:[#allocation25_spill] sm:$0xff] %v4481_v61  ;;  %v708_v54 = vor.u32 %v706_v20, %v704_v62  ;;  %v3199_v44 = vcombine.low %v297_v42, %v4180_v3  ;;  %v793_v57 = vrot.slane %v4173_v0, 1  ;;  %v795_v62 = vrot.slane %v4176_v1, 1 }
  0x46   : > { %6110 = vst [vmem:[#allocation24_spill] sm:$0xff] %v4476_v28  ;;  %v797_v26 = vrot.slane %v4192_v9, 1  ;;  %v799_v45 = vrot.slane %v4201_v18, 1  ;;  %v801_v20 = vrot.slane %v4204_v22, 1 }
  0x47   : > { %762 = vrot.lane.b32.xlu0 %v4417_v55, %s4118_s20  ;;  %v790_v51 = vrot.slane %v3199_v44, 1  ;;  %v794_v3 = vsel %vm789_vm1, %v791_v25, %v793_v57  ;;  %v4510_v42 = vsel %vm789_vm1, %v793_v57, %v795_v62  ;;  %v805_v44 = vrot.slane %v4219_v34, 1 }
  0x48   : > { %768 = vrot.lane.b32.xlu1 %v4426_v56, %s4118_s20  ;;  %v718_v56 = vshll.u32 %v4448_v5, 16  ;;  %v807_v57 = vrot.slane %v4227_v39, 1 }
  0x49   : > { %v792_v8 = vsel %vm789_vm1, %v790_v51, %v791_v25  ;;  %v809_v51 = vrot.slane %v4235_v46, 1 }
  0x4a   : > { %v720_v32 = vrot.slane %v718_v56, 1  ;;  %v4493_v56 = vsel %vm461_vm0, %v708_v54, %v712_v19  ;;  %v4504_v19 = vsel %vm789_vm1, %v795_v62, %v797_v26  ;;  %v803_v54 = vrot.slane %v4216_v33, 1 }
  0x4b   : > { %766 = vrot.lane.b32.xlu0 %v4438_v29, %s4118_s20  ;;  %6112 = vst [vmem:[#allocation26_spill] sm:$0xff] %v4493_v56  ;;  %v4539_v62 = vsel %vm789_vm1, %v807_v57, %v809_v51 }
  0x4c   : > { %772 = vrot.lane.b32.xlu1 %v4445_v23, %s4118_s20  ;;  %v721_v17 = vsel %vm461_vm0, %v4476_v28, %v720_v32  ;;  %v4515_v32 = vsel %vm789_vm1, %v799_v45, %v801_v20  ;;  %v4527_v25 = vsel %vm789_vm1, %v803_v54, %v805_v44  ;;  %6113 = vst [vmem:[#allocation27_spill] sm:$0xff] %v4539_v62  ;;  %v817_v28 = vrot.slane %v4265_v4, 1 }
  0x4f   : > { %770 = vrot.lane.b32.xlu0 %v4454_v50, %s4118_s20  ;;  %v853_v50 = vrot.slane %v4448_v5, 1 }
  0x50   : > { %776 = vrot.lane.b32.xlu1 %v4460_v63, %s4118_s20  ;;  %v845_v63 = vrot.slane %v4406_v38, 1 }
  0x53   : > { %774 = vrot.lane.b32.xlu0 %v4467_v40, %s4118_s20 }
  0x54   : > { %780 = vrot.lane.b32.xlu1 %v4474_v7, %s4118_s20  ;;  %v821_v7 = vrot.slane %v4281_v16, 1 }
  0x57   : > { %778 = vrot.lane.b32.xlu0 %v4481_v61, %s4118_s20 }
  0x58   : > { %784 = vrot.lane.b32.xlu1 %v721_v17, %s4118_s20  ;;  %v4522_v17 = vsel %vm789_vm1, %v797_v26, %v799_v45  ;;  %v811_v26 = vrot.slane %v4239_v48, 1  ;;  %v4546_v45 = vsel %vm789_vm1, %v805_v44, %v807_v57  ;;  %v819_v57 = vrot.slane %v4271_v11, 1 }
  0x59   : > { %6114 = vst [vmem:[#allocation28_spill] sm:$0xff] %v4546_v45 }
  0x5a   : > { %v4582_v16 = vsel %vm789_vm1, %v817_v28, %v819_v57 }
  0x5b   : > { %782 = vrot.lane.b32.xlu0 %v4493_v56, %s4118_s20  ;;  %v4558_v56 = vsel %vm789_vm1, %v809_v51, %v811_v26  ;;  %v4575_v51 = vsel %vm789_vm1, %v819_v57, %v821_v7  ;;  %6120 = vst [vmem:[#allocation34_spill] sm:$0xff] %v4582_v16  ;;  %v831_v57 = vrot.slane %v4322_v53, 1 }
  0x5c   : > { %857 = vrot.lane.b32.xlu1 %v794_v3, %s4119_s21  ;;  %v4534_v3 = vsel %vm789_vm1, %v801_v20, %v803_v54  ;;  %v815_v54 = vrot.slane %v4262_v2, 1  ;;  %6116 = vst [vmem:[#allocation30_spill] sm:$0xff] %v4558_v56  ;;  %6119 = vst [vmem:[#allocation33_spill] sm:$0xff] %v4575_v51 }
  0x5e   : > { %v4563_v44 = vsel %vm789_vm1, %v815_v54, %v817_v28 }
  0x5f   : > { %855 = vrot.lane.b32.xlu0 %v792_v8, %s4119_s21  ;;  %v813_v8 = vrot.slane %v4248_v52, 1  ;;  %6117 = vst [vmem:[#allocation31_spill] sm:$0xff] %v4563_v44 }
  0x60   : > { %861 = vrot.lane.b32.xlu1 %v4504_v19, %s4119_s21 }
  0x61   : > { %v4551_v20 = vsel %vm789_vm1, %v811_v26, %v813_v8  ;;  %v4570_v61 = vsel %vm789_vm1, %v813_v8, %v815_v54  ;;  %v823_v26 = vrot.slane %v4288_v21, 1  ;;  %v827_v54 = vrot.slane %v4312_v43, 1 }
  0x62   : > { %6115 = vst [vmem:[#allocation29_spill] sm:$0xff] %v4551_v20  ;;  %6118 = vst [vmem:[#allocation32_spill] sm:$0xff] %v4570_v61 }
  0x63   : > { %859 = vrot.lane.b32.xlu0 %v4510_v42, %s4119_s21  ;;  %v4594_v21 = vsel %vm789_vm1, %v821_v7, %v823_v26 }
  0x64   : > { %865 = vrot.lane.b32.xlu1 %v4515_v32, %s4119_s21  ;;  %6122 = vst [vmem:[#allocation36_spill] sm:$0xff] %v4594_v21 }
  0x67   : > { %863 = vrot.lane.b32.xlu0 %v4522_v17, %s4119_s21 }
  0x68   : > { %869 = vrot.lane.b32.xlu1 %v4527_v25, %s4119_s21 }
  0x6b   : > { %867 = vrot.lane.b32.xlu0 %v4534_v3, %s4119_s21 }
  0x6c   : > { %873 = vrot.lane.b32.xlu1 %v4539_v62, %s4119_s21  ;;  %v849_v62 = vrot.slane %v4429_v30, 1 }
  0x6f   : > { %871 = vrot.lane.b32.xlu0 %v4546_v45, %s4119_s21 }
  0x70   : > { %877 = vrot.lane.b32.xlu1 %v4551_v20, %s4119_s21  ;;  %v825_v20 = vrot.slane %v4305_v36, 1 }
  0x72   : > { %v4587_v8 = vsel %vm789_vm1, %v823_v26, %v825_v20  ;;  %v835_v26 = vrot.slane %v4348_v15, 1 }
  0x73   : > { %875 = vrot.lane.b32.xlu0 %v4558_v56, %s4119_s21  ;;  %6121 = vst [vmem:[#allocation35_spill] sm:$0xff] %v4587_v8 }
  0x74   : > { %881 = vrot.lane.b32.xlu1 %v4563_v44, %s4119_s21  ;;  %v829_v44 = vrot.slane %v4331_v59, 1 }
  0x76   : > { %v4599_v28 = vsel %vm789_vm1, %v827_v54, %v829_v44 }
  0x77   : > { %879 = vrot.lane.b32.xlu0 %v4570_v61, %s4119_s21  ;;  %6123 = vst [vmem:[#allocation37_spill] sm:$0xff] %v4599_v28  ;;  %v4606_v61 = vsel %vm789_vm1, %v825_v20, %v827_v54  ;;  %v839_v54 = vrot.slane %v4372_v47, 1 }
  0x78   : > { %885 = vrot.lane.b32.xlu1 %v4575_v51, %s4119_s21  ;;  %v833_v51 = vrot.slane %v4341_v6, 1  ;;  %6124 = vst [vmem:[#allocation38_spill] sm:$0xff] %v4606_v61 }
  0x7a   : > { %v4611_v7 = vsel %vm789_vm1, %v831_v57, %v833_v51  ;;  %v4630_v56 = vsel %vm789_vm1, %v833_v51, %v835_v26 }
  0x7b   : > { %883 = vrot.lane.b32.xlu0 %v4582_v16, %s4119_s21  ;;  %v4618_v16 = vsel %vm789_vm1, %v829_v44, %v831_v57  ;;  %v843_v57 = vrot.slane %v4384_v10, 1 }
  0x7c   : > { %889 = vrot.lane.b32.xlu1 %v4587_v8, %s4119_s21  ;;  %v837_v8 = vrot.slane %v4365_v35, 1 }
  0x7d   : > { %v4647_v51 = vsel %vm789_vm1, %v843_v57, %v845_v63 }
  0x7e   : > { %v4623_v20 = vsel %vm789_vm1, %v835_v26, %v837_v8  ;;  %v4642_v40 = vsel %vm789_vm1, %v837_v8, %v839_v54  ;;  %6127 = vst [vmem:[#allocation41_spill] sm:$0xff] %v4647_v51  ;;  %v847_v26 = vrot.slane %v4410_v41, 1 }
  0x7f   : > { %887 = vrot.lane.b32.xlu0 %v4594_v21, %s4119_s21  ;;  %v841_v21 = vrot.slane %v4391_v12, 1  ;;  %6126 = vst [vmem:[#allocation40_spill] sm:$0xff] %v4642_v40 }
  0x80   : > { %893 = vrot.lane.b32.xlu1 %v4599_v28, %s4119_s21 }
  0x81   : > { %v4635_v44 = vsel %vm789_vm1, %v839_v54, %v841_v21  ;;  %v4656_v23 = vsel %vm789_vm1, %v841_v21, %v843_v57  ;;  %v4663_v54 = vsel %vm789_vm1, %v847_v26, %v849_v62  ;;  %v4674_v21 = vsel %vm789_vm1, %v845_v63, %v847_v26 }
  0x82   : > { %6125 = vst [vmem:[#allocation39_spill] sm:$0xff] %v4635_v44  ;;  %6129 = vst [vmem:[#allocation43_spill] sm:$0xff] %v4656_v23 }
  0x83   : > { %891 = vrot.lane.b32.xlu0 %v4606_v61, %s4119_s21  ;;  %6131 = vst [vmem:[#allocation45_spill] sm:$0xff] %v4663_v54  ;;  %6134 = vst [vmem:[#allocation48_spill] sm:$0xff] %v4674_v21 }
  0x84   : > { %897 = vrot.lane.b32.xlu1 %v4611_v7, %s4119_s21 }
  0x87   : > { %895 = vrot.lane.b32.xlu0 %v4618_v16, %s4119_s21 }
  0x88   : > { %901 = vrot.lane.b32.xlu1 %v4623_v20, %s4119_s21 }
  0x8b   : > { %899 = vrot.lane.b32.xlu0 %v4630_v56, %s4119_s21 }
  0x8c   : > { %905 = vrot.lane.b32.xlu1 %v4635_v44, %s4119_s21  ;;  %v4666_v44 = vrot.slane %v4432_v60, 1 }
  0x8e   : > { %v4653_v45 = vpop.permute.xlu1 %726  ;;  %6132 = vst [vmem:[#allocation46_spill] sm:$0xff] %v4666_v44 }
  0x8f   : > { %903 = vrot.lane.b32.xlu0 %v4642_v40, %s4119_s21  ;;  %6128 = vst [vmem:[#allocation42_spill] sm:$0xff] %v4653_v45 }
  0x90   : > { %909 = vrot.lane.b32.xlu1 %v4647_v51, %s4119_s21  ;;  %v854_v51 = vsel %vm789_vm1, %v4666_v44, %v853_v50 }
  0x91   : > { %v4658_v8 = vpop.permute.xlu0 %722 }
  0x92   : > { %6130 = vst [vmem:[#allocation44_spill] sm:$0xff] %v4658_v8  ;;  %v4671_v45 = vpop.permute.xlu1 %728 }
  0x93   : > { %907 = vrot.lane.b32.xlu0 %v4656_v23, %s4119_s21  ;;  %6133 = vst [vmem:[#allocation47_spill] sm:$0xff] %v4671_v45  ;;  %v4688_v23 = vsel %vm789_vm1, %v849_v62, %v4666_v44 }
  0x94   : > { %913 = vrot.lane.b32.xlu1 %v4663_v54, %s4119_s21  ;;  %6136 = vst [vmem:[#allocation50_spill] sm:$0xff] %v4688_v23 }
  0x95   : > { %v4676_v57 = vpop.permute.xlu0 %724 }
  0x96   : > { %6135 = vst [vmem:[#allocation49_spill] sm:$0xff] %v4676_v57  ;;  %v4684_v5 = vpop.permute.xlu1 %732 }
  0x97   : > { %911 = vrot.lane.b32.xlu0 %v4674_v21, %s4119_s21 }
  0x98   : > { %917 = vrot.lane.b32.xlu1 %v854_v51, %s4119_s21 }
  0x99   : > { %v4690_v45 = vpop.permute.xlu0 %730 }
  0x9a   : > { %v4695_v63 = vpop.permute.xlu1 %736 }
  0x9b   : > { %915 = vrot.lane.b32.xlu0 %v4688_v23, %s4119_s21 }
  0x9c   : > { %929 = vrot.lane.b32.xlu1 %v4176_v1, %s4120_s22 }
  0x9d   : > { %v4697_v26 = vpop.permute.xlu0 %734 }
  0x9e   : > { %v4703_v50 = vpop.permute.xlu1 %740 }
  0x9f   : > { %927 = vrot.lane.b32.xlu0 %v4173_v0, %s4120_s22 }
  0xa0   : > { %933 = vrot.lane.b32.xlu1 %v4201_v18, %s4120_s22 }
  0xa1   : > { %v4705_v62 = vpop.permute.xlu0 %738 }
  0xa2   : > { %v4711_v51 = vpop.permute.xlu1 %744 }
  0xa3   : > { %931 = vrot.lane.b32.xlu0 %v4192_v9, %s4120_s22 }
  0xa4   : > { %937 = vrot.lane.b32.xlu1 %v4216_v33, %s4120_s22 }
  0xa5   : > { %v4713_v44 = vpop.permute.xlu0 %742 }
  0xa6   : > { %v4719_v0 = vpop.permute.xlu1 %748 }
  0xa7   : > { %935 = vrot.lane.b32.xlu0 %v4204_v22, %s4120_s22 }
  0xa8   : > { %941 = vrot.lane.b32.xlu1 %v4227_v39, %s4120_s22 }
  0xa9   : > { %v4721_v1 = vpop.permute.xlu0 %746 }
  0xaa   : > { %v4727_v23 = vpop.permute.xlu1 %752 }
  0xab   : > { %939 = vrot.lane.b32.xlu0 %v4219_v34, %s4120_s22 }
  0xac   : > { %961 = vrot.lane.b32.xlu1 %v4312_v43, %s4120_s22 }
  0xad   : > { %v4729_v54 = vpop.permute.xlu0 %750 }
  0xae   : > { %v4735_v21 = vpop.permute.xlu1 %756 }
  0xaf   : > { %959 = vrot.lane.b32.xlu0 %v4305_v36, %s4120_s22  ;;  %6137 = vst [vmem:[#allocation51_spill] sm:$0xff] %v4735_v21 }
  0xb0   : > { %1047 = vrot.lane.b32.xlu1 %v4397_v24, %s4121_s23 }
  0xb1   : > { %v4737_v57 = vpop.permute.xlu0 %754 }
  0xb2   : > { %6138 = vst [vmem:[#allocation52_spill] sm:$0xff] %v4737_v57  ;;  %v4743_v8 = vpop.permute.xlu1 %760 }
  0xb3   : > { %1015 = vrot.lane.b32.xlu0 %v4209_v27, %s4121_s23  ;;  %6139 = vst [vmem:[#allocation53_spill] sm:$0xff] %v4743_v8 }
  0xb4   : > { %1049 = vrot.lane.b32.xlu1 %v4387_v14, %s4121_s23  ;;  %v3809_v14 = vld [vmem:[%s6004_s1] sm:$0xff]  }
  0xb5   : > { %v4745_v40 = vpop.permute.xlu0 %758  ;;  %3663 = vmatprep.subr.bf16.mxu0 %v3809_v14  ;;  %3733 = vmatprep.subr.bf16.mxu1 %v3809_v14 }
  0xb6   : > { %6140 = vst [vmem:[#allocation54_spill] sm:$0xff] %v4745_v40  ;;  %v4751_v36 = vpop.permute.xlu1 %764  ;;  %3664 = vmatpush3.bf16.msra.mxu0 %v3809_v14  ;;  %3736 = vmatpush3.bf16.msra.mxu1 %v3809_v14  ;;  %v3811_v14 = vld [vmem:[%s6004_s1 + $0x10] ss:$0 sps:$4 sm:$0x33]  }
  0xb7   : > { %1017 = vrot.lane.b32.xlu0 %v4224_v37, %s4121_s23  ;;  %v1992_v8 = vsel %vm1990_vm2, %v3811_v14, 0 }
  0xb8   : > { %1117 = vrot.lane.b32.xlu1 %v4606_v61, %s4122_s24 }
  0xb9   : > { %v4753_v43 = vpop.permute.xlu0 %762 }
  0xba   : > { %v4759_v27 = vpop.permute.xlu1 %768 }
  0xbb   : > { %1085 = vrot.lane.b32.xlu0 %v4510_v42, %s4122_s24  ;;  %v3810_v42 = vld [vmem:[%s6004_s1 + $0x8] sm:$0xff]  }
  0xbc   : > { %1119 = vrot.lane.b32.xlu1 %v4599_v28, %s4122_s24  ;;  %3665 = vmatprep.subr.bf16.mxu0 %v3810_v42 }
  0xbd   : > { %v4764_v24 = vpop.permute.xlu0 %766  ;;  %3734 = vmatprep.subr.bf16.mxu1 %v3810_v42  ;;  %3666 = vmatpush3.bf16.msra.mxu0 %v3810_v42 }
  0xbe   : > { %v4770_v37 = vpop.permute.xlu1 %772  ;;  %3737 = vmatpush3.bf16.msra.mxu1 %v3810_v42  ;;  %3739 = vmatprep.subr.msk.bf16.mxu0 %vm1990_vm2, %v3811_v14 }
  0xbf   : > { %1087 = vrot.lane.b32.xlu0 %v4504_v19, %s4122_s24  ;;  %3740 = vmatprep.subr.msk.bf16.mxu1 %vm1990_vm2, %v3811_v14 }
  0xc0   : > { %1189 = vrot.lane.b32.xlu1 %v4331_v59, %s4123_s29 }
  0xc1   : > { %v4775_v61 = vpop.permute.xlu0 %770  ;;  %3668 = vmatpush3.bf16.msra.mxu0 %v1992_v8 }
  0xc2   : > { %v4781_v19 = vpop.permute.xlu1 %776  ;;  %3738 = vmatpush3.bf16.msra.mxu1 %v1992_v8 }
  0xc3   : > { %1157 = vrot.lane.b32.xlu0 %v4192_v9, %s4123_s29 }
  0xc4   : > { %1191 = vrot.lane.b32.xlu1 %v4322_v53, %s4123_s29 }
  0xc5   : > { %v4786_v28 = vpop.permute.xlu0 %774 }
  0xc6   : > { %v4792_v40 = vpop.permute.xlu1 %780 }
  0xc7   : > { %1159 = vrot.lane.b32.xlu0 %v4201_v18, %s4123_s29 }
  0xc8   : > { %1277 = vrot.lane.b32.xlu1 %v4417_v55, %s4124_s5 }
  0xc9   : > { %v4794_v42 = vpop.permute.xlu0 %778 }
  0xca   : > { %v4800_v21 = vpop.permute.xlu1 %784 }
  0xcb   : > { %1245 = vrot.lane.b32.xlu0 %v4254_v58, %s4124_s5  ;;  %6141 = vst [vmem:[#allocation55_spill] sm:$0xff] %v4800_v21 }
  0xcc   : > { %1279 = vrot.lane.b32.xlu1 %v4403_v31, %s4124_s5 }
  0xcd   : > { %v4802_v57 = vpop.permute.xlu0 %782 }
  0xce   : > { %6142 = vst [vmem:[#allocation56_spill] sm:$0xff] %v4802_v57  ;;  %v4808_v8 = vpop.permute.xlu1 %857 }
  0xcf   : > { %1247 = vrot.lane.b32.xlu0 %v4244_v49, %s4124_s5  ;;  %6143 = vst [vmem:[#allocation57_spill] sm:$0xff] %v4808_v8  ;;  %v1391_v8 = vsel %vm1379_vm3, %v4201_v18, %v4684_v5  ;;  %v1395_v18 = vsel %vm1379_vm3, %v4216_v33, %v4695_v63 }
  0xd0   : > { %1347 = vrot.lane.b32.xlu1 %v4618_v16, %s4125_s6 }
  0xd1   : > { %v4810_v14 = vpop.permute.xlu0 %855 }
  0xd2   : > { %6144 = vst [vmem:[#allocation58_spill] sm:$0xff] %v4810_v14  ;;  %v4816_v30 = vpop.permute.xlu1 %861 }
  0xd3   : > { %1315 = vrot.lane.b32.xlu0 %v4522_v17, %s4125_s6  ;;  %6145 = vst [vmem:[#allocation59_spill] sm:$0xff] %v4816_v30  ;;  %v1389_v30 = vsel %vm1379_vm3, %v4192_v9, %v4690_v45  ;;  %v1393_v9 = vsel %vm1379_vm3, %v4204_v22, %v4697_v26  ;;  %v1397_v26 = vsel %vm1379_vm3, %v4219_v34, %v4705_v62 }
  0xd4   : > { %1349 = vrot.lane.b32.xlu1 %v4611_v7, %s4125_s6  ;;  %v1401_v34 = vsel %vm1379_vm3, %v4235_v46, %v4713_v44  ;;  %v1405_v46 = vsel %vm1379_vm3, %v4248_v52, %v4721_v1  ;;  %v1409_v52 = vsel %vm1379_vm3, %v4265_v4, %v4729_v54 }
  0xd5   : > { %v4818_v57 = vpop.permute.xlu0 %859 }
  0xd6   : > { %6146 = vst [vmem:[#allocation60_spill] sm:$0xff] %v4818_v57  ;;  %v866_v14 = vpop.permute.xlu1 %865 }
  0xd7   : > { %1317 = vrot.lane.b32.xlu0 %v4515_v32, %s4125_s6  ;;  %v4828_v60 = vsel %vm1444_vm4, %v1391_v8, %v866_v14 }
  0xd8   : > { %965 = vrot.lane.b32.xlu1 %v4322_v53, %s4120_s22 }
  0xd9   : > { %v864_v57 = vpop.permute.xlu0 %863 }
  0xda   : > { %v4836_v21 = vsel %vm1444_vm4, %v1389_v30, %v864_v57  ;;  %v870_v5 = vpop.permute.xlu1 %869  ;;  %v1399_v57 = vsel %vm1379_vm3, %v4227_v39, %v4703_v50  ;;  %v1403_v39 = vsel %vm1379_vm3, %v4239_v48, %v4711_v51  ;;  %v1407_v48 = vsel %vm1379_vm3, %v4262_v2, %v4719_v0 }
  0xdb   : > { %963 = vrot.lane.b32.xlu0 %v4331_v59, %s4120_s22  ;;  %v4844_v8 = vsel %vm1444_vm4, %v1395_v18, %v870_v5  ;;  %v1411_v2 = vsel %vm1379_vm3, %v4271_v11, %v4727_v23 }
  0xdc   : > { %1051 = vrot.lane.b32.xlu1 %v4417_v55, %s4121_s23 }
  0xdd   : > { %v868_v45 = vpop.permute.xlu0 %867 }
  0xde   : > { %v4852_v30 = vsel %vm1444_vm4, %v1393_v9, %v868_v45  ;;  %v874_v63 = vpop.permute.xlu1 %873  ;;  %v6149_v45 = vld [vmem:[#allocation16_spill] sm:$0xff] }
  0xdf   : > { %1019 = vrot.lane.b32.xlu0 %v4254_v58, %s4121_s23  ;;  %v4860_v14 = vsel %vm1444_vm4, %v1399_v57, %v874_v63 }
  0xe0   : > { %1053 = vrot.lane.b32.xlu1 %v4403_v31, %s4121_s23 }
  0xe1   : > { %v872_v18 = vpop.permute.xlu0 %871 }
  0xe2   : > { %v4868_v55 = vsel %vm1444_vm4, %v1397_v26, %v872_v18  ;;  %v878_v58 = vpop.permute.xlu1 %877 }
  0xe3   : > { %1021 = vrot.lane.b32.xlu0 %v4244_v49, %s4121_s23  ;;  %v4876_v50 = vsel %vm1444_vm4, %v1403_v39, %v878_v58 }
  0xe4   : > { %1121 = vrot.lane.b32.xlu1 %v4618_v16, %s4122_s24 }
  0xe5   : > { %v876_v62 = vpop.permute.xlu0 %875 }
  0xe6   : > { %v4884_v31 = vsel %vm1444_vm4, %v1401_v34, %v876_v62  ;;  %v882_v49 = vpop.permute.xlu1 %881 }
  0xe7   : > { %1089 = vrot.lane.b32.xlu0 %v4522_v17, %s4122_s24  ;;  %v4892_v51 = vsel %vm1444_vm4, %v1407_v48, %v882_v49 }
  0xe8   : > { %1123 = vrot.lane.b32.xlu1 %v4611_v7, %s4122_s24 }
  0xe9   : > { %v880_v44 = vpop.permute.xlu0 %879 }
  0xea   : > { %v4900_v16 = vsel %vm1444_vm4, %v1405_v46, %v880_v44  ;;  %v886_v17 = vpop.permute.xlu1 %885 }
  0xeb   : > { %1091 = vrot.lane.b32.xlu0 %v4515_v32, %s4122_s24  ;;  %v4908_v0 = vsel %vm1444_vm4, %v1411_v2, %v886_v17 }
  0xec   : > { %6147 = vst [vmem:[#allocation61_spill] sm:$0xff] %v4908_v0  ;;  %1193 = vrot.lane.b32.xlu1 %v4341_v6, %s4123_s29 }
  0xed   : > { %v884_v1 = vpop.permute.xlu0 %883 }
  0xee   : > { %v4916_v7 = vsel %vm1444_vm4, %v1409_v52, %v884_v1  ;;  %v4920_v11 = vpop.permute.xlu1 %889  ;;  %v6151_v1 = vld [vmem:[#allocation55_spill] sm:$0xff] }
  0xef   : > { %6148 = vst [vmem:[#allocation62_spill] sm:$0xff] %v4916_v7  ;;  %1161 = vrot.lane.b32.xlu0 %v4204_v22, %s4123_s29  ;;  %v1423_v22 = vsel %vm1379_vm3, %v4322_v53, %v4751_v36  ;;  %v1427_v53 = vsel %vm1379_vm3, %v4348_v15, %v4759_v27  ;;  %v6150_v36 = vld [vmem:[#allocation3_spill] sm:$0xff]  ;;  %v1431_v27 = vsel %vm1379_vm3, %v4372_v47, %v4770_v37  ;;  %v6168_v7 = vld [vmem:[#allocation58_spill] sm:$0xff] }
  0xf0   : > { %1195 = vrot.lane.b32.xlu1 %v4348_v15, %s4123_s29  ;;  %v1435_v37 = vsel %vm1379_vm3, %v4384_v10, %v4781_v19  ;;  %v1439_v19 = vsel %vm1379_vm3, %v4410_v41, %v4792_v40  ;;  %v6152_v41 = vld [vmem:[#allocation18_spill] sm:$0xff] }
  0xf1   : > { %v4922_v23 = vpop.permute.xlu0 %887  ;;  %v1443_v40 = vsel %vm1379_vm3, %v6152_v41, %v6151_v1  ;;  %v6163_v1 = vld [vmem:[#allocation39_spill] sm:$0xff] }
  0xf2   : > { %v4928_v4 = vpop.permute.xlu1 %893  ;;  %v6164_v41 = vld [vmem:[#allocation27_spill] sm:$0xff] }
  0xf3   : > { %1163 = vrot.lane.b32.xlu0 %v4216_v33, %s4123_s29  ;;  %v1421_v33 = vsel %vm1379_vm3, %v4331_v59, %v4753_v43  ;;  %v1425_v59 = vsel %vm1379_vm3, %v4341_v6, %v4764_v24  ;;  %v1429_v24 = vsel %vm1379_vm3, %v4365_v35, %v4775_v61  ;;  %v1433_v61 = vsel %vm1379_vm3, %v4391_v12, %v4786_v28 }
  0xf4   : > { %1281 = vrot.lane.b32.xlu1 %v4438_v29, %s4124_s5  ;;  %v1437_v28 = vsel %vm1379_vm3, %v4406_v38, %v4794_v42  ;;  %v6155_v38 = vld [vmem:[#allocation17_spill] sm:$0xff] }
  0xf5   : > { %v4930_v32 = vpop.permute.xlu0 %891 }
  0xf6   : > { %v898_v54 = vpop.permute.xlu1 %897 }
  0xf7   : > { %1249 = vrot.lane.b32.xlu0 %v4277_v13, %s4124_s5  ;;  %v4940_v5 = vsel %vm1444_vm4, %v1423_v22, %v898_v54  ;;  %v6154_v54 = vld [vmem:[#allocation56_spill] sm:$0xff] }
  0xf8   : > { %1283 = vrot.lane.b32.xlu1 %v6149_v45, %s4124_s5  ;;  %v1441_v42 = vsel %vm1379_vm3, %v6155_v38, %v6154_v54 }
  0xf9   : > { %v896_v9 = vpop.permute.xlu0 %895 }
  0xfa   : > { %v4948_v57 = vsel %vm1444_vm4, %v1421_v33, %v896_v9  ;;  %v902_v63 = vpop.permute.xlu1 %901 }
  0xfb   : > { %1251 = vrot.lane.b32.xlu0 %v6150_v36, %s4124_s5  ;;  %v4956_v26 = vsel %vm1444_vm4, %v1427_v53, %v902_v63 }
  0xfc   : > { %1351 = vrot.lane.b32.xlu1 %v4630_v56, %s4125_s6 }
  0xfd   : > { %v900_v43 = vpop.permute.xlu0 %899 }
  0xfe   : > { %v4964_v18 = vsel %vm1444_vm4, %v1425_v59, %v900_v43  ;;  %v906_v39 = vpop.permute.xlu1 %905 }
  0xff   : > { %1319 = vrot.lane.b32.xlu0 %v4534_v3, %s4125_s6  ;;  %v4972_v58 = vsel %vm1444_vm4, %v1431_v27, %v906_v39  ;;  %v6157_v27 = vld [vmem:[#allocation20_spill] sm:$0xff]  ;;  %v6158_v39 = vld [vmem:[#allocation5_spill] sm:$0xff] }
 0x100   : > { %1353 = vrot.lane.b32.xlu1 %v4623_v20, %s4125_s6 }
 0x101   : > { %v904_v34 = vpop.permute.xlu0 %903 }
 0x102   : > { %v4980_v62 = vsel %vm1444_vm4, %v1429_v24, %v904_v34  ;;  %v910_v48 = vpop.permute.xlu1 %909 }
 0x103   : > { %1321 = vrot.lane.b32.xlu0 %v4527_v25, %s4125_s6  ;;  %v4988_v49 = vsel %vm1444_vm4, %v1435_v37, %v910_v48  ;;  %v6159_v37 = vld [vmem:[#allocation19_spill] sm:$0xff]  ;;  %v6160_v48 = vld [vmem:[#allocation4_spill] sm:$0xff] }
 0x104   : > { %969 = vrot.lane.b32.xlu1 %v4348_v15, %s4120_s22 }
 0x105   : > { %v908_v46 = vpop.permute.xlu0 %907 }
 0x106   : > { %v4996_v44 = vsel %vm1444_vm4, %v1433_v61, %v908_v46  ;;  %v914_v2 = vpop.permute.xlu1 %913 }
 0x107   : > { %967 = vrot.lane.b32.xlu0 %v4341_v6, %s4120_s22  ;;  %v5004_v17 = vsel %vm1444_vm4, %v1439_v19, %v914_v2  ;;  %v6161_v19 = vld [vmem:[#allocation40_spill] sm:$0xff] }
 0x108   : > { %1055 = vrot.lane.b32.xlu1 %v4438_v29, %s4121_s23  ;;  %v6162_v2 = vld [vmem:[#allocation28_spill] sm:$0xff] }
 0x109   : > { %v912_v52 = vpop.permute.xlu0 %911 }
 0x10a   : > { %v5012_v15 = vsel %vm1444_vm4, %v1437_v28, %v912_v52  ;;  %v918_v6 = vpop.permute.xlu1 %917 }
 0x10b   : > { %1023 = vrot.lane.b32.xlu0 %v4277_v13, %s4121_s23  ;;  %v5020_v22 = vsel %vm1444_vm4, %v1443_v40, %v918_v6 }
 0x10c   : > { %6153 = vst [vmem:[#allocation16_spill] sm:$0xff] %v5020_v22  ;;  %1057 = vrot.lane.b32.xlu1 %v6149_v45, %s4121_s23 }
 0x10d   : > { %v916_v29 = vpop.permute.xlu0 %915 }
 0x10e   : > { %v5028_v33 = vsel %vm1444_vm4, %v1441_v42, %v916_v29  ;;  %v5032_v13 = vpop.permute.xlu1 %929 }
 0x10f   : > { %6156 = vst [vmem:[#allocation3_spill] sm:$0xff] %v5028_v33  ;;  %1025 = vrot.lane.b32.xlu0 %v6150_v36, %s4121_s23 }
 0x110   : > { %1125 = vrot.lane.b32.xlu1 %v4630_v56, %s4122_s24  ;;  %v4073_v56 = vld [vmem:[%s4170_s19 + $0x40] sm:$0xff]  }
 0x111   : > { %v5034_v9 = vpop.permute.xlu0 %927 }
 0x112   : > { %v5040_v53 = vpop.permute.xlu1 %933 }
 0x113   : > { %1093 = vrot.lane.b32.xlu0 %v4534_v3, %s4122_s24 }
 0x114   : > { %1127 = vrot.lane.b32.xlu1 %v4623_v20, %s4122_s24  ;;  %v4074_v20 = vld [vmem:[%s4170_s19 + $0x48] sm:$0xff]  }
 0x115   : > { %v5042_v45 = vpop.permute.xlu0 %931 }
 0x116   : > { %v5048_v36 = vpop.permute.xlu1 %937 }
 0x117   : > { %1095 = vrot.lane.b32.xlu0 %v4527_v25, %s4122_s24 }
 0x118   : > { %1197 = vrot.lane.b32.xlu1 %v4365_v35, %s4123_s29 }
 0x119   : > { %v5050_v63 = vpop.permute.xlu0 %935 }
 0x11a   : > { %v5056_v3 = vpop.permute.xlu1 %941 }
 0x11b   : > { %1165 = vrot.lane.b32.xlu0 %v4073_v56, %s4123_s29  ;;  %v5095_v56 = vld [vmem:[%s4170_s19 + $0x80] sm:$0xff]  }
 0x11c   : > { %1199 = vrot.lane.b32.xlu1 %v4372_v47, %s4123_s29 }
 0x11d   : > { %v5058_v59 = vpop.permute.xlu0 %939 }
 0x11e   : > { %v962_v25 = vpop.permute.xlu1 %961 }
 0x11f   : > { %1167 = vrot.lane.b32.xlu0 %v4074_v20, %s4123_s29 }
 0x120   : > { %1285 = vrot.lane.b32.xlu1 %v6157_v27, %s4124_s5 }
 0x121   : > { %v960_v43 = vpop.permute.xlu0 %959 }
 0x122   : > { %v1048_v24 = vpop.permute.xlu1 %1047 }
 0x123   : > { %1253 = vrot.lane.b32.xlu0 %v6158_v39, %s4124_s5 }
 0x124   : > { %1287 = vrot.lane.b32.xlu1 %v6159_v37, %s4124_s5 }
 0x125   : > { %v1016_v34 = vpop.permute.xlu0 %1015 }
 0x126   : > { %v1050_v61 = vpop.permute.xlu1 %1049 }
 0x127   : > { %1255 = vrot.lane.b32.xlu0 %v6160_v48, %s4124_s5 }
 0x128   : > { %1355 = vrot.lane.b32.xlu1 %v6161_v19, %s4125_s6 }
 0x129   : > { %v5072_v46 = vpop.permute.xlu0 %1017 }
 0x12a   : > { %v1118_v28 = vpop.permute.xlu1 %1117 }
 0x12b   : > { %1323 = vrot.lane.b32.xlu0 %v6162_v2, %s4125_s6 }
 0x12c   : > { %1357 = vrot.lane.b32.xlu1 %v6163_v1, %s4125_s6 }
 0x12d   : > { %v1086_v52 = vpop.permute.xlu0 %1085 }
 0x12e   : > { %v1120_v40 = vpop.permute.xlu1 %1119 }
 0x12f   : > { %1325 = vrot.lane.b32.xlu0 %v6164_v41, %s4125_s6 }
 0x130   : > { %973 = vrot.lane.b32.xlu1 %v4372_v47, %s4120_s22 }
 0x131   : > { %v1088_v6 = vpop.permute.xlu0 %1087 }
 0x132   : > { %v1190_v54 = vpop.permute.xlu1 %1189 }
 0x133   : > { %971 = vrot.lane.b32.xlu0 %v4365_v35, %s4120_s22  ;;  %v6165_v35 = vld [vmem:[#allocation52_spill] sm:$0xff] }
 0x134   : > { %1059 = vrot.lane.b32.xlu1 %v6157_v27, %s4121_s23  ;;  %v1413_v20 = vsel %vm1379_vm3, %v5095_v56, %v6165_v35 }
 0x135   : > { %v1158_v38 = vpop.permute.xlu0 %1157 }
 0x136   : > { %v1192_v42 = vpop.permute.xlu1 %1191 }
 0x137   : > { %1027 = vrot.lane.b32.xlu0 %v6158_v39, %s4121_s23  ;;  %v1478_v39 = vsel %vm1444_vm4, %v1413_v20, %v4922_v23  ;;  %v5114_v23 = vld [vmem:[%s4170_s19 + $0x88] sm:$0xff]  }
 0x138   : > { %1061 = vrot.lane.b32.xlu1 %v6159_v37, %s4121_s23  ;;  %v6166_v37 = vld [vmem:[#allocation44_spill] sm:$0xff]  ;;  %v1543_v22 = vsel %vm1509_vm6, %v1478_v39, %v960_v43  ;;  %v6169_v20 = vld [vmem:[#allocation51_spill] sm:$0xff] }
 0x139   : > { %v1160_v29 = vpop.permute.xlu0 %1159  ;;  %v1608_v33 = vsel %vm1574_vm5, %v1543_v22, %v1048_v24  ;;  %v4077_v24 = vld [vmem:[%s4170_s19 + $0x8] sm:$0xff]  }
 0x13a   : > { %v1278_v47 = vpop.permute.xlu1 %1277  ;;  %v1673_v39 = vsel %vm1639_vm7, %v1608_v33, %v1118_v28 }
 0x13b   : > { %1029 = vrot.lane.b32.xlu0 %v6160_v48, %s4121_s23  ;;  %v6167_v48 = vld [vmem:[#allocation2_spill] sm:$0xff]  ;;  %v1738_v22 = vsel %vm1704_vm8, %v1673_v39, %v1190_v54  ;;  %v4078_v39 = vld [vmem:[%s4170_s19 + $0x50] sm:$0xff]  }
 0x13c   : > { %1129 = vrot.lane.b32.xlu1 %v6161_v19, %s4122_s24  ;;  %v1381_v0 = vsel %vm1379_vm3, %v6167_v48, %v6166_v37  ;;  %v1415_v37 = vsel %vm1379_vm3, %v5114_v23, %v6169_v20  ;;  %v6170_v48 = vld [vmem:[#allocation49_spill] sm:$0xff]  ;;  %v1803_v28 = vsel %vm1769_vm9, %v1738_v22, %v1278_v47 }
 0x13d   : > { %v1246_v27 = vpop.permute.xlu0 %1245  ;;  %v1446_v19 = vsel %vm1444_vm4, %v1381_v0, %v6168_v7  ;;  %v1480_v0 = vsel %vm1444_vm4, %v1415_v37, %v4920_v11  ;;  %v1383_v20 = vsel %vm1379_vm3, %v4077_v24, %v6170_v48  ;;  %v6171_v11 = vld [vmem:[#allocation57_spill] sm:$0xff] }
 0x13e   : > { %v1280_v35 = vpop.permute.xlu1 %1279  ;;  %v1511_v43 = vsel %vm1509_vm6, %v1446_v19, %v5034_v9  ;;  %v1545_v9 = vsel %vm1509_vm6, %v1480_v0, %v962_v25 }
 0x13f   : > { %1097 = vrot.lane.b32.xlu0 %v6162_v2, %s4122_s24  ;;  %v1576_v7 = vsel %vm1574_vm5, %v1511_v43, %v1016_v34  ;;  %v1448_v34 = vsel %vm1444_vm4, %v1383_v20, %v6171_v11  ;;  %v1610_v54 = vsel %vm1574_vm5, %v1545_v9, %v1050_v61  ;;  %v6174_v9 = vld [vmem:[#allocation21_spill] sm:$0xff]  ;;  %v6176_v11 = vld [vmem:[#allocation43_spill] sm:$0xff] }
 0x140   : > { %1131 = vrot.lane.b32.xlu1 %v6163_v1, %s4122_s24  ;;  %v1641_v33 = vsel %vm1639_vm7, %v1576_v7, %v1086_v52  ;;  %v1513_v25 = vsel %vm1509_vm6, %v1448_v34, %v5032_v13  ;;  %v1675_v52 = vsel %vm1639_vm7, %v1610_v54, %v1120_v40  ;;  %v6177_v34 = vld [vmem:[#allocation30_spill] sm:$0xff] }
 0x141   : > { %v1248_v2 = vpop.permute.xlu0 %1247  ;;  %v1706_v19 = vsel %vm1704_vm8, %v1641_v33, %v1158_v38  ;;  %v1578_v61 = vsel %vm1574_vm5, %v1513_v25, %v5072_v46  ;;  %v6175_v33 = vld [vmem:[#allocation6_spill] sm:$0xff]  ;;  %v6179_v25 = vld [vmem:[#allocation29_spill] sm:$0xff] }
 0x142   : > { %v1348_v1 = vpop.permute.xlu1 %1347  ;;  %v1771_v47 = vsel %vm1769_vm9, %v1706_v19, %v1246_v27  ;;  %v1643_v13 = vsel %vm1639_vm7, %v1578_v61, %v1088_v6 }
 0x143   : > { %1099 = vrot.lane.b32.xlu0 %v6164_v41, %s4122_s24  ;;  %v1868_v37 = vsel %vm1834_vm10, %v1803_v28, %v1348_v1  ;;  %v1740_v41 = vsel %vm1704_vm8, %v1675_v52, %v1192_v42  ;;  %v1708_v0 = vsel %vm1704_vm8, %v1643_v13, %v1160_v29  ;;  %v4079_v42 = vld [vmem:[%s4170_s19 + $0x58] sm:$0xff]   ;;  %v6172_v29 = vld [vmem:[#allocation22_spill] sm:$0xff]  ;;  %v5194_v13 = vld [vmem:[%s4170_s19 + $0x90] sm:$0xff]  }
 0x144   : > { %1201 = vrot.lane.b32.xlu1 %v4391_v12, %s4123_s29  ;;  %3701 = vmatprep.mubr.msk.bf16.mxu1 %vm1925_vm11, %v1868_v37  ;;  %v1805_v40 = vsel %vm1769_vm9, %v1740_v41, %v1280_v35  ;;  %v1773_v46 = vsel %vm1769_vm9, %v1708_v0, %v1248_v2  ;;  %v6173_v2 = vld [vmem:[#allocation7_spill] sm:$0xff]  ;;  %v6178_v37 = vld [vmem:[#allocation41_spill] sm:$0xff]  ;;  %v4081_v0 = vld [vmem:[%s4170_s19 + $0x10] sm:$0xff]  }
 0x145   : > { %v1316_v43 = vpop.permute.xlu0 %1315 }
 0x146   : > { %v1836_v38 = vsel %vm1834_vm10, %v1771_v47, %v1316_v43  ;;  %v1350_v27 = vpop.permute.xlu1 %1349 }
 0x147   : > { %1169 = vrot.lane.b32.xlu0 %v4078_v39, %s4123_s29  ;;  %3669 = vmatprep.mubr.msk.bf16.mxu0 %vm1925_vm11, %v1836_v38  ;;  %v1870_v7 = vsel %vm1834_vm10, %v1805_v40, %v1350_v27  ;;  %v6180_v40 = vld [vmem:[#allocation54_spill] sm:$0xff] }
 0x148   : > { %1203 = vrot.lane.b32.xlu1 %v4384_v10, %s4123_s29  ;;  %3702 = vmatmul.mubr.msk.bf16.vlgmr.msra.gmra.mrb[0].mxu1 %vm1925_vm11, %v1870_v7  ;;  %v6181_v7 = vld [vmem:[#allocation42_spill] sm:$0xff] }
 0x149   : > { %v1318_v22 = vpop.permute.xlu0 %1317 }
 0x14a   : > { %v1838_v6 = vsel %vm1834_vm10, %v1773_v46, %v1318_v22  ;;  %v966_v35 = vpop.permute.xlu1 %965  ;;  %v1385_v46 = vsel %vm1379_vm3, %v4081_v0, %v6181_v7  ;;  %v4083_v7 = vld [vmem:[%s4170_s19 + $0x18] sm:$0xff]  }
 0x14b   : > { %1171 = vrot.lane.b32.xlu0 %v4079_v42, %s4123_s29  ;;  %3670 = vmatmul.mubr.msk.bf16.vlgmr.msra.gmra.mrb[0].mxu0 %vm1925_vm11, %v1838_v6 }
 0x14c   : > { %1289 = vrot.lane.b32.xlu1 %v6172_v29, %s4124_s5 }
 0x14d   : > { %v964_v24 = vpop.permute.xlu0 %963 }
 0x14e   : > { %v1052_v48 = vpop.permute.xlu1 %1051 }
 0x14f   : > { %1257 = vrot.lane.b32.xlu0 %v6173_v2, %s4124_s5 }
 0x150   : > { %1291 = vrot.lane.b32.xlu1 %v6174_v9, %s4124_s5 }
 0x151   : > { %v1020_v20 = vpop.permute.xlu0 %1019 }
 0x152   : > { %v1054_v28 = vpop.permute.xlu1 %1053 }
 0x153   : > { %1259 = vrot.lane.b32.xlu0 %v6175_v33, %s4124_s5 }
 0x154   : > { %1359 = vrot.lane.b32.xlu1 %v6176_v11, %s4125_s6 }
 0x155   : > { %v1022_v1 = vpop.permute.xlu0 %1021 }
 0x156   : > { %v1122_v54 = vpop.permute.xlu1 %1121 }
 0x157   : > { %1327 = vrot.lane.b32.xlu0 %v6177_v34, %s4125_s6 }
 0x158   : > { %1361 = vrot.lane.b32.xlu1 %v6178_v37, %s4125_s6 }
 0x159   : > { %v1090_v19 = vpop.permute.xlu0 %1089 }
 0x15a   : > { %v1124_v52 = vpop.permute.xlu1 %1123 }
 0x15b   : > { %1329 = vrot.lane.b32.xlu0 %v6179_v25, %s4125_s6 }
 0x15c   : > { %975 = vrot.lane.b32.xlu1 %v4391_v12, %s4120_s22 }
 0x15d   : > { %v1092_v47 = vpop.permute.xlu0 %1091 }
 0x15e   : > { %v1194_v43 = vpop.permute.xlu1 %1193 }
 0x15f   : > { %943 = vrot.lane.b32.xlu0 %v4078_v39, %s4120_s22  ;;  %v1417_v39 = vsel %vm1379_vm3, %v5194_v13, %v6180_v40  ;;  %v6183_v40 = vld [vmem:[#allocation53_spill] sm:$0xff] }
 0x160   : > { %977 = vrot.lane.b32.xlu1 %v4384_v10, %s4120_s22  ;;  %v1482_v10 = vsel %vm1444_vm4, %v1417_v39, %v4930_v32 }
 0x161   : > { %v1162_v61 = vpop.permute.xlu0 %1161  ;;  %v1547_v22 = vsel %vm1509_vm6, %v1482_v10, %v964_v24 }
 0x162   : > { %v1196_v41 = vpop.permute.xlu1 %1195 }
 0x163   : > { %945 = vrot.lane.b32.xlu0 %v4079_v42, %s4120_s22  ;;  %v6182_v42 = vld [vmem:[#allocation60_spill] sm:$0xff] }
 0x164   : > { %1063 = vrot.lane.b32.xlu1 %v6172_v29, %s4121_s23  ;;  %v1450_v29 = vsel %vm1444_vm4, %v1385_v46, %v6182_v42  ;;  %v6184_v46 = vld [vmem:[#allocation47_spill] sm:$0xff] }
 0x165   : > { %v1164_v38 = vpop.permute.xlu0 %1163  ;;  %v1515_v39 = vsel %vm1509_vm6, %v1450_v29, %v5042_v45  ;;  %v6185_v29 = vld [vmem:[#allocation59_spill] sm:$0xff] }
 0x166   : > { %v1282_v12 = vpop.permute.xlu1 %1281 }
 0x167   : > { %1031 = vrot.lane.b32.xlu0 %v6173_v2, %s4121_s23  ;;  %v1612_v2 = vsel %vm1574_vm5, %v1547_v22, %v1052_v48  ;;  %v1580_v48 = vsel %vm1574_vm5, %v1515_v39, %v1020_v20  ;;  %v1387_v22 = vsel %vm1379_vm3, %v4083_v7, %v6184_v46  ;;  %v4084_v39 = vld [vmem:[%s4170_s19 + $0xe0] sm:$0xff]   ;;  %v6187_v7 = vld [vmem:[#allocation9_spill] sm:$0xff] }
 0x168   : > { %1065 = vrot.lane.b32.xlu1 %v6174_v9, %s4121_s23  ;;  %v5213_v9 = vld [vmem:[%s4170_s19 + $0x98] sm:$0xff]   ;;  %v1677_v24 = vsel %vm1639_vm7, %v1612_v2, %v1122_v54  ;;  %v1645_v45 = vsel %vm1639_vm7, %v1580_v48, %v1090_v19 }
 0x169   : > { %v1250_v27 = vpop.permute.xlu0 %1249  ;;  %v1419_v32 = vsel %vm1379_vm3, %v5213_v9, %v6183_v40  ;;  %v1742_v0 = vsel %vm1704_vm8, %v1677_v24, %v1194_v43  ;;  %v1710_v43 = vsel %vm1704_vm8, %v1645_v45, %v1162_v61  ;;  %v6189_v45 = vld [vmem:[#allocation8_spill] sm:$0xff] }
 0x16a   : > { %v1284_v6 = vpop.permute.xlu1 %1283  ;;  %v1807_v54 = vsel %vm1769_vm9, %v1742_v0, %v1282_v12  ;;  %v1775_v12 = vsel %vm1769_vm9, %v1710_v43, %v1250_v27  ;;  %v6186_v0 = vld [vmem:[#allocation25_spill] sm:$0xff] }
 0x16b   : > { %1033 = vrot.lane.b32.xlu0 %v6175_v33, %s4121_s23  ;;  %v1484_v33 = vsel %vm1444_vm4, %v1419_v32, %v4928_v4  ;;  %v1452_v4 = vsel %vm1444_vm4, %v1387_v22, %v6185_v29  ;;  %v6190_v29 = vld [vmem:[#allocation48_spill] sm:$0xff] }
 0x16c   : > { %1133 = vrot.lane.b32.xlu1 %v6176_v11, %s4122_s24  ;;  %v1549_v42 = vsel %vm1509_vm6, %v1484_v33, %v966_v35  ;;  %v1517_v35 = vsel %vm1509_vm6, %v1452_v4, %v5040_v53  ;;  %v4087_v33 = vld [vmem:[%s4170_s19 + $0x68] sm:$0xff]   ;;  %v6191_v4 = vld [vmem:[#allocation32_spill] sm:$0xff] }
 0x16d   : > { %v1252_v10 = vpop.permute.xlu0 %1251  ;;  %v1614_v20 = vsel %vm1574_vm5, %v1549_v42, %v1054_v28  ;;  %v1582_v28 = vsel %vm1574_vm5, %v1517_v35, %v1022_v1  ;;  %v6188_v42 = vld [vmem:[#allocation23_spill] sm:$0xff] }
 0x16e   : > { %v1352_v11 = vpop.permute.xlu1 %1351  ;;  %v1679_v19 = vsel %vm1639_vm7, %v1614_v20, %v1124_v52  ;;  %v1647_v53 = vsel %vm1639_vm7, %v1582_v28, %v1092_v47  ;;  %v6193_v35 = vld [vmem:[#allocation31_spill] sm:$0xff] }
 0x16f   : > { %1101 = vrot.lane.b32.xlu0 %v6177_v34, %s4122_s24  ;;  %v1872_v2 = vsel %vm1834_vm10, %v1807_v54, %v1352_v11  ;;  %v1744_v34 = vsel %vm1704_vm8, %v1679_v19, %v1196_v41  ;;  %v1712_v27 = vsel %vm1704_vm8, %v1647_v53, %v1164_v38  ;;  %v4086_v38 = vld [vmem:[%s4170_s19 + $0xe8] sm:$0xff]  }
 0x170   : > { %1135 = vrot.lane.b32.xlu1 %v6178_v37, %s4122_s24  ;;  %3705 = vmatprep.mubr.msk.bf16.mxu1 %vm1925_vm11, %v1872_v2  ;;  %v1809_v52 = vsel %vm1769_vm9, %v1744_v34, %v1284_v6  ;;  %v1777_v41 = vsel %vm1769_vm9, %v1712_v27, %v1252_v10  ;;  %v6192_v2 = vld [vmem:[#allocation45_spill] sm:$0xff]  ;;  %v1519_v27 = vsel %vm1509_vm6, %v4836_v21, %v5050_v63 }
 0x171   : > { %v1320_v40 = vpop.permute.xlu0 %1319 }
 0x172   : > { %v1840_v61 = vsel %vm1834_vm10, %v1775_v12, %v1320_v40  ;;  %v1354_v37 = vpop.permute.xlu1 %1353 }
 0x173   : > { %1103 = vrot.lane.b32.xlu0 %v6179_v25, %s4122_s24  ;;  %3673 = vmatprep.mubr.msk.bf16.mxu0 %vm1925_vm11, %v1840_v61  ;;  %v1874_v1 = vsel %vm1834_vm10, %v1809_v52, %v1354_v37  ;;  %v4085_v25 = vld [vmem:[%s4170_s19 + $0x60] sm:$0xff]  }
 0x174   : > { %1205 = vrot.lane.b32.xlu1 %v4084_v39, %s4123_s29  ;;  %3706 = vmatmul.mubr.msk.bf16.gmra.mrb[4].mxu1 %vm1925_vm11, %v1874_v1 }
 0x175   : > { %v1322_v32 = vpop.permute.xlu0 %1321 }
 0x176   : > { %v1842_v47 = vsel %vm1834_vm10, %v1777_v41, %v1322_v32  ;;  %v970_v6 = vpop.permute.xlu1 %969 }
 0x177   : > { %1173 = vrot.lane.b32.xlu0 %v4085_v25, %s4123_s29  ;;  %3674 = vmatmul.mubr.msk.bf16.gmra.mrb[4].mxu0 %vm1925_vm11, %v1842_v47 }
 0x178   : > { %1207 = vrot.lane.b32.xlu1 %v4086_v38, %s4123_s29 }
 0x179   : > { %v968_v24 = vpop.permute.xlu0 %967 }
 0x17a   : > { %v1056_v10 = vpop.permute.xlu1 %1055  ;;  %v1551_v53 = vsel %vm1509_vm6, %v4948_v57, %v968_v24 }
 0x17b   : > { %1175 = vrot.lane.b32.xlu0 %v4087_v33, %s4123_s29  ;;  %v1616_v37 = vsel %vm1574_vm5, %v1551_v53, %v1056_v10 }
 0x17c   : > { %1293 = vrot.lane.b32.xlu1 %v6186_v0, %s4124_s5 }
 0x17d   : > { %v1024_v48 = vpop.permute.xlu0 %1023 }
 0x17e   : > { %v1058_v46 = vpop.permute.xlu1 %1057  ;;  %v1584_v32 = vsel %vm1574_vm5, %v1519_v27, %v1024_v48  ;;  %v6194_v27 = vld [vmem:[#allocation26_spill] sm:$0xff] }
 0x17f   : > { %1261 = vrot.lane.b32.xlu0 %v6187_v7, %s4124_s5 }
 0x180   : > { %1295 = vrot.lane.b32.xlu1 %v6188_v42, %s4124_s5 }
 0x181   : > { %v1026_v22 = vpop.permute.xlu0 %1025 }
 0x182   : > { %v1126_v54 = vpop.permute.xlu1 %1125 }
 0x183   : > { %1263 = vrot.lane.b32.xlu0 %v6189_v45, %s4124_s5  ;;  %v1681_v1 = vsel %vm1639_vm7, %v1616_v37, %v1126_v54 }
 0x184   : > { %1363 = vrot.lane.b32.xlu1 %v6190_v29, %s4125_s6 }
 0x185   : > { %v1094_v11 = vpop.permute.xlu0 %1093 }
 0x186   : > { %v1128_v20 = vpop.permute.xlu1 %1127  ;;  %v1649_v47 = vsel %vm1639_vm7, %v1584_v32, %v1094_v11  ;;  %v6196_v32 = vld [vmem:[#allocation11_spill] sm:$0xff] }
 0x187   : > { %1331 = vrot.lane.b32.xlu0 %v6191_v4, %s4125_s6 }
 0x188   : > { %1365 = vrot.lane.b32.xlu1 %v6192_v2, %s4125_s6 }
 0x189   : > { %v1096_v43 = vpop.permute.xlu0 %1095 }
 0x18a   : > { %v1198_v19 = vpop.permute.xlu1 %1197 }
 0x18b   : > { %1333 = vrot.lane.b32.xlu0 %v6193_v35, %s4125_s6  ;;  %v1746_v57 = vsel %vm1704_vm8, %v1681_v1, %v1198_v19  ;;  %v6195_v1 = vld [vmem:[#allocation24_spill] sm:$0xff] }
 0x18c   : > { %979 = vrot.lane.b32.xlu1 %v4084_v39, %s4120_s22  ;;  %v1553_v39 = vsel %vm1509_vm6, %v4940_v5, %v970_v6 }
 0x18d   : > { %v1166_v12 = vpop.permute.xlu0 %1165  ;;  %v1618_v63 = vsel %vm1574_vm5, %v1553_v39, %v1058_v46  ;;  %v289_v46 = vld [vmem:[%s4170_s19 + $0x104] sm:$0xf] }
 0x18e   : > { %v1200_v40 = vpop.permute.xlu1 %1199  ;;  %v1714_v24 = vsel %vm1704_vm8, %v1649_v47, %v1166_v12  ;;  %v1683_v5 = vsel %vm1639_vm7, %v1618_v63, %v1128_v20  ;;  %v4089_v12 = vld [vmem:[%s4170_s19 + $0xf0] sm:$0xff]  }
 0x18f   : > { %947 = vrot.lane.b32.xlu0 %v4085_v25, %s4120_s22 }
 0x190   : > { %981 = vrot.lane.b32.xlu1 %v4086_v38, %s4120_s22 }
 0x191   : > { %v1168_v28 = vpop.permute.xlu0 %1167 }
 0x192   : > { %v1286_v34 = vpop.permute.xlu1 %1285 }
 0x193   : > { %949 = vrot.lane.b32.xlu0 %v4087_v33, %s4120_s22  ;;  %v1811_v25 = vsel %vm1769_vm9, %v1746_v57, %v1286_v34  ;;  %v1521_v33 = vsel %vm1509_vm6, %v4828_v60, %v5048_v36 }
 0x194   : > { %1067 = vrot.lane.b32.xlu1 %v6186_v0, %s4121_s23  ;;  %v1586_v48 = vsel %vm1574_vm5, %v1521_v33, %v1026_v22  ;;  %v1748_v0 = vsel %vm1704_vm8, %v1683_v5, %v1200_v40  ;;  %v4090_v40 = vld [vmem:[%s4170_s19 + $0x70] sm:$0xff]   ;;  %v6200_v5 = vld [vmem:[#allocation34_spill] sm:$0xff] }
 0x195   : > { %v1254_v61 = vpop.permute.xlu0 %1253  ;;  %v1651_v60 = vsel %vm1639_vm7, %v1586_v48, %v1096_v43  ;;  %v6201_v48 = vld [vmem:[#allocation33_spill] sm:$0xff] }
 0x196   : > { %v1288_v52 = vpop.permute.xlu1 %1287  ;;  %v1779_v6 = vsel %vm1769_vm9, %v1714_v24, %v1254_v61  ;;  %v4091_v61 = vld [vmem:[%s4170_s19 + $0xf8] sm:$0xff]   ;;  %v6198_v24 = vld [vmem:[#allocation50_spill] sm:$0xff] }
 0x197   : > { %1035 = vrot.lane.b32.xlu0 %v6187_v7, %s4121_s23  ;;  %v1813_v36 = vsel %vm1769_vm9, %v1748_v0, %v1288_v52 }
 0x198   : > { %1069 = vrot.lane.b32.xlu1 %v6188_v42, %s4121_s23 }
 0x199   : > { %v1256_v41 = vpop.permute.xlu0 %1255 }
 0x19a   : > { %v1356_v21 = vpop.permute.xlu1 %1355 }
 0x19b   : > { %1037 = vrot.lane.b32.xlu0 %v6189_v45, %s4121_s23  ;;  %v1876_v38 = vsel %vm1834_vm10, %v1811_v25, %v1356_v21  ;;  %v1716_v45 = vsel %vm1704_vm8, %v1651_v60, %v1168_v28  ;;  %v6197_v25 = vld [vmem:[#allocation10_spill] sm:$0xff] }
 0x19c   : > { %1137 = vrot.lane.b32.xlu1 %v6190_v29, %s4122_s24  ;;  %3709 = vmatprep.mubr.msk.bf16.mxu1 %vm1925_vm11, %v1876_v38  ;;  %v1781_v54 = vsel %vm1769_vm9, %v1716_v45, %v1256_v41  ;;  %v4088_v29 = vld [vmem:[%s4170_s19 + $0x100] sm:$0xf] }
 0x19d   : > { %v1324_v10 = vpop.permute.xlu0 %1323  ;;  %v6199_v38 = vld [vmem:[#allocation46_spill] sm:$0xff] }
 0x19e   : > { %v1844_v7 = vsel %vm1834_vm10, %v1779_v6, %v1324_v10  ;;  %v1358_v42 = vpop.permute.xlu1 %1357 }
 0x19f   : > { %1105 = vrot.lane.b32.xlu0 %v6191_v4, %s4122_s24  ;;  %3677 = vmatprep.mubr.msk.bf16.mxu0 %vm1925_vm11, %v1844_v7  ;;  %v1878_v22 = vsel %vm1834_vm10, %v1813_v36, %v1358_v42  ;;  %v5337_v4 = vcombine.low %v4088_v29, %v289_v46 }
 0x1a0   : > { %1139 = vrot.lane.b32.xlu1 %v6192_v2, %s4122_s24  ;;  %3710 = vmatmul.mubr.msk.bf16.gmra.mrb[8].mxu1 %vm1925_vm11, %v1878_v22  ;;  %v1523_v22 = vsel %vm1509_vm6, %v4852_v30, %v5058_v59 }
 0x1a1   : > { %v1326_v11 = vpop.permute.xlu0 %1325  ;;  %v995_v2 = vshll.u32 %v5337_v4, 16  ;;  %v1079_v47 = vrot.slane %v5337_v4, 1 }
 0x1a2   : > { %v1846_v20 = vsel %vm1834_vm10, %v1781_v54, %v1326_v11  ;;  %v974_v43 = vpop.permute.xlu1 %973 }
 0x1a3   : > { %1107 = vrot.lane.b32.xlu0 %v6193_v35, %s4122_s24  ;;  %3678 = vmatmul.mubr.msk.bf16.gmra.mrb[8].mxu0 %vm1925_vm11, %v1846_v20  ;;  %v5350_v53 = vrot.slane %v995_v2, 1  ;;  %v4092_v35 = vld [vmem:[%s4170_s19 + $0x78] sm:$0xff]   ;;  %v1080_v33 = vsel %vm789_vm1, %v6199_v38, %v1079_v47 }
 0x1a4   : > { %1209 = vrot.lane.b32.xlu1 %v4089_v12, %s4123_s29 }
 0x1a5   : > { %v972_v19 = vpop.permute.xlu0 %971  ;;  %v998_v41 = vsel %vm461_vm0, %v6195_v1, %v5350_v53 }
 0x1a6   : > { %v1060_v28 = vpop.permute.xlu1 %1059  ;;  %v1555_v36 = vsel %vm1509_vm6, %v4964_v18, %v972_v19  ;;  %v1557_v18 = vsel %vm1509_vm6, %v4956_v26, %v974_v43 }
 0x1a7   : > { %1177 = vrot.lane.b32.xlu0 %v4090_v40, %s4123_s29  ;;  %v1620_v45 = vsel %vm1574_vm5, %v1555_v36, %v1060_v28  ;;  %v1525_v28 = vsel %vm1509_vm6, %v4844_v8, %v5056_v3 }
 0x1a8   : > { %1211 = vrot.lane.b32.xlu1 %v4091_v61, %s4123_s29 }
 0x1a9   : > { %v1028_v34 = vpop.permute.xlu0 %1027 }
 0x1aa   : > { %v1062_v52 = vpop.permute.xlu1 %1061  ;;  %v1588_v29 = vsel %vm1574_vm5, %v1523_v22, %v1028_v34 }
 0x1ab   : > { %1179 = vrot.lane.b32.xlu0 %v4092_v35, %s4123_s29  ;;  %v1622_v59 = vsel %vm1574_vm5, %v1557_v18, %v1062_v52 }
 0x1ac   : > { %1297 = vrot.lane.b32.xlu1 %v6194_v27, %s4124_s5 }
 0x1ad   : > { %v1030_v37 = vpop.permute.xlu0 %1029 }
 0x1ae   : > { %v1130_v57 = vpop.permute.xlu1 %1129 }
 0x1af   : > { %1265 = vrot.lane.b32.xlu0 %v6196_v32, %s4124_s5  ;;  %v1685_v54 = vsel %vm1639_vm7, %v1620_v45, %v1130_v57 }
 0x1b0   : > { %1299 = vrot.lane.b32.xlu1 %v998_v41, %s4124_s5 }
 0x1b1   : > { %v1098_v39 = vpop.permute.xlu0 %1097 }
 0x1b2   : > { %v1132_v21 = vpop.permute.xlu1 %1131  ;;  %v1653_v19 = vsel %vm1639_vm7, %v1588_v29, %v1098_v39  ;;  %v3812_v39 = vld [vmem:[%s4170_s19 + $0x108] sm:$0xff]  }
 0x1b3   : > { %1267 = vrot.lane.b32.xlu0 %v6197_v25, %s4124_s5  ;;  %v1687_v26 = vsel %vm1639_vm7, %v1622_v59, %v1132_v21  ;;  %v292_v21 = vld [vmem:[%s4170_s19 + $0x110] sm:$0xf]  ;;  %v5451_v29 = vrot.slane %v3812_v39, 1 }
 0x1b4   : > { %1367 = vrot.lane.b32.xlu1 %v6198_v24, %s4125_s6  ;;  %v6203_v59 = vld [vmem:[#allocation12_spill] sm:$0xff] }
 0x1b5   : > { %v1100_v63 = vpop.permute.xlu0 %1099 }
 0x1b6   : > { %v1202_v6 = vpop.permute.xlu1 %1201 }
 0x1b7   : > { %1335 = vrot.lane.b32.xlu0 %v6200_v5, %s4125_s6  ;;  %v1750_v20 = vsel %vm1704_vm8, %v1685_v54, %v1202_v6  ;;  %v999_v6 = vshrl.u32 %v5337_v4, 16 }
 0x1b8   : > { %1369 = vrot.lane.b32.xlu1 %v1080_v33, %s4125_s6 }
 0x1b9   : > { %v1170_v10 = vpop.permute.xlu0 %1169 }
 0x1ba   : > { %v1204_v0 = vpop.permute.xlu1 %1203  ;;  %v1718_v2 = vsel %vm1704_vm8, %v1653_v19, %v1170_v10  ;;  %v1003_v10 = vshll.u32 %v3812_v39, 16 }
 0x1bb   : > { %1337 = vrot.lane.b32.xlu0 %v6201_v48, %s4125_s6 }
 0x1bc   : > { %983 = vrot.lane.b32.xlu1 %v4089_v12, %s4120_s22 }
 0x1bd   : > { %v1172_v7 = vpop.permute.xlu0 %1171 }
 0x1be   : > { %v1290_v46 = vpop.permute.xlu1 %1289 }
 0x1bf   : > { %951 = vrot.lane.b32.xlu0 %v4090_v40, %s4120_s22  ;;  %v1815_v12 = vsel %vm1769_vm9, %v1750_v20, %v1290_v46  ;;  %v1005_v46 = vrot.slane %v1003_v10, 1  ;;  %v6202_v20 = vld [vmem:[#allocation13_spill] sm:$0xff] }
 0x1c0   : > { %985 = vrot.lane.b32.xlu1 %v4091_v61, %s4120_s22  ;;  %v1590_v61 = vsel %vm1574_vm5, %v1525_v28, %v1030_v37 }
 0x1c1   : > { %v1258_v60 = vpop.permute.xlu0 %1257 }
 0x1c2   : > { %v1292_v42 = vpop.permute.xlu1 %1291  ;;  %v1783_v43 = vsel %vm1769_vm9, %v1718_v2, %v1258_v60  ;;  %v1007_v60 = vshrl.u32 %v3812_v39, 16 }
 0x1c3   : > { %953 = vrot.lane.b32.xlu0 %v4092_v35, %s4120_s22  ;;  %v1752_v35 = vsel %vm1704_vm8, %v1687_v26, %v1204_v0  ;;  %v6204_v26 = vld [vmem:[#allocation36_spill] sm:$0xff] }
 0x1c4   : > { %1071 = vrot.lane.b32.xlu1 %v6194_v27, %s4121_s23  ;;  %v1655_v27 = vsel %vm1639_vm7, %v1590_v61, %v1100_v63  ;;  %v1817_v8 = vsel %vm1769_vm9, %v1752_v35, %v1292_v42  ;;  %v293_v63 = vld [vmem:[%s4170_s19 + $0x114] sm:$0xf]  ;;  %v1009_v45 = vor.u32 %v1007_v60, %v1005_v46  ;;  %v6205_v61 = vld [vmem:[#allocation35_spill] sm:$0xff] }
 0x1c5   : > { %v1260_v11 = vpop.permute.xlu0 %1259  ;;  %v1720_v1 = vsel %vm1704_vm8, %v1655_v27, %v1172_v7 }
 0x1c6   : > { %v1360_v30 = vpop.permute.xlu1 %1359 }
 0x1c7   : > { %1039 = vrot.lane.b32.xlu0 %v6196_v32, %s4121_s23  ;;  %v1880_v40 = vsel %vm1834_vm10, %v1815_v12, %v1360_v30  ;;  %v1082_v12 = vsel %vm789_vm1, %v1079_v47, %v5451_v29  ;;  %v3202_v47 = vcombine.low %v292_v21, %v292_v21 }
 0x1c8   : > { %1073 = vrot.lane.b32.xlu1 %v998_v41, %s4121_s23  ;;  %3713 = vmatprep.mubr.msk.bf16.mxu1 %vm1925_vm11, %v1880_v40  ;;  %v1785_v41 = vsel %vm1769_vm9, %v1720_v1, %v1260_v11 }
 0x1c9   : > { %v1328_v34 = vpop.permute.xlu0 %1327  ;;  %v1011_v27 = vshll.u32 %v3202_v47, 16 }
 0x1ca   : > { %v1848_v52 = vsel %vm1834_vm10, %v1783_v43, %v1328_v34  ;;  %v1362_v3 = vpop.permute.xlu1 %1361 }
 0x1cb   : > { %1041 = vrot.lane.b32.xlu0 %v6197_v25, %s4121_s23  ;;  %3681 = vmatprep.mubr.msk.bf16.mxu0 %vm1925_vm11, %v1848_v52  ;;  %v1882_v37 = vsel %vm1834_vm10, %v1817_v8, %v1362_v3  ;;  %v1013_v1 = vrot.slane %v1011_v27, 1 }
 0x1cc   : > { %1141 = vrot.lane.b32.xlu1 %v6198_v24, %s4122_s24  ;;  %3714 = vmatmul.mubr.msk.bf16.gmra.mrb[12].mxu1 %vm1925_vm11, %v1882_v37  ;;  %v5430_v24 = vcombine.low %v292_v21, %v293_v63 }
 0x1cd   : > { %v1330_v32 = vpop.permute.xlu0 %1329 }
 0x1ce   : > { %v1850_v57 = vsel %vm1834_vm10, %v1785_v41, %v1330_v32  ;;  %v976_v25 = vpop.permute.xlu1 %975  ;;  %v1309_v30 = vrot.slane %v5430_v24, 1 }
 0x1cf   : > { %1109 = vrot.lane.b32.xlu0 %v6200_v5, %s4122_s24  ;;  %3682 = vmatmul.mubr.msk.bf16.gmra.mrb[12].mxu0 %vm1925_vm11, %v1850_v57  ;;  %v1001_v5 = vor.u32 %v999_v6, %v5350_v53  ;;  %v1559_v37 = vsel %vm1509_vm6, %v4980_v62, %v976_v25  ;;  %v1014_v62 = vsel %vm461_vm0, %v1009_v45, %v1013_v1 }
 0x1d0   : > { %1143 = vrot.lane.b32.xlu1 %v1080_v33, %s4122_s24  ;;  %v1225_v33 = vshll.u32 %v5430_v24, 16  ;;  %v1310_v28 = vsel %vm789_vm1, %v5451_v29, %v1309_v30 }
 0x1d1   : > { %v944_v38 = vpop.permute.xlu0 %943 }
 0x1d2   : > { %v978_v0 = vpop.permute.xlu1 %977  ;;  %v5444_v22 = vrot.slane %v1225_v33, 1 }
 0x1d3   : > { %1111 = vrot.lane.b32.xlu0 %v6201_v48, %s4122_s24  ;;  %v1006_v48 = vsel %vm461_vm0, %v1001_v5, %v1005_v46 }
 0x1d4   : > { %1213 = vrot.lane.b32.xlu1 %v5337_v4, %s4123_s29  ;;  %v1228_v11 = vsel %vm461_vm0, %v1009_v45, %v5444_v22 }
 0x1d5   : > { %v5434_v7 = vpop.permute.xlu0 %945 }
 0x1d6   : > { %v1064_v36 = vpop.permute.xlu1 %1063  ;;  %v1529_v5 = vsel %vm1509_vm6, %v4860_v14, %v5434_v7 }
 0x1d7   : > { %1181 = vrot.lane.b32.xlu0 %v5095_v56, %s4123_s29  ;;  %v1624_v32 = vsel %vm1574_vm5, %v1559_v37, %v1064_v36 }
 0x1d8   : > { %1215 = vrot.lane.b32.xlu1 %v3812_v39, %s4123_s29 }
 0x1d9   : > { %v1032_v42 = vpop.permute.xlu0 %1031 }
 0x1da   : > { %v1066_v53 = vpop.permute.xlu1 %1065 }
 0x1db   : > { %1183 = vrot.lane.b32.xlu0 %v5114_v23, %s4123_s29 }
 0x1dc   : > { %1301 = vrot.lane.b32.xlu1 %v1006_v48, %s4124_s5 }
 0x1dd   : > { %v1034_v54 = vpop.permute.xlu0 %1033 }
 0x1de   : > { %v1134_v18 = vpop.permute.xlu1 %1133  ;;  %v1594_v60 = vsel %vm1574_vm5, %v1529_v5, %v1034_v54 }
 0x1df   : > { %1269 = vrot.lane.b32.xlu0 %v6202_v20, %s4124_s5  ;;  %v1689_v57 = vsel %vm1639_vm7, %v1624_v32, %v1134_v18 }
 0x1e0   : > { %1303 = vrot.lane.b32.xlu1 %v1228_v11, %s4124_s5 }
 0x1e1   : > { %v1102_v19 = vpop.permute.xlu0 %1101 }
 0x1e2   : > { %v1136_v2 = vpop.permute.xlu1 %1135 }
 0x1e3   : > { %1271 = vrot.lane.b32.xlu0 %v6203_v59, %s4124_s5 }
 0x1e4   : > { %1371 = vrot.lane.b32.xlu1 %v1082_v12, %s4125_s6 }
 0x1e5   : > { %v1104_v40 = vpop.permute.xlu0 %1103 }
 0x1e6   : > { %v1206_v43 = vpop.permute.xlu1 %1205 }
 0x1e7   : > { %1339 = vrot.lane.b32.xlu0 %v6204_v26, %s4125_s6  ;;  %v1754_v21 = vsel %vm1704_vm8, %v1689_v57, %v1206_v43 }
 0x1e8   : > { %1373 = vrot.lane.b32.xlu1 %v1310_v28, %s4125_s6  ;;  %v3816_v28 = vld [vmem:[%s4170_s19 + $0x120] ss:$0 sps:$4 sm:$0x11]  }
 0x1e9   : > { %v1174_v34 = vpop.permute.xlu0 %1173  ;;  %v1313_v57 = vrot.slane %v3816_v28, 1 }
 0x1ea   : > { %v1208_v35 = vpop.permute.xlu1 %1207 }
 0x1eb   : > { %1341 = vrot.lane.b32.xlu0 %v6205_v61, %s4125_s6 }
 0x1ec   : > { %987 = vrot.lane.b32.xlu1 %v5337_v4, %s4120_s22  ;;  %v1527_v4 = vsel %vm1509_vm6, %v4868_v55, %v944_v38 }
 0x1ed   : > { %v1176_v52 = vpop.permute.xlu0 %1175 }
 0x1ee   : > { %v1294_v8 = vpop.permute.xlu1 %1293 }
 0x1ef   : > { %955 = vrot.lane.b32.xlu0 %v5095_v56, %s4120_s22  ;;  %v1819_v63 = vsel %vm1769_vm9, %v1754_v21, %v1294_v8 }
 0x1f0   : > { %989 = vrot.lane.b32.xlu1 %v3812_v39, %s4120_s22  ;;  %v1592_v39 = vsel %vm1574_vm5, %v1527_v4, %v1032_v42  ;;  %v1083_v42 = vrot.slane %v3202_v47, 1 }
 0x1f1   : > { %v1262_v3 = vpop.permute.xlu0 %1261  ;;  %v1657_v25 = vsel %vm1639_vm7, %v1592_v39, %v1102_v19  ;;  %v3815_v19 = vld [vmem:[%s4170_s19 + $0x118] sm:$0xff]  }
 0x1f2   : > { %v1296_v41 = vpop.permute.xlu1 %1295  ;;  %v1722_v6 = vsel %vm1704_vm8, %v1657_v25, %v1174_v34  ;;  %v1084_v18 = vsel %vm789_vm1, %v5451_v29, %v1083_v42  ;;  %v1237_v47 = vshrl.u32 %v3815_v19, 16  ;;  %v1311_v37 = vrot.slane %v3815_v19, 1 }
 0x1f3   : > { %957 = vrot.lane.b32.xlu0 %v5114_v23, %s4120_s22  ;;  %v1561_v23 = vsel %vm1509_vm6, %v4972_v58, %v978_v0  ;;  %v1787_v0 = vsel %vm1769_vm9, %v1722_v6, %v1262_v3 }
 0x1f4   : > { %1075 = vrot.lane.b32.xlu1 %v1006_v48, %s4121_s23  ;;  %v1626_v38 = vsel %vm1574_vm5, %v1561_v23, %v1066_v53  ;;  %v1659_v48 = vsel %vm1639_vm7, %v1594_v60, %v1104_v40  ;;  %v1233_v40 = vshll.u32 %v3815_v19, 16  ;;  %v6208_v23 = vld [vmem:[#allocation38_spill] sm:$0xff] }
 0x1f5   : > { %v1264_v56 = vpop.permute.xlu0 %1263  ;;  %v1691_v58 = vsel %vm1639_vm7, %v1626_v38, %v1136_v2  ;;  %v1724_v45 = vsel %vm1704_vm8, %v1659_v48, %v1176_v52 }
 0x1f6   : > { %v1364_v55 = vpop.permute.xlu1 %1363  ;;  %v1756_v33 = vsel %vm1704_vm8, %v1691_v58, %v1208_v35  ;;  %v1789_v54 = vsel %vm1769_vm9, %v1724_v45, %v1264_v56  ;;  %v1235_v34 = vrot.slane %v1233_v40, 1  ;;  %v1241_v35 = vshll.u32 %v3816_v28, 16  ;;  %v6207_v56 = vld [vmem:[#allocation14_spill] sm:$0xff] }
 0x1f7   : > { %1043 = vrot.lane.b32.xlu0 %v6202_v20, %s4121_s23  ;;  %v1884_v10 = vsel %vm1834_vm10, %v1819_v63, %v1364_v55  ;;  %v1821_v14 = vsel %vm1769_vm9, %v1756_v33, %v1296_v41  ;;  %v6206_v41 = vld [vmem:[#allocation15_spill] sm:$0xff] }
 0x1f8   : > { %1077 = vrot.lane.b32.xlu1 %v1014_v62, %s4121_s23  ;;  %3717 = vmatprep.mubr.msk.bf16.mxu1 %vm1925_vm11, %v1884_v10  ;;  %v1239_v8 = vor.u32 %v1237_v47, %v1235_v34  ;;  %v1243_v3 = vrot.slane %v1241_v35, 1  ;;  %v1314_v62 = vsel %vm789_vm1, %v1311_v37, %v1313_v57 }
 0x1f9   : > { %v1332_v46 = vpop.permute.xlu0 %1331 }
 0x1fa   : > { %v1852_v36 = vsel %vm1834_vm10, %v1787_v0, %v1332_v46  ;;  %v1366_v7 = vpop.permute.xlu1 %1365 }
 0x1fb   : > { %1045 = vrot.lane.b32.xlu0 %v6203_v59, %s4121_s23  ;;  %3685 = vmatprep.mubr.msk.bf16.mxu0 %vm1925_vm11, %v1852_v36  ;;  %v1886_v53 = vsel %vm1834_vm10, %v1821_v14, %v1366_v7 }
 0x1fc   : > { %1145 = vrot.lane.b32.xlu1 %v1082_v12, %s4122_s24  ;;  %3718 = vmatmul.mubr.msk.bf16.gmra.mrb[16].mxu1 %vm1925_vm11, %v1886_v53  ;;  %v1229_v12 = vshrl.u32 %v5430_v24, 16 }
 0x1fd   : > { %v1334_v11 = vpop.permute.xlu0 %1333 }
 0x1fe   : > { %v1854_v20 = vsel %vm1834_vm10, %v1789_v54, %v1334_v11  ;;  %v5526_v59 = vpop.permute.xlu1 %979 }
 0x1ff   : > { %1113 = vrot.lane.b32.xlu0 %v6204_v26, %s4122_s24  ;;  %3686 = vmatmul.mubr.msk.bf16.gmra.mrb[16].mxu0 %vm1925_vm11, %v1854_v20  ;;  %v1231_v26 = vor.u32 %v1229_v12, %v5444_v22 }
 0x200   : > { %1147 = vrot.lane.b32.xlu1 %v1084_v18, %s4122_s24 }
 0x201   : > { %v5528_v2 = vpop.permute.xlu0 %947 }
 0x202   : > { %v5535_v29 = vpop.permute.xlu1 %981 }
 0x203   : > { %1115 = vrot.lane.b32.xlu0 %v6205_v61, %s4122_s24  ;;  %v1236_v61 = vsel %vm461_vm0, %v1231_v26, %v1235_v34  ;;  %v1563_v26 = vsel %vm1509_vm6, %v4996_v44, %v5526_v59 }
 0x204   : > { %1217 = vrot.lane.b32.xlu1 %v5430_v24, %s4123_s29  ;;  %v5576_v24 = vld [vmem:[%s6005_s2] ss:$0 sm:$0xff] }
 0x205   : > { %v5537_v43 = vpop.permute.xlu0 %949 }
 0x206   : > { %v1068_v52 = vpop.permute.xlu1 %1067  ;;  %v1533_v57 = vsel %vm1509_vm6, %v4876_v50, %v5537_v43 }
 0x207   : > { %1185 = vrot.lane.b32.xlu0 %v5194_v13, %s4123_s29  ;;  %v1244_v13 = vsel %vm461_vm0, %v1239_v8, %v1243_v3  ;;  %v1628_v35 = vsel %vm1574_vm5, %v1563_v26, %v1068_v52  ;;  %v1531_v3 = vsel %vm1509_vm6, %v4884_v31, %v5528_v2  ;;  %v1565_v52 = vsel %vm1509_vm6, %v4988_v49, %v5535_v29 }
 0x208   : > { %1219 = vrot.lane.b32.xlu1 %v3815_v19, %s4123_s29 }
 0x209   : > { %v5544_v27 = vpop.permute.xlu0 %1035 }
 0x20a   : > { %v5550_v1 = vpop.permute.xlu1 %1069  ;;  %v1596_v44 = vsel %vm1574_vm5, %v1531_v3, %v5544_v27 }
 0x20b   : > { %1187 = vrot.lane.b32.xlu0 %v5213_v9, %s4123_s29  ;;  %v1312_v9 = vsel %vm789_vm1, %v1309_v30, %v1311_v37  ;;  %v6209_v30 = vld [vmem:[#allocation37_spill] sm:$0xff]  ;;  %v1630_v2 = vsel %vm1574_vm5, %v1565_v52, %v5550_v1 }
 0x20c   : > { %1305 = vrot.lane.b32.xlu1 %v1236_v61, %s4124_s5 }
 0x20d   : > { %v5552_v22 = vpop.permute.xlu0 %1037 }
 0x20e   : > { %v1138_v32 = vpop.permute.xlu1 %1137  ;;  %v1598_v1 = vsel %vm1574_vm5, %v1533_v57, %v5552_v22 }
 0x20f   : > { %1273 = vrot.lane.b32.xlu0 %v6206_v41, %s4124_s5 }
 0x210   : > { %1307 = vrot.lane.b32.xlu1 %v1244_v13, %s4124_s5  ;;  %v1693_v13 = vsel %vm1639_vm7, %v1628_v35, %v1138_v32 }
 0x211   : > { %v1106_v4 = vpop.permute.xlu0 %1105 }
 0x212   : > { %v5564_v39 = vpop.permute.xlu1 %1139  ;;  %v1661_v41 = vsel %vm1639_vm7, %v1596_v44, %v1106_v4 }
 0x213   : > { %1275 = vrot.lane.b32.xlu0 %v6207_v56, %s4124_s5  ;;  %v1695_v49 = vsel %vm1639_vm7, %v1630_v2, %v5564_v39 }
 0x214   : > { %1375 = vrot.lane.b32.xlu1 %v1312_v9, %s4125_s6 }
 0x215   : > { %v5566_v21 = vpop.permute.xlu0 %1107 }
 0x216   : > { %v1210_v25 = vpop.permute.xlu1 %1209 }
 0x217   : > { %1343 = vrot.lane.b32.xlu0 %v6208_v23, %s4125_s6  ;;  %v1758_v59 = vsel %vm1704_vm8, %v1693_v13, %v1210_v25  ;;  %v1663_v25 = vsel %vm1639_vm7, %v1598_v1, %v5566_v21 }
 0x218   : > { %1377 = vrot.lane.b32.xlu1 %v1314_v62, %s4125_s6 }
 0x219   : > { %v1178_v63 = vpop.permute.xlu0 %1177 }
 0x21a   : > { %v1212_v55 = vpop.permute.xlu1 %1211  ;;  %v1726_v32 = vsel %vm1704_vm8, %v1661_v41, %v1178_v63 }
 0x21b   : > { %1345 = vrot.lane.b32.xlu0 %v6209_v30, %s4125_s6  ;;  %v3703_v38 = vpop.f32.mrb[0].mxu1  ;;  %v1760_v56 = vsel %vm1704_vm8, %v1695_v49, %v1212_v55 }
 0x21c   : > { %v5583_v10 = vadd.f32 %v3703_v38, %v5576_v24  ;;  %v2156_v5 = vpop.f32.mrb[1].mxu1 }
 0x21d   : > { %v5580_v6 = vpop.permute.xlu0 %1179  ;;  %v5586_v0 = vadd.f32 %v5576_v24, %v2156_v5  ;;  %v3704_v46 = vpop.f32.mrb[2].mxu1 }
 0x21e   : > { %v3671_v58 = vpop.f32.mrb[0].mxu0  ;;  %v3276_v33 = vmul.f32 -1.442695, %v5583_v10  ;;  %v5593_v42 = vadd.f32 %v3704_v46, %v5576_v24  ;;  %v1298_v48 = vpop.permute.xlu1 %1297  ;;  %v1728_v63 = vsel %vm1704_vm8, %v1663_v25, %v5580_v6 }
 0x21f   : > { %v5589_v60 = vadd.f32 %v3671_v58, %v5576_v24  ;;  %v2028_v36 = vpop.f32.mrb[1].mxu0  ;;  %v3274_v7 = vmul.f32 -1.442695, %v5586_v0  ;;  %v2159_v53 = vpop.f32.mrb[3].mxu1  ;;  %v1823_v9 = vsel %vm1769_vm9, %v1758_v59, %v1298_v48 }
 0x220   : > { %v5596_v14 = vadd.f32 %v5576_v24, %v2028_v36  ;;  %v3672_v45 = vpop.f32.mrb[2].mxu0  ;;  %3817 = vpow2.f32 %v3276_v33  ;;  %v3277_v20 = vmul.f32 -1.442695, %v5593_v42  ;;  %v5609_v28 = vadd.f32 %v5576_v24, %v2159_v53 }
 0x221   : > { %v3244_v54 = vmul.f32 -1.442695, %v5589_v60  ;;  %v5601_v11 = vadd.f32 %v3672_v45, %v5576_v24  ;;  %v2031_v18 = vpop.f32.mrb[3].mxu0  ;;  %v1266_v19 = vpop.permute.xlu0 %1265  ;;  %3819 = vpow2.f32 %v3274_v7 }
 0x222   : > { %v3242_v12 = vmul.f32 -1.442695, %v5596_v14  ;;  %v5606_v40 = vadd.f32 %v5576_v24, %v2031_v18  ;;  %v1300_v47 = vpop.permute.xlu1 %1299  ;;  %v3275_v8 = vmul.f32 -1.442695, %v5609_v28  ;;  %v1791_v29 = vsel %vm1769_vm9, %v1726_v32, %v1266_v19 }
 0x223   : > { %3821 = vpow2.f32 %v3244_v54  ;;  %v3245_v34 = vmul.f32 -1.442695, %v5601_v11  ;;  %v1825_v50 = vsel %vm1769_vm9, %v1760_v56, %v1300_v47 }
 0x224   : > { %3823 = vpow2.f32 %v3242_v12  ;;  %v3243_v61 = vmul.f32 -1.442695, %v5606_v40 }
 0x225   : > { %3825 = vpow2.f32 %v3245_v34  ;;  %v1268_v37 = vpop.permute.xlu0 %1267 }
 0x226   : > { %3827 = vpow2.f32 %v3277_v20  ;;  %v1368_v31 = vpop.permute.xlu1 %1367  ;;  %v1793_v5 = vsel %vm1769_vm9, %v1728_v63, %v1268_v37 }
 0x227   : > { %3829 = vpow2.f32 %v3243_v61  ;;  %v1888_v27 = vsel %vm1834_vm10, %v1823_v9, %v1368_v31 }
 0x228   : > { %3831 = vpow2.f32 %v3275_v8  ;;  %3721 = vmatprep.mubr.msk.bf16.mxu1 %vm1925_vm11, %v1888_v27 }
 0x229   : > { %v1336_v4 = vpop.permute.xlu0 %1335 }
 0x22a   : > { %v1856_v62 = vsel %vm1834_vm10, %v1791_v29, %v1336_v4  ;;  %v3818_v23 = vpop.eup %3817  ;;  %v1370_v43 = vpop.permute.xlu1 %1369 }
 0x22b   : > { %3689 = vmatprep.mubr.msk.bf16.mxu0 %vm1925_vm11, %v1856_v62  ;;  %v3820_v39 = vpop.eup %3819  ;;  %v2509_v30 = vadd.f32 1.0, %v3818_v23  ;;  %v1890_v22 = vsel %vm1834_vm10, %v1825_v50, %v1370_v43 }
 0x22c   : > { %v2507_v55 = vadd.f32 1.0, %v3820_v39  ;;  %3722 = vmatmul.mubr.msk.bf16.gmra.mrb[20].mxu1 %vm1925_vm11, %v1890_v22 }
 0x22d   : > { %v3822_v38 = vpop.eup %3821  ;;  %v1338_v58 = vpop.permute.xlu0 %1337  ;;  %3833 = vrcp.f32 %v2509_v30 }
 0x22e   : > { %v3824_v21 = vpop.eup %3823  ;;  %v2477_v46 = vadd.f32 1.0, %v3822_v38  ;;  %v1858_v33 = vsel %vm1834_vm10, %v1793_v5, %v1338_v58  ;;  %3835 = vrcp.f32 %v2507_v55  ;;  %v5656_v6 = vpop.permute.xlu1 %983 }
 0x22f   : > { %v3826_v36 = vpop.eup %3825  ;;  %v2475_v48 = vadd.f32 1.0, %v3824_v21  ;;  %3690 = vmatmul.mubr.msk.bf16.gmra.mrb[20].mxu0 %vm1925_vm11, %v1858_v33 }
 0x230   : > { %v3828_v7 = vpop.eup %3827  ;;  %3837 = vrcp.f32 %v2477_v46  ;;  %v2478_v45 = vadd.f32 1.0, %v3826_v36 }
 0x231   : > { %v3830_v53 = vpop.eup %3829  ;;  %3839 = vrcp.f32 %v2475_v48  ;;  %v2510_v54 = vadd.f32 1.0, %v3828_v7  ;;  %v5658_v20 = vpop.permute.xlu0 %951 }
 0x232   : > { %v3832_v18 = vpop.eup %3831  ;;  %3841 = vrcp.f32 %v2478_v45  ;;  %v2476_v19 = vadd.f32 1.0, %v3830_v53  ;;  %v5660_v26 = vpop.permute.xlu1 %985 }
 0x233   : > { %3843 = vrcp.f32 %v2510_v54  ;;  %v2508_v12 = vadd.f32 1.0, %v3832_v18 }
 0x234   : > { %3845 = vrcp.f32 %v2476_v19 }
 0x235   : > { %3847 = vrcp.f32 %v2508_v12  ;;  %v5662_v34 = vpop.permute.xlu0 %953 }
 0x236   : > { %v5664_v47 = vpop.permute.xlu1 %1071 }
 0x237   : > { %v3834_v35 = vpop.eup %3833 }
 0x238   : > { %v3836_v61 = vpop.eup %3835  ;;  %v2701_v2 = vmul.f32 %v3834_v35, %v5583_v10 }
 0x239   : > { %v5666_v8 = vpop.permute.xlu0 %1039  ;;  %v2699_v10 = vmul.f32 %v3836_v61, %v5586_v0 }
 0x23a   : > { %v3838_v3 = vpop.eup %3837  ;;  %v5669_v37 = vpop.permute.xlu1 %1073 }
 0x23b   : > { %v3840_v13 = vpop.eup %3839  ;;  %v2669_v52 = vmul.f32 %v3838_v3, %v5589_v60 }
 0x23c   : > { %v3842_v44 = vpop.eup %3841  ;;  %v2667_v60 = vmul.f32 %v3840_v13, %v5596_v14  ;;  %v1567_v13 = vsel %vm1509_vm6, %v5012_v15, %v5656_v6  ;;  %v1569_v15 = vsel %vm1509_vm6, %v5004_v17, %v5660_v26  ;;  %v1537_v6 = vsel %vm1509_vm6, %v4892_v51, %v5662_v34 }
 0x23d   : > { %v3844_v59 = vpop.eup %3843  ;;  %v2670_v41 = vmul.f32 %v3842_v44, %v5601_v11  ;;  %v5673_v9 = vpop.permute.xlu0 %1041 }
 0x23e   : > { %v3846_v31 = vpop.eup %3845  ;;  %v2702_v32 = vmul.f32 %v3844_v59, %v5593_v42  ;;  %v1142_v49 = vpop.permute.xlu1 %1141  ;;  %v1632_v59 = vsel %vm1574_vm5, %v1567_v13, %v5664_v47  ;;  %v1602_v17 = vsel %vm1574_vm5, %v1537_v6, %v5673_v9 }
 0x23f   : > { %v3848_v27 = vpop.eup %3847  ;;  %v3445_v11 = vpack.c.bf16 %v2670_v41, %v2669_v52  ;;  %v2668_v57 = vmul.f32 %v3846_v31, %v5606_v40  ;;  %v1535_v52 = vsel %vm1509_vm6, %v4900_v16, %v5658_v20  ;;  %v1697_v41 = vsel %vm1639_vm7, %v1632_v59, %v1142_v49 }
 0x240   : > { %v3525_v29 = vpack.c.bf16 %v2702_v32, %v2701_v2  ;;  %v2700_v4 = vmul.f32 %v3848_v27, %v5609_v28  ;;  %v1600_v2 = vsel %vm1574_vm5, %v1535_v52, %v5666_v8  ;;  %v1634_v8 = vsel %vm1574_vm5, %v1569_v15, %v5669_v37 }
 0x241   : > { %3597 = vst [vmem:[%s5679_s16 + $0x8] sm:$0xff] %v3445_v11   ;;  %v3440_v1 = vpack.c.bf16 %v2668_v57, %v2667_v60  ;;  %v1110_v56 = vpop.permute.xlu0 %1109 }
 0x242   : > { %3613 = vst [vmem:[%s5679_s16 + $0x88] sm:$0xff] %v3525_v29   ;;  %v3520_v62 = vpack.c.bf16 %v2700_v4, %v2699_v10  ;;  %v5689_v42 = vpop.permute.xlu1 %1143  ;;  %v1665_v47 = vsel %vm1639_vm7, %v1600_v2, %v1110_v56 }
 0x243   : > { %3441 = vst [vmem:[%s5679_s16] sm:$0xff] %v3440_v1   ;;  %v1699_v51 = vsel %vm1639_vm7, %v1634_v8, %v5689_v42 }
 0x244   : > { %3612 = vst [vmem:[%s5679_s16 + $0x80] sm:$0xff] %v3520_v62  }
 0x245   : > { %v5692_v23 = vpop.permute.xlu0 %1111 }
 0x246   : > { %v1214_v14 = vpop.permute.xlu1 %1213  ;;  %v1667_v9 = vsel %vm1639_vm7, %v1602_v17, %v5692_v23 }
 0x247   : > { %v3707_v25 = vpop.f32.mrb[4].mxu1  ;;  %v1762_v32 = vsel %vm1704_vm8, %v1697_v41, %v1214_v14 }
 0x248   : > { %v5695_v50 = vadd.f32 %v3707_v25, %v5576_v24  ;;  %v2172_v0 = vpop.f32.mrb[5].mxu1 }
 0x249   : > { %v1182_v40 = vpop.permute.xlu0 %1181  ;;  %v5698_v28 = vadd.f32 %v5576_v24, %v2172_v0  ;;  %v3708_v39 = vpop.f32.mrb[6].mxu1 }
 0x24a   : > { %v3675_v43 = vpop.f32.mrb[4].mxu0  ;;  %v3280_v30 = vmul.f32 -1.442695, %v5695_v50  ;;  %v5705_v38 = vadd.f32 %v3708_v39, %v5576_v24  ;;  %v1216_v55 = vpop.permute.xlu1 %1215  ;;  %v1730_v11 = vsel %vm1704_vm8, %v1665_v47, %v1182_v40 }
 0x24b   : > { %v5701_v63 = vadd.f32 %v3675_v43, %v5576_v24  ;;  %v2044_v22 = vpop.f32.mrb[5].mxu0  ;;  %v3278_v58 = vmul.f32 -1.442695, %v5698_v28  ;;  %v2175_v46 = vpop.f32.mrb[7].mxu1  ;;  %v1764_v1 = vsel %vm1704_vm8, %v1699_v51, %v1216_v55 }
 0x24c   : > { %v5708_v5 = vadd.f32 %v5576_v24, %v2044_v22  ;;  %v3676_v21 = vpop.f32.mrb[6].mxu0  ;;  %3849 = vpow2.f32 %v3280_v30  ;;  %v3281_v48 = vmul.f32 -1.442695, %v5705_v38  ;;  %v5721_v18 = vadd.f32 %v5576_v24, %v2175_v46 }
 0x24d   : > { %v3248_v33 = vmul.f32 -1.442695, %v5701_v63  ;;  %v5713_v36 = vadd.f32 %v3676_v21, %v5576_v24  ;;  %v2047_v7 = vpop.f32.mrb[7].mxu0  ;;  %v1184_v45 = vpop.permute.xlu0 %1183  ;;  %3851 = vpow2.f32 %v3278_v58 }
 0x24e   : > { %v3246_v53 = vmul.f32 -1.442695, %v5708_v5  ;;  %v5718_v54 = vadd.f32 %v5576_v24, %v2047_v7  ;;  %v1302_v12 = vpop.permute.xlu1 %1301  ;;  %v3279_v61 = vmul.f32 -1.442695, %v5721_v18  ;;  %v1732_v43 = vsel %vm1704_vm8, %v1667_v9, %v1184_v45 }
 0x24f   : > { %3853 = vpow2.f32 %v3248_v33  ;;  %v3249_v19 = vmul.f32 -1.442695, %v5713_v36  ;;  %v1827_v16 = vsel %vm1769_vm9, %v1762_v32, %v1302_v12 }
 0x250   : > { %3855 = vpow2.f32 %v3246_v53  ;;  %v3247_v35 = vmul.f32 -1.442695, %v5718_v54 }
 0x251   : > { %3857 = vpow2.f32 %v3249_v19  ;;  %v1270_v3 = vpop.permute.xlu0 %1269 }
 0x252   : > { %3859 = vpow2.f32 %v3281_v48  ;;  %v1304_v44 = vpop.permute.xlu1 %1303  ;;  %v1795_v34 = vsel %vm1769_vm9, %v1730_v11, %v1270_v3 }
 0x253   : > { %3861 = vpow2.f32 %v3247_v35  ;;  %v1829_v42 = vsel %vm1769_vm9, %v1764_v1, %v1304_v44 }
 0x254   : > { %3863 = vpow2.f32 %v3279_v61 }
 0x255   : > { %v1272_v31 = vpop.permute.xlu0 %1271 }
 0x256   : > { %v3850_v27 = vpop.eup %3849  ;;  %v1372_v20 = vpop.permute.xlu1 %1371  ;;  %v1797_v55 = vsel %vm1769_vm9, %v1732_v43, %v1272_v31 }
 0x257   : > { %v3852_v60 = vpop.eup %3851  ;;  %v2513_v57 = vadd.f32 1.0, %v3850_v27  ;;  %v1892_v49 = vsel %vm1834_vm10, %v1827_v16, %v1372_v20 }
 0x258   : > { %v2511_v26 = vadd.f32 1.0, %v3852_v60  ;;  %3725 = vmatprep.mubr.msk.bf16.mxu1 %vm1925_vm11, %v1892_v49 }
 0x259   : > { %v3854_v10 = vpop.eup %3853  ;;  %v1340_v29 = vpop.permute.xlu0 %1339  ;;  %3865 = vrcp.f32 %v2513_v57 }
 0x25a   : > { %v3856_v4 = vpop.eup %3855  ;;  %v2481_v37 = vadd.f32 1.0, %v3854_v10  ;;  %v1860_v56 = vsel %vm1834_vm10, %v1795_v34, %v1340_v29  ;;  %3867 = vrcp.f32 %v2511_v26  ;;  %v1374_v25 = vpop.permute.xlu1 %1373 }
 0x25b   : > { %v3858_v62 = vpop.eup %3857  ;;  %v2479_v14 = vadd.f32 1.0, %v3856_v4  ;;  %3693 = vmatprep.mubr.msk.bf16.mxu0 %vm1925_vm11, %v1860_v56  ;;  %v1894_v39 = vsel %vm1834_vm10, %v1829_v42, %v1374_v25 }
 0x25c   : > { %v3860_v40 = vpop.eup %3859  ;;  %3869 = vrcp.f32 %v2481_v37  ;;  %v2482_v0 = vadd.f32 1.0, %v3858_v62  ;;  %3726 = vmatmul.mubr.msk.bf16.gmra.mrb[24].mxu1 %vm1925_vm11, %v1894_v39 }
 0x25d   : > { %v3862_v30 = vpop.eup %3861  ;;  %3871 = vrcp.f32 %v2479_v14  ;;  %v2514_v22 = vadd.f32 1.0, %v3860_v40  ;;  %v1342_v23 = vpop.permute.xlu0 %1341 }
 0x25e   : > { %v3864_v58 = vpop.eup %3863  ;;  %3873 = vrcp.f32 %v2482_v0  ;;  %v2480_v21 = vadd.f32 1.0, %v3862_v30  ;;  %v1862_v46 = vsel %vm1834_vm10, %v1797_v55, %v1342_v23  ;;  %v5768_v48 = vpop.permute.xlu1 %987 }
 0x25f   : > { %3875 = vrcp.f32 %v2514_v22  ;;  %v2512_v33 = vadd.f32 1.0, %v3864_v58  ;;  %3694 = vmatmul.mubr.msk.bf16.gmra.mrb[24].mxu0 %vm1925_vm11, %v1862_v46 }
 0x260   : > { %3877 = vrcp.f32 %v2480_v21 }
 0x261   : > { %3879 = vrcp.f32 %v2512_v33  ;;  %v5770_v7 = vpop.permute.xlu0 %955 }
 0x262   : > { %v5772_v45 = vpop.permute.xlu1 %989 }
 0x263   : > { %v3866_v53 = vpop.eup %3865 }
 0x264   : > { %v3868_v19 = vpop.eup %3867  ;;  %v2705_v2 = vmul.f32 %v3866_v53, %v5695_v50  ;;  %v6210_v53 = vld [vmem:[#allocation3_spill] sm:$0xff] }
 0x265   : > { %v5774_v12 = vpop.permute.xlu0 %957 }
 0x266   : > { %v3870_v35 = vpop.eup %3869  ;;  %v5776_v3 = vpop.permute.xlu1 %1075 }
 0x267   : > { %v3872_v61 = vpop.eup %3871  ;;  %v2673_v59 = vmul.f32 %v3870_v35, %v5701_v63  ;;  %v2703_v63 = vmul.f32 %v3868_v19, %v5698_v28  ;;  %v1571_v19 = vsel %vm1509_vm6, %v6210_v53, %v5768_v48  ;;  %v6211_v35 = vld [vmem:[#allocation62_spill] sm:$0xff] }
 0x268   : > { %v3874_v13 = vpop.eup %3873  ;;  %v2671_v15 = vmul.f32 %v3872_v61, %v5708_v5  ;;  %v1539_v61 = vsel %vm1509_vm6, %v6211_v35, %v5770_v7 }
 0x269   : > { %v3876_v44 = vpop.eup %3875  ;;  %v2674_v52 = vmul.f32 %v3874_v13, %v5713_v36  ;;  %v5780_v41 = vpop.permute.xlu0 %1043 }
 0x26a   : > { %v3878_v31 = vpop.eup %3877  ;;  %v2706_v32 = vmul.f32 %v3876_v44, %v5705_v38  ;;  %v5786_v16 = vpop.permute.xlu1 %1077  ;;  %v1604_v48 = vsel %vm1574_vm5, %v1539_v61, %v5780_v41 }
 0x26b   : > { %v3880_v27 = vpop.eup %3879  ;;  %v3455_v6 = vpack.c.bf16 %v2674_v52, %v2673_v59  ;;  %v2672_v47 = vmul.f32 %v3878_v31, %v5718_v54  ;;  %v6212_v59 = vld [vmem:[#allocation16_spill] sm:$0xff]  ;;  %v6213_v31 = vld [vmem:[#allocation61_spill] sm:$0xff] }
 0x26c   : > { %v3535_v36 = vpack.c.bf16 %v2706_v32, %v2705_v2  ;;  %v2704_v20 = vmul.f32 %v3880_v27, %v5721_v18  ;;  %v1573_v52 = vsel %vm1509_vm6, %v6212_v59, %v5772_v45  ;;  %v1541_v2 = vsel %vm1509_vm6, %v6213_v31, %v5774_v12 }
 0x26d   : > { %3599 = vst [vmem:[%s5679_s16 + $0x18] sm:$0xff] %v3455_v6   ;;  %v3450_v60 = vpack.c.bf16 %v2672_v47, %v2671_v15  ;;  %v5791_v8 = vpop.permute.xlu0 %1045  ;;  %v1636_v32 = vsel %vm1574_vm5, %v1571_v19, %v5776_v3  ;;  %v1638_v7 = vsel %vm1574_vm5, %v1573_v52, %v5786_v16 }
 0x26e   : > { %3615 = vst [vmem:[%s5679_s16 + $0x98] sm:$0xff] %v3535_v36   ;;  %v3530_v50 = vpack.c.bf16 %v2704_v20, %v2703_v63  ;;  %v1146_v38 = vpop.permute.xlu1 %1145  ;;  %v1606_v36 = vsel %vm1574_vm5, %v1541_v2, %v5791_v8 }
 0x26f   : > { %3598 = vst [vmem:[%s5679_s16 + $0x10] sm:$0xff] %v3450_v60   ;;  %v1701_v6 = vsel %vm1639_vm7, %v1636_v32, %v1146_v38 }
 0x270   : > { %3614 = vst [vmem:[%s5679_s16 + $0x90] sm:$0xff] %v3530_v50  }
 0x271   : > { %v5796_v5 = vpop.permute.xlu0 %1113 }
 0x272   : > { %v5798_v11 = vpop.permute.xlu1 %1147  ;;  %v1669_v60 = vsel %vm1639_vm7, %v1604_v48, %v5796_v5 }
 0x273   : > { %v3711_v54 = vpop.f32.mrb[8].mxu1 }
 0x274   : > { %v5803_v28 = vadd.f32 %v3711_v54, %v5576_v24  ;;  %v2188_v18 = vpop.f32.mrb[9].mxu1 }
 0x275   : > { %v5800_v57 = vpop.permute.xlu0 %1115  ;;  %v5806_v10 = vadd.f32 %v5576_v24, %v2188_v18  ;;  %v3712_v17 = vpop.f32.mrb[10].mxu1 }
 0x276   : > { %v3679_v49 = vpop.f32.mrb[8].mxu0  ;;  %v3284_v26 = vmul.f32 -1.442695, %v5803_v28  ;;  %v5813_v29 = vadd.f32 %v3712_v17, %v5576_v24  ;;  %v1218_v4 = vpop.permute.xlu1 %1217  ;;  %v1703_v17 = vsel %vm1639_vm7, %v1638_v7, %v5798_v11 }
 0x277   : > { %v5809_v51 = vadd.f32 %v3679_v49, %v5576_v24  ;;  %v2060_v34 = vpop.f32.mrb[9].mxu0  ;;  %v3282_v1 = vmul.f32 -1.442695, %v5806_v10  ;;  %v2191_v62 = vpop.f32.mrb[11].mxu1  ;;  %v1766_v3 = vsel %vm1704_vm8, %v1701_v6, %v1218_v4 }
 0x278   : > { %v5816_v37 = vadd.f32 %v5576_v24, %v2060_v34  ;;  %v3680_v56 = vpop.f32.mrb[10].mxu0  ;;  %3881 = vpow2.f32 %v3284_v26  ;;  %v3285_v42 = vmul.f32 -1.442695, %v5813_v29  ;;  %v5829_v39 = vadd.f32 %v5576_v24, %v2191_v62 }
 0x279   : > { %v3252_v9 = vmul.f32 -1.442695, %v5809_v51  ;;  %v5821_v14 = vadd.f32 %v3680_v56, %v5576_v24  ;;  %v2063_v25 = vpop.f32.mrb[11].mxu0  ;;  %v1186_v40 = vpop.permute.xlu0 %1185  ;;  %3883 = vpow2.f32 %v3282_v1 }
 0x27a   : > { %v3250_v0 = vmul.f32 -1.442695, %v5816_v37  ;;  %v5826_v43 = vadd.f32 %v5576_v24, %v2063_v25  ;;  %v1220_v22 = vpop.permute.xlu1 %1219  ;;  %v3283_v23 = vmul.f32 -1.442695, %v5829_v39  ;;  %v1734_v18 = vsel %vm1704_vm8, %v1669_v60, %v1186_v40 }
 0x27b   : > { %3885 = vpow2.f32 %v3252_v9  ;;  %v3253_v30 = vmul.f32 -1.442695, %v5821_v14  ;;  %v1768_v56 = vsel %vm1704_vm8, %v1703_v17, %v1220_v22  ;;  %v1671_v9 = vsel %vm1639_vm7, %v1606_v36, %v5800_v57 }
 0x27c   : > { %3887 = vpow2.f32 %v3250_v0  ;;  %v3251_v55 = vmul.f32 -1.442695, %v5826_v43 }
 0x27d   : > { %3889 = vpow2.f32 %v3253_v30  ;;  %v1188_v58 = vpop.permute.xlu0 %1187 }
 0x27e   : > { %3891 = vpow2.f32 %v3285_v42  ;;  %v1306_v21 = vpop.permute.xlu1 %1305  ;;  %v1736_v40 = vsel %vm1704_vm8, %v1671_v9, %v1188_v58 }
 0x27f   : > { %3893 = vpow2.f32 %v3251_v55  ;;  %v1831_v16 = vsel %vm1769_vm9, %v1766_v3, %v1306_v21 }
 0x280   : > { %3895 = vpow2.f32 %v3283_v23 }
 0x281   : > { %v1274_v46 = vpop.permute.xlu0 %1273 }
 0x282   : > { %v3882_v33 = vpop.eup %3881  ;;  %v1308_v13 = vpop.permute.xlu1 %1307  ;;  %v1799_v5 = vsel %vm1769_vm9, %v1734_v18, %v1274_v46 }
 0x283   : > { %v3884_v44 = vpop.eup %3883  ;;  %v2517_v27 = vadd.f32 1.0, %v3882_v33  ;;  %v1833_v11 = vsel %vm1769_vm9, %v1768_v56, %v1308_v13 }
 0x284   : > { %v2515_v47 = vadd.f32 1.0, %v3884_v44 }
 0x285   : > { %v3886_v15 = vpop.eup %3885  ;;  %v1276_v63 = vpop.permute.xlu0 %1275  ;;  %3897 = vrcp.f32 %v2517_v27 }
 0x286   : > { %v3888_v45 = vpop.eup %3887  ;;  %v2485_v12 = vadd.f32 1.0, %v3886_v15  ;;  %3899 = vrcp.f32 %v2515_v47  ;;  %v1376_v50 = vpop.permute.xlu1 %1375  ;;  %v1801_v30 = vsel %vm1769_vm9, %v1736_v40, %v1276_v63 }
 0x287   : > { %v3890_v20 = vpop.eup %3889  ;;  %v2483_v41 = vadd.f32 1.0, %v3888_v45  ;;  %v1896_v8 = vsel %vm1834_vm10, %v1831_v16, %v1376_v50 }
 0x288   : > { %v3892_v38 = vpop.eup %3891  ;;  %3901 = vrcp.f32 %v2485_v12  ;;  %v2486_v54 = vadd.f32 1.0, %v3890_v20  ;;  %3729 = vmatprep.mubr.msk.bf16.mxu1 %vm1925_vm11, %v1896_v8 }
 0x289   : > { %v3894_v49 = vpop.eup %3893  ;;  %3903 = vrcp.f32 %v2483_v41  ;;  %v2518_v26 = vadd.f32 1.0, %v3892_v38  ;;  %v1344_v34 = vpop.permute.xlu0 %1343 }
 0x28a   : > { %v3896_v4 = vpop.eup %3895  ;;  %3905 = vrcp.f32 %v2486_v54  ;;  %v2484_v1 = vadd.f32 1.0, %v3894_v49  ;;  %v1864_v62 = vsel %vm1834_vm10, %v1799_v5, %v1344_v34  ;;  %v1378_v25 = vpop.permute.xlu1 %1377 }
 0x28b   : > { %3907 = vrcp.f32 %v2518_v26  ;;  %v2516_v42 = vadd.f32 1.0, %v3896_v4  ;;  %3697 = vmatprep.mubr.msk.bf16.mxu0 %vm1925_vm11, %v1864_v62  ;;  %v1898_v0 = vsel %vm1834_vm10, %v1833_v11, %v1378_v25 }
 0x28c   : > { %3909 = vrcp.f32 %v2484_v1  ;;  %3730 = vmatmul.mubr.msk.bf16.gmra.mrb[28].mxu1 %vm1925_vm11, %v1898_v0 }
 0x28d   : > { %3911 = vrcp.f32 %v2516_v42  ;;  %v1346_v22 = vpop.permute.xlu0 %1345 }
 0x28e   : > { %v1866_v57 = vsel %vm1834_vm10, %v1801_v30, %v1346_v22 }
 0x28f   : > { %3698 = vmatmul.mubr.msk.bf16.gmra.mrb[28].mxu0 %vm1925_vm11, %v1866_v57  ;;  %v3898_v55 = vpop.eup %3897 }
 0x290   : > { %v3900_v23 = vpop.eup %3899  ;;  %v2709_v61 = vmul.f32 %v3898_v55, %v5803_v28 }
 0x291   : > { %v2707_v2 = vmul.f32 %v3900_v23, %v5806_v10 }
 0x292   : > { %v3902_v21 = vpop.eup %3901 }
 0x293   : > { %v3904_v46 = vpop.eup %3903  ;;  %v2677_v53 = vmul.f32 %v3902_v21, %v5809_v51 }
 0x294   : > { %v3906_v33 = vpop.eup %3905  ;;  %v2675_v59 = vmul.f32 %v3904_v46, %v5816_v37 }
 0x295   : > { %v3908_v58 = vpop.eup %3907  ;;  %v2678_v19 = vmul.f32 %v3906_v33, %v5821_v14 }
 0x296   : > { %v3910_v35 = vpop.eup %3909  ;;  %v2710_v13 = vmul.f32 %v3908_v58, %v5813_v29 }
 0x297   : > { %v3912_v44 = vpop.eup %3911  ;;  %v3465_v52 = vpack.c.bf16 %v2678_v19, %v2677_v53  ;;  %v2676_v31 = vmul.f32 %v3910_v35, %v5826_v43 }
 0x298   : > { %v3545_v32 = vpack.c.bf16 %v2710_v13, %v2709_v61  ;;  %v2708_v51 = vmul.f32 %v3912_v44, %v5829_v39 }
 0x299   : > { %3601 = vst [vmem:[%s5679_s16 + $0x28] sm:$0xff] %v3465_v52   ;;  %v3460_v27 = vpack.c.bf16 %v2676_v31, %v2675_v59 }
 0x29a   : > { %3617 = vst [vmem:[%s5679_s16 + $0xa8] sm:$0xff] %v3545_v32   ;;  %v3540_v14 = vpack.c.bf16 %v2708_v51, %v2707_v2 }
 0x29b   : > { %3600 = vst [vmem:[%s5679_s16 + $0x20] sm:$0xff] %v3460_v27  }
 0x29c   : > { %3616 = vst [vmem:[%s5679_s16 + $0xa0] sm:$0xff] %v3540_v14  }
 0x29f   : > { %v3715_v28 = vpop.f32.mrb[12].mxu1 }
 0x2a0   : > { %v5890_v29 = vadd.f32 %v3715_v28, %v5576_v24  ;;  %v2204_v15 = vpop.f32.mrb[13].mxu1 }
 0x2a1   : > { %v5893_v48 = vadd.f32 %v5576_v24, %v2204_v15  ;;  %v3716_v43 = vpop.f32.mrb[14].mxu1 }
 0x2a2   : > { %v3683_v37 = vpop.f32.mrb[12].mxu0  ;;  %v3288_v39 = vmul.f32 -1.442695, %v5890_v29  ;;  %v2216_v6 = vadd.f32 %v3716_v43, %v5576_v24  ;;  %v2207_v47 = vpop.f32.mrb[15].mxu1 }
 0x2a3   : > { %v2085_v10 = vadd.f32 %v3683_v37, %v5576_v24  ;;  %v2076_v7 = vpop.f32.mrb[13].mxu0  ;;  %v3286_v45 = vmul.f32 -1.442695, %v5893_v48  ;;  %v2208_v12 = vadd.f32 %v5576_v24, %v2207_v47 }
 0x2a4   : > { %v2077_v63 = vadd.f32 %v5576_v24, %v2076_v7  ;;  %v3684_v36 = vpop.f32.mrb[14].mxu0  ;;  %3913 = vpow2.f32 %v3288_v39  ;;  %v3289_v16 = vmul.f32 -1.442695, %v2216_v6 }
 0x2a5   : > { %v3256_v3 = vmul.f32 -1.442695, %v2085_v10  ;;  %v2088_v20 = vadd.f32 %v3684_v36, %v5576_v24  ;;  %v2079_v60 = vpop.f32.mrb[15].mxu0  ;;  %3915 = vpow2.f32 %v3286_v45  ;;  %v3287_v18 = vmul.f32 -1.442695, %v2208_v12 }
 0x2a6   : > { %v3254_v41 = vmul.f32 -1.442695, %v2077_v63  ;;  %v2080_v50 = vadd.f32 %v5576_v24, %v2079_v60 }
 0x2a7   : > { %3917 = vpow2.f32 %v3256_v3  ;;  %v3257_v38 = vmul.f32 -1.442695, %v2088_v20 }
 0x2a8   : > { %3919 = vpow2.f32 %v3254_v41  ;;  %v3255_v54 = vmul.f32 -1.442695, %v2080_v50 }
 0x2a9   : > { %3921 = vpow2.f32 %v3257_v38 }
 0x2aa   : > { %3923 = vpow2.f32 %v3289_v16 }
 0x2ab   : > { %3925 = vpow2.f32 %v3255_v54 }
 0x2ac   : > { %3927 = vpow2.f32 %v3287_v18 }
 0x2ae   : > { %v3914_v8 = vpop.eup %3913 }
 0x2af   : > { %v3916_v49 = vpop.eup %3915  ;;  %v2521_v17 = vadd.f32 1.0, %v3914_v8 }
 0x2b0   : > { %v2519_v5 = vadd.f32 1.0, %v3916_v49 }
 0x2b1   : > { %v3918_v26 = vpop.eup %3917  ;;  %3929 = vrcp.f32 %v2521_v17 }
 0x2b2   : > { %v3920_v34 = vpop.eup %3919  ;;  %v2489_v4 = vadd.f32 1.0, %v3918_v26  ;;  %3931 = vrcp.f32 %v2519_v5 }
 0x2b3   : > { %v3922_v1 = vpop.eup %3921  ;;  %v2487_v56 = vadd.f32 1.0, %v3920_v34 }
 0x2b4   : > { %v3924_v62 = vpop.eup %3923  ;;  %3933 = vrcp.f32 %v2489_v4  ;;  %v2490_v9 = vadd.f32 1.0, %v3922_v1 }
 0x2b5   : > { %v3926_v42 = vpop.eup %3925  ;;  %3935 = vrcp.f32 %v2487_v56  ;;  %v2522_v11 = vadd.f32 1.0, %v3924_v62 }
 0x2b6   : > { %v3928_v25 = vpop.eup %3927  ;;  %3937 = vrcp.f32 %v2490_v9  ;;  %v2488_v40 = vadd.f32 1.0, %v3926_v42 }
 0x2b7   : > { %3939 = vrcp.f32 %v2522_v11  ;;  %v2520_v0 = vadd.f32 1.0, %v3928_v25 }
 0x2b8   : > { %3941 = vrcp.f32 %v2488_v40 }
 0x2b9   : > { %3943 = vrcp.f32 %v2520_v0 }
 0x2bb   : > { %v3930_v30 = vpop.eup %3929 }
 0x2bc   : > { %v3932_v22 = vpop.eup %3931  ;;  %v2713_v53 = vmul.f32 %v3930_v30, %v5890_v29 }
 0x2bd   : > { %v2711_v59 = vmul.f32 %v3932_v22, %v5893_v48 }
 0x2be   : > { %v3934_v57 = vpop.eup %3933 }
 0x2bf   : > { %v3936_v55 = vpop.eup %3935  ;;  %v2681_v46 = vmul.f32 %v3934_v57, %v2085_v10 }
 0x2c0   : > { %v3938_v23 = vpop.eup %3937  ;;  %v2679_v61 = vmul.f32 %v3936_v55, %v2077_v63 }
 0x2c1   : > { %v3940_v21 = vpop.eup %3939  ;;  %v2682_v33 = vmul.f32 %v3938_v23, %v2088_v20 }
 0x2c2   : > { %v3942_v58 = vpop.eup %3941  ;;  %v2714_v19 = vmul.f32 %v3940_v21, %v2216_v6 }
 0x2c3   : > { %v3944_v35 = vpop.eup %3943  ;;  %v3475_v13 = vpack.c.bf16 %v2682_v33, %v2681_v46  ;;  %v2680_v44 = vmul.f32 %v3942_v58, %v2080_v50 }
 0x2c4   : > { %v3555_v52 = vpack.c.bf16 %v2714_v19, %v2713_v53  ;;  %v2712_v31 = vmul.f32 %v3944_v35, %v2208_v12 }
 0x2c5   : > { %3603 = vst [vmem:[%s5679_s16 + $0x38] sm:$0xff] %v3475_v13   ;;  %v3470_v2 = vpack.c.bf16 %v2680_v44, %v2679_v61 }
 0x2c6   : > { %3619 = vst [vmem:[%s5679_s16 + $0xb8] sm:$0xff] %v3555_v52   ;;  %v3550_v32 = vpack.c.bf16 %v2712_v31, %v2711_v59  ;;  %v5932_v31 = vld [vmem:[%s6005_s2] ss:$0 sm:$0xff] }
 0x2c7   : > { %3602 = vst [vmem:[%s5679_s16 + $0x30] sm:$0xff] %v3470_v2  }
 0x2c8   : > { %3618 = vst [vmem:[%s5679_s16 + $0xb0] sm:$0xff] %v3550_v32  }
 0x2cf   : > { %v3719_v51 = vpop.f32.mrb[16].mxu1 }
 0x2d0   : > { %v5910_v27 = vadd.f32 %v3719_v51, %v5576_v24  ;;  %v2220_v14 = vpop.f32.mrb[17].mxu1 }
 0x2d1   : > { %v5913_v29 = vadd.f32 %v5576_v24, %v2220_v14  ;;  %v3720_v15 = vpop.f32.mrb[18].mxu1 }
 0x2d2   : > { %v3687_v28 = vpop.f32.mrb[16].mxu0  ;;  %v3292_v48 = vmul.f32 -1.442695, %v5910_v27  ;;  %v2232_v10 = vadd.f32 %v3720_v15, %v5576_v24  ;;  %v2223_v39 = vpop.f32.mrb[19].mxu1 }
 0x2d3   : > { %v2101_v37 = vadd.f32 %v3687_v28, %v5576_v24  ;;  %v2092_v43 = vpop.f32.mrb[17].mxu0  ;;  %v3290_v6 = vmul.f32 -1.442695, %v5913_v29  ;;  %v2224_v63 = vadd.f32 %v5576_v24, %v2223_v39 }
 0x2d4   : > { %v2093_v7 = vadd.f32 %v5576_v24, %v2092_v43  ;;  %v3688_v47 = vpop.f32.mrb[18].mxu0  ;;  %3945 = vpow2.f32 %v3292_v48  ;;  %v3293_v20 = vmul.f32 -1.442695, %v2232_v10 }
 0x2d5   : > { %v3260_v45 = vmul.f32 -1.442695, %v2101_v37  ;;  %v2104_v36 = vadd.f32 %v3688_v47, %v5576_v24  ;;  %v2095_v12 = vpop.f32.mrb[19].mxu0  ;;  %3947 = vpow2.f32 %v3290_v6  ;;  %v3291_v50 = vmul.f32 -1.442695, %v2224_v63 }
 0x2d6   : > { %v3258_v3 = vmul.f32 -1.442695, %v2093_v7  ;;  %v2096_v60 = vadd.f32 %v5576_v24, %v2095_v12 }
 0x2d7   : > { %3949 = vpow2.f32 %v3260_v45  ;;  %v3261_v41 = vmul.f32 -1.442695, %v2104_v36 }
 0x2d8   : > { %3951 = vpow2.f32 %v3258_v3  ;;  %v3259_v16 = vmul.f32 -1.442695, %v2096_v60 }
 0x2d9   : > { %3953 = vpow2.f32 %v3261_v41 }
 0x2da   : > { %3955 = vpow2.f32 %v3293_v20 }
 0x2db   : > { %3957 = vpow2.f32 %v3259_v16 }
 0x2dc   : > { %3959 = vpow2.f32 %v3291_v50 }
 0x2de   : > { %v3946_v38 = vpop.eup %3945 }
 0x2df   : > { %v3948_v54 = vpop.eup %3947  ;;  %v2525_v18 = vadd.f32 1.0, %v3946_v38 }
 0x2e0   : > { %v2523_v49 = vadd.f32 1.0, %v3948_v54 }
 0x2e1   : > { %v3950_v8 = vpop.eup %3949  ;;  %3961 = vrcp.f32 %v2525_v18 }
 0x2e2   : > { %v3952_v17 = vpop.eup %3951  ;;  %v2493_v26 = vadd.f32 1.0, %v3950_v8  ;;  %3963 = vrcp.f32 %v2523_v49 }
 0x2e3   : > { %v3954_v5 = vpop.eup %3953  ;;  %v2491_v34 = vadd.f32 1.0, %v3952_v17 }
 0x2e4   : > { %v3956_v24 = vpop.eup %3955  ;;  %3965 = vrcp.f32 %v2493_v26  ;;  %v2494_v4 = vadd.f32 1.0, %v3954_v5 }
 0x2e5   : > { %v3958_v1 = vpop.eup %3957  ;;  %3967 = vrcp.f32 %v2491_v34  ;;  %v2526_v56 = vadd.f32 1.0, %v3956_v24 }
 0x2e6   : > { %v3960_v62 = vpop.eup %3959  ;;  %3969 = vrcp.f32 %v2494_v4  ;;  %v2492_v9 = vadd.f32 1.0, %v3958_v1 }
 0x2e7   : > { %3971 = vrcp.f32 %v2526_v56  ;;  %v2524_v42 = vadd.f32 1.0, %v3960_v62 }
 0x2e8   : > { %3973 = vrcp.f32 %v2492_v9 }
 0x2e9   : > { %3975 = vrcp.f32 %v2524_v42 }
 0x2eb   : > { %v3962_v11 = vpop.eup %3961 }
 0x2ec   : > { %v3964_v25 = vpop.eup %3963  ;;  %v2717_v21 = vmul.f32 %v3962_v11, %v5910_v27 }
 0x2ed   : > { %v2715_v35 = vmul.f32 %v3964_v25, %v5913_v29 }
 0x2ee   : > { %v3966_v40 = vpop.eup %3965 }
 0x2ef   : > { %v3968_v0 = vpop.eup %3967  ;;  %v2685_v57 = vmul.f32 %v3966_v40, %v2101_v37 }
 0x2f0   : > { %v3970_v30 = vpop.eup %3969  ;;  %v2683_v58 = vmul.f32 %v3968_v0, %v2093_v7 }
 0x2f1   : > { %v3972_v22 = vpop.eup %3971  ;;  %v2686_v55 = vmul.f32 %v3970_v30, %v2104_v36 }
 0x2f2   : > { %v3974_v23 = vpop.eup %3973  ;;  %v2718_v46 = vmul.f32 %v3972_v22, %v2232_v10 }
 0x2f3   : > { %v3976_v33 = vpop.eup %3975  ;;  %v3485_v53 = vpack.c.bf16 %v2686_v55, %v2685_v57  ;;  %v2684_v19 = vmul.f32 %v3974_v23, %v2096_v60 }
 0x2f4   : > { %v3565_v61 = vpack.c.bf16 %v2718_v46, %v2717_v21  ;;  %v2716_v13 = vmul.f32 %v3976_v33, %v2224_v63 }
 0x2f5   : > { %3605 = vst [vmem:[%s5679_s16 + $0x48] sm:$0xff] %v3485_v53   ;;  %v3480_v44 = vpack.c.bf16 %v2684_v19, %v2683_v58 }
 0x2f6   : > { %3621 = vst [vmem:[%s5679_s16 + $0xc8] sm:$0xff] %v3565_v61   ;;  %v3560_v59 = vpack.c.bf16 %v2716_v13, %v2715_v35 }
 0x2f7   : > { %3604 = vst [vmem:[%s5679_s16 + $0x40] sm:$0xff] %v3480_v44  }
 0x2f8   : > { %3620 = vst [vmem:[%s5679_s16 + $0xc0] sm:$0xff] %v3560_v59  }
 0x2ff   : > { %v3723_v52 = vpop.f32.mrb[20].mxu1 }
 0x300   : > { %v5935_v2 = vadd.f32 %v5932_v31, %v3723_v52  ;;  %v2236_v32 = vpop.f32.mrb[21].mxu1 }
 0x301   : > { %v5938_v27 = vadd.f32 %v5932_v31, %v2236_v32  ;;  %v3724_v14 = vpop.f32.mrb[22].mxu1 }
 0x302   : > { %v3691_v51 = vpop.f32.mrb[20].mxu0  ;;  %v3296_v29 = vmul.f32 -1.442695, %v5935_v2  ;;  %v2248_v37 = vadd.f32 %v5932_v31, %v3724_v14  ;;  %v2239_v48 = vpop.f32.mrb[23].mxu1 }
 0x303   : > { %v2117_v28 = vadd.f32 %v5932_v31, %v3691_v51  ;;  %v2108_v15 = vpop.f32.mrb[21].mxu0  ;;  %v3294_v10 = vmul.f32 -1.442695, %v5938_v27  ;;  %v2240_v7 = vadd.f32 %v5932_v31, %v2239_v48 }
 0x304   : > { %v2109_v43 = vadd.f32 %v5932_v31, %v2108_v15  ;;  %v3692_v39 = vpop.f32.mrb[22].mxu0  ;;  %3977 = vpow2.f32 %v3296_v29  ;;  %v3297_v36 = vmul.f32 -1.442695, %v2248_v37 }
 0x305   : > { %v3264_v6 = vmul.f32 -1.442695, %v2117_v28  ;;  %v2120_v47 = vadd.f32 %v5932_v31, %v3692_v39  ;;  %v2111_v63 = vpop.f32.mrb[23].mxu0  ;;  %3979 = vpow2.f32 %v3294_v10  ;;  %v3295_v60 = vmul.f32 -1.442695, %v2240_v7 }
 0x306   : > { %v3262_v45 = vmul.f32 -1.442695, %v2109_v43  ;;  %v2112_v12 = vadd.f32 %v5932_v31, %v2111_v63 }
 0x307   : > { %3981 = vpow2.f32 %v3264_v6  ;;  %v3265_v3 = vmul.f32 -1.442695, %v2120_v47 }
 0x308   : > { %3983 = vpow2.f32 %v3262_v45  ;;  %v3263_v20 = vmul.f32 -1.442695, %v2112_v12 }
 0x309   : > { %3985 = vpow2.f32 %v3265_v3 }
 0x30a   : > { %3987 = vpow2.f32 %v3297_v36 }
 0x30b   : > { %3989 = vpow2.f32 %v3263_v20 }
 0x30c   : > { %3991 = vpow2.f32 %v3295_v60 }
 0x30e   : > { %v3978_v41 = vpop.eup %3977 }
 0x30f   : > { %v3980_v16 = vpop.eup %3979  ;;  %v2529_v50 = vadd.f32 1.0, %v3978_v41 }
 0x310   : > { %v2527_v54 = vadd.f32 1.0, %v3980_v16 }
 0x311   : > { %v3982_v38 = vpop.eup %3981  ;;  %3993 = vrcp.f32 %v2529_v50 }
 0x312   : > { %v3984_v18 = vpop.eup %3983  ;;  %v2497_v8 = vadd.f32 1.0, %v3982_v38  ;;  %3995 = vrcp.f32 %v2527_v54 }
 0x313   : > { %v3986_v49 = vpop.eup %3985  ;;  %v2495_v17 = vadd.f32 1.0, %v3984_v18 }
 0x314   : > { %v3988_v26 = vpop.eup %3987  ;;  %3997 = vrcp.f32 %v2497_v8  ;;  %v2498_v5 = vadd.f32 1.0, %v3986_v49 }
 0x315   : > { %v3990_v34 = vpop.eup %3989  ;;  %3999 = vrcp.f32 %v2495_v17  ;;  %v2530_v24 = vadd.f32 1.0, %v3988_v26 }
 0x316   : > { %v3992_v4 = vpop.eup %3991  ;;  %4001 = vrcp.f32 %v2498_v5  ;;  %v2496_v1 = vadd.f32 1.0, %v3990_v34 }
 0x317   : > { %4003 = vrcp.f32 %v2530_v24  ;;  %v2528_v56 = vadd.f32 1.0, %v3992_v4 }
 0x318   : > { %4005 = vrcp.f32 %v2496_v1 }
 0x319   : > { %4007 = vrcp.f32 %v2528_v56 }
 0x31b   : > { %v3994_v62 = vpop.eup %3993 }
 0x31c   : > { %v3996_v9 = vpop.eup %3995  ;;  %v2721_v57 = vmul.f32 %v3994_v62, %v5935_v2 }
 0x31d   : > { %v2719_v58 = vmul.f32 %v3996_v9, %v5938_v27 }
 0x31e   : > { %v3998_v42 = vpop.eup %3997 }
 0x31f   : > { %v4000_v11 = vpop.eup %3999  ;;  %v2689_v0 = vmul.f32 %v3998_v42, %v2117_v28 }
 0x320   : > { %v4002_v25 = vpop.eup %4001  ;;  %v2687_v21 = vmul.f32 %v4000_v11, %v2109_v43 }
 0x321   : > { %v4004_v40 = vpop.eup %4003  ;;  %v2690_v30 = vmul.f32 %v4002_v25, %v2120_v47 }
 0x322   : > { %v4006_v22 = vpop.eup %4005  ;;  %v2722_v55 = vmul.f32 %v4004_v40, %v2248_v37 }
 0x323   : > { %v4008_v23 = vpop.eup %4007  ;;  %v3495_v46 = vpack.c.bf16 %v2690_v30, %v2689_v0  ;;  %v2688_v33 = vmul.f32 %v4006_v22, %v2112_v12 }
 0x324   : > { %v3575_v53 = vpack.c.bf16 %v2722_v55, %v2721_v57  ;;  %v2720_v19 = vmul.f32 %v4008_v23, %v2240_v7 }
 0x325   : > { %3607 = vst [vmem:[%s5679_s16 + $0x58] sm:$0xff] %v3495_v46   ;;  %v3490_v35 = vpack.c.bf16 %v2688_v33, %v2687_v21 }
 0x326   : > { %3623 = vst [vmem:[%s5679_s16 + $0xd8] sm:$0xff] %v3575_v53   ;;  %v3570_v61 = vpack.c.bf16 %v2720_v19, %v2719_v58 }
 0x327   : > { %3606 = vst [vmem:[%s5679_s16 + $0x50] sm:$0xff] %v3490_v35  }
 0x328   : > { %3622 = vst [vmem:[%s5679_s16 + $0xd0] sm:$0xff] %v3570_v61  }
 0x32f   : > { %v3727_v13 = vpop.f32.mrb[24].mxu1 }
 0x330   : > { %v5955_v44 = vadd.f32 %v5932_v31, %v3727_v13  ;;  %v2252_v59 = vpop.f32.mrb[25].mxu1 }
 0x331   : > { %v5958_v2 = vadd.f32 %v5932_v31, %v2252_v59  ;;  %v3728_v32 = vpop.f32.mrb[26].mxu1 }
 0x332   : > { %v3695_v52 = vpop.f32.mrb[24].mxu0  ;;  %v3300_v27 = vmul.f32 -1.442695, %v5955_v44  ;;  %v2264_v28 = vadd.f32 %v5932_v31, %v3728_v32  ;;  %v2255_v29 = vpop.f32.mrb[27].mxu1 }
 0x333   : > { %v2133_v51 = vadd.f32 %v5932_v31, %v3695_v52  ;;  %v2124_v14 = vpop.f32.mrb[25].mxu0  ;;  %v3298_v37 = vmul.f32 -1.442695, %v5958_v2  ;;  %v2256_v43 = vadd.f32 %v5932_v31, %v2255_v29 }
 0x334   : > { %v2125_v15 = vadd.f32 %v5932_v31, %v2124_v14  ;;  %v3696_v48 = vpop.f32.mrb[26].mxu0  ;;  %4009 = vpow2.f32 %v3300_v27  ;;  %v3301_v47 = vmul.f32 -1.442695, %v2264_v28 }
 0x335   : > { %v3268_v10 = vmul.f32 -1.442695, %v2133_v51  ;;  %v2136_v39 = vadd.f32 %v5932_v31, %v3696_v48  ;;  %v2127_v7 = vpop.f32.mrb[27].mxu0  ;;  %4011 = vpow2.f32 %v3298_v37  ;;  %v3299_v12 = vmul.f32 -1.442695, %v2256_v43 }
 0x336   : > { %v3266_v6 = vmul.f32 -1.442695, %v2125_v15  ;;  %v2128_v63 = vadd.f32 %v5932_v31, %v2127_v7 }
 0x337   : > { %4013 = vpow2.f32 %v3268_v10  ;;  %v3269_v45 = vmul.f32 -1.442695, %v2136_v39 }
 0x338   : > { %4015 = vpow2.f32 %v3266_v6  ;;  %v3267_v36 = vmul.f32 -1.442695, %v2128_v63 }
 0x339   : > { %4017 = vpow2.f32 %v3269_v45 }
 0x33a   : > { %4019 = vpow2.f32 %v3301_v47 }
 0x33b   : > { %4021 = vpow2.f32 %v3267_v36 }
 0x33c   : > { %4023 = vpow2.f32 %v3299_v12 }
 0x33e   : > { %v4010_v3 = vpop.eup %4009 }
 0x33f   : > { %v4012_v20 = vpop.eup %4011  ;;  %v2533_v60 = vadd.f32 1.0, %v4010_v3 }
 0x340   : > { %v2531_v16 = vadd.f32 1.0, %v4012_v20 }
 0x341   : > { %v4014_v41 = vpop.eup %4013  ;;  %4025 = vrcp.f32 %v2533_v60 }
 0x342   : > { %v4016_v50 = vpop.eup %4015  ;;  %v2501_v38 = vadd.f32 1.0, %v4014_v41  ;;  %4027 = vrcp.f32 %v2531_v16 }
 0x343   : > { %v4018_v54 = vpop.eup %4017  ;;  %v2499_v18 = vadd.f32 1.0, %v4016_v50 }
 0x344   : > { %v4020_v8 = vpop.eup %4019  ;;  %4029 = vrcp.f32 %v2501_v38  ;;  %v2502_v49 = vadd.f32 1.0, %v4018_v54 }
 0x345   : > { %v4022_v17 = vpop.eup %4021  ;;  %4031 = vrcp.f32 %v2499_v18  ;;  %v2534_v26 = vadd.f32 1.0, %v4020_v8 }
 0x346   : > { %v4024_v5 = vpop.eup %4023  ;;  %4033 = vrcp.f32 %v2502_v49  ;;  %v2500_v34 = vadd.f32 1.0, %v4022_v17 }
 0x347   : > { %4035 = vrcp.f32 %v2534_v26  ;;  %v2532_v24 = vadd.f32 1.0, %v4024_v5 }
 0x348   : > { %4037 = vrcp.f32 %v2500_v34 }
 0x349   : > { %4039 = vrcp.f32 %v2532_v24 }
 0x34b   : > { %v4026_v4 = vpop.eup %4025 }
 0x34c   : > { %v4028_v1 = vpop.eup %4027  ;;  %v2725_v0 = vmul.f32 %v4026_v4, %v5955_v44 }
 0x34d   : > { %v2723_v21 = vmul.f32 %v4028_v1, %v5958_v2 }
 0x34e   : > { %v4030_v56 = vpop.eup %4029 }
 0x34f   : > { %v4032_v62 = vpop.eup %4031  ;;  %v2693_v11 = vmul.f32 %v4030_v56, %v2133_v51 }
 0x350   : > { %v4034_v9 = vpop.eup %4033  ;;  %v2691_v57 = vmul.f32 %v4032_v62, %v2125_v15 }
 0x351   : > { %v4036_v42 = vpop.eup %4035  ;;  %v2694_v25 = vmul.f32 %v4034_v9, %v2136_v39 }
 0x352   : > { %v4038_v40 = vpop.eup %4037  ;;  %v2726_v30 = vmul.f32 %v4036_v42, %v2264_v28 }
 0x353   : > { %v4040_v22 = vpop.eup %4039  ;;  %v3505_v55 = vpack.c.bf16 %v2694_v25, %v2693_v11  ;;  %v2692_v23 = vmul.f32 %v4038_v40, %v2128_v63 }
 0x354   : > { %v3585_v46 = vpack.c.bf16 %v2726_v30, %v2725_v0  ;;  %v2724_v33 = vmul.f32 %v4040_v22, %v2256_v43 }
 0x355   : > { %3609 = vst [vmem:[%s5679_s16 + $0x68] sm:$0xff] %v3505_v55   ;;  %v3500_v58 = vpack.c.bf16 %v2692_v23, %v2691_v57 }
 0x356   : > { %3625 = vst [vmem:[%s5679_s16 + $0xe8] sm:$0xff] %v3585_v46   ;;  %v3580_v53 = vpack.c.bf16 %v2724_v33, %v2723_v21 }
 0x357   : > { %3608 = vst [vmem:[%s5679_s16 + $0x60] sm:$0xff] %v3500_v58  }
 0x358   : > { %3624 = vst [vmem:[%s5679_s16 + $0xe0] sm:$0xff] %v3580_v53  }
 0x35f   : > { %v3731_v19 = vpop.f32.mrb[28].mxu1 }
 0x360   : > { %v5975_v35 = vadd.f32 %v5932_v31, %v3731_v19  ;;  %v2268_v61 = vpop.f32.mrb[29].mxu1 }
 0x361   : > { %v5978_v44 = vadd.f32 %v5932_v31, %v2268_v61  ;;  %v3732_v59 = vpop.f32.mrb[30].mxu1 }
 0x362   : > { %v3699_v13 = vpop.f32.mrb[28].mxu0  ;;  %v3304_v2 = vmul.f32 -1.442695, %v5975_v35  ;;  %v2280_v51 = vadd.f32 %v5932_v31, %v3732_v59  ;;  %v2271_v27 = vpop.f32.mrb[31].mxu1 }
 0x363   : > { %v2149_v52 = vadd.f32 %v5932_v31, %v3699_v13  ;;  %v2140_v32 = vpop.f32.mrb[29].mxu0  ;;  %v3302_v28 = vmul.f32 -1.442695, %v5978_v44  ;;  %v2272_v15 = vadd.f32 %v5932_v31, %v2271_v27 }
 0x364   : > { %v2141_v14 = vadd.f32 %v5932_v31, %v2140_v32  ;;  %v3700_v29 = vpop.f32.mrb[30].mxu0  ;;  %4041 = vpow2.f32 %v3304_v2  ;;  %v3305_v39 = vmul.f32 -1.442695, %v2280_v51 }
 0x365   : > { %v3272_v37 = vmul.f32 -1.442695, %v2149_v52  ;;  %v2152_v48 = vadd.f32 %v5932_v31, %v3700_v29  ;;  %v2143_v43 = vpop.f32.mrb[31].mxu0  ;;  %4043 = vpow2.f32 %v3302_v28  ;;  %v3303_v63 = vmul.f32 -1.442695, %v2272_v15 }
 0x366   : > { %v3270_v10 = vmul.f32 -1.442695, %v2141_v14  ;;  %v2144_v7 = vadd.f32 %v5932_v31, %v2143_v43 }
 0x367   : > { %4045 = vpow2.f32 %v3272_v37  ;;  %v3273_v6 = vmul.f32 -1.442695, %v2152_v48 }
 0x368   : > { %4047 = vpow2.f32 %v3270_v10  ;;  %v3271_v47 = vmul.f32 -1.442695, %v2144_v7 }
 0x369   : > { %4049 = vpow2.f32 %v3273_v6 }
 0x36a   : > { %4051 = vpow2.f32 %v3305_v39 }
 0x36b   : > { %4053 = vpow2.f32 %v3271_v47 }
 0x36c   : > { %4055 = vpow2.f32 %v3303_v63 }
 0x36e   : > { %v4042_v45 = vpop.eup %4041 }
 0x36f   : > { %v4044_v36 = vpop.eup %4043  ;;  %v2537_v12 = vadd.f32 1.0, %v4042_v45 }
 0x370   : > { %v2535_v20 = vadd.f32 1.0, %v4044_v36 }
 0x371   : > { %v4046_v3 = vpop.eup %4045  ;;  %4057 = vrcp.f32 %v2537_v12 }
 0x372   : > { %v4048_v60 = vpop.eup %4047  ;;  %v2505_v41 = vadd.f32 1.0, %v4046_v3  ;;  %4059 = vrcp.f32 %v2535_v20 }
 0x373   : > { %v4050_v16 = vpop.eup %4049  ;;  %v2503_v50 = vadd.f32 1.0, %v4048_v60 }
 0x374   : > { %v4052_v31 = vpop.eup %4051  ;;  %4061 = vrcp.f32 %v2505_v41  ;;  %v2506_v38 = vadd.f32 1.0, %v4050_v16 }
 0x375   : > { %v4054_v54 = vpop.eup %4053  ;;  %4063 = vrcp.f32 %v2503_v50  ;;  %v2538_v18 = vadd.f32 1.0, %v4052_v31 }
 0x376   : > { %v4056_v8 = vpop.eup %4055  ;;  %4065 = vrcp.f32 %v2506_v38  ;;  %v2504_v49 = vadd.f32 1.0, %v4054_v54 }
 0x377   : > { %4067 = vrcp.f32 %v2538_v18  ;;  %v2536_v17 = vadd.f32 1.0, %v4056_v8 }
 0x378   : > { %4069 = vrcp.f32 %v2504_v49 }
 0x379   : > { %4071 = vrcp.f32 %v2536_v17 }
 0x37b   : > { %v4058_v26 = vpop.eup %4057 }
 0x37c   : > { %v4060_v5 = vpop.eup %4059  ;;  %v2729_v42 = vmul.f32 %v4058_v26, %v5975_v35 }
 0x37d   : > { %v2727_v22 = vmul.f32 %v4060_v5, %v5978_v44 }
 0x37e   : > { %v4062_v34 = vpop.eup %4061 }
 0x37f   : > { %v4064_v24 = vpop.eup %4063  ;;  %v2697_v56 = vmul.f32 %v4062_v34, %v2149_v52 }
 0x380   : > { %v4066_v4 = vpop.eup %4065  ;;  %v2695_v40 = vmul.f32 %v4064_v24, %v2141_v14 }
 0x381   : > { %v4068_v1 = vpop.eup %4067  ;;  %v2698_v62 = vmul.f32 %v4066_v4, %v2152_v48 }
 0x382   : > { %v4070_v9 = vpop.eup %4069  ;;  %v2730_v11 = vmul.f32 %v4068_v1, %v2280_v51 }
 0x383   : > { %v4072_v25 = vpop.eup %4071  ;;  %v3515_v0 = vpack.c.bf16 %v2698_v62, %v2697_v56  ;;  %v2696_v30 = vmul.f32 %v4070_v9, %v2144_v7 }
 0x384   : > { %v3595_v57 = vpack.c.bf16 %v2730_v11, %v2729_v42  ;;  %v2728_v55 = vmul.f32 %v4072_v25, %v2272_v15 }
 0x385   : > { %3611 = vst [vmem:[%s5679_s16 + $0x78] sm:$0xff] %v3515_v0   ;;  %v3510_v23 = vpack.c.bf16 %v2696_v30, %v2695_v40 }
 0x386   : > { %3627 = vst [vmem:[%s5679_s16 + $0xf8] sm:$0xff] %v3595_v57   ;;  %v3590_v21 = vpack.c.bf16 %v2728_v55, %v2727_v22 }
 0x387   : > { %3610 = vst [vmem:[%s5679_s16 + $0x70] sm:$0xff] %v3510_v23  }
 0x388   : > { %3626 = vst [vmem:[%s5679_s16 + $0xf0] sm:$0xff] %v3590_v21  }
 0x389 PF: > { %s13_s14 = sadd.s32 1, %s4116_s14   ;;  %s6214_s12 = smov %s4112_s13 }
 0x38a   : > { %p10_p5 = scmp.ge.s32.totalorder %s13_s14, 4   ;;  %s6215_s13 = smov %s6217_s15 }
 0x38c   :  { %12 = sbr.rel (!%p10_p5) target bundleno = 2 (0x2), region = 68 }

// kernel: _conv_bn_silu_impl.1
= control target key start
LH: loop header
LB: loop body
LE: loop exit
PB: predicated region body
PF: predicated region fallthrough
CT: control target
= control target key end

     0   :  { %s7726_s12 = smov 0   ;;  %s7728_s13 = smov 0   ;;  %s9296_s0 = inlined_call_operand.vmem [shape: bf16[2,592,4], index: 0, kind: input, shape index: {}]   ;;  %s9297_s1 = inlined_call_operand.vmem [shape: bf16[9,4,128], index: 1, kind: input, shape index: {}]   ;;  %s9298_s2 = inlined_call_operand.vmem [shape: f32[1,128], index: 2, kind: input, shape index: {}]   ;;  %s9299_s3 = inlined_call_operand.vmem [shape: bf16[2,512,128], index: 3, kind: output, shape index: {}]  }
   0x1   :  { %s7730_s14 = smov 0  }
   0x2 LB: > { %s25_s15 = sadd.s32 1, %s7700_s13  ;;  %p5211_p0 = scmp.ge.s32.totalorder %s7704_s14, 1  ;;  %s7704_s14 = sphi %s7730_s14, %s13_s14   ;;  %s7700_s13 = sphi %s7728_s13, %s9468_s13   ;;  %s7696_s12 = sphi %s7726_s12, %s9467_s12  }
   0x3   : > { %p27_p1 = scmp.ge.s32.totalorder %s25_s15, 2  ;;  %p168_p2 = scmp.lt.s32.totalorder %s7704_s14, 3 }
   0x5   : > { %s9470_s15 = smov (%p27_p1, %s25_s15), 0  ;;  %p169_p3 = pnand %p5211_p0, %p168_p2 }
   0x7   : > { %172 = sbr.rel (%p169_p3) target bundleno = 856 (0x358), region = 32 }
   0xe   : > { %v5215_v0 = vld [vmem:[%s9297_s1 + $0x2] sm:$0x3]  ;;  %vm822_vm0 = vcmask 1041408   ;;  %v5382_v1 = vld [vmem:[%s9297_s1 + $0x8] sm:$0x3]  ;;  %p202_p4 = scmp.lt.s32.totalorder %s7696_s12, 1 }
   0xf   : > { %7343 = vmatprep.subr.msk.bf16.mxu1 %vm822_vm0, %v5215_v0  ;;  %7347 = vmatprep.subr.msk.bf16.mxu0 %vm822_vm0, %v5382_v1  ;;  %v824_v2 = vsel %vm822_vm0, %v5215_v0, 0  ;;  %v7754_v3 = vsel %vm822_vm0, %v5382_v1, 0  ;;  %v298_v4 = vld [vmem:[%s9297_s1] sm:$0x3]  ;;  %v5416_v5 = vld [vmem:[%s9297_s1 + $0xa] sm:$0x3] }
  0x10   : > { %9367 = vst [vmem:[#allocation2_spill] sm:$0xff] %v7754_v3  ;;  %6236 = vmatpush3.bf16.msra.mxu1 %v824_v2  ;;  %6500 = vmatpush3.bf16.msra.mxu0 %v7754_v3  ;;  %s9472_s12 = smov (!%p202_p4, %s7696_s12), 1  ;;  %vm464_vm1 = vsmask.f32 7424  ;;  %vm725_vm2 = vcmask 31744   ;;  %v1180_v16 = vsel %vm822_vm0, %v298_v4, 0 }
  0x11   : > { %7344 = vmatprep.subr.msk.bf16.mxu1 %vm822_vm0, %v298_v4  ;;  %7349 = vmatprep.subr.msk.bf16.mxu0 %vm822_vm0, %v5416_v5  ;;  %s7353_s24 = smul.u32 296, %s9472_s12  ;;  %v2773_v44 = vsel %vm822_vm0, %v5416_v5, 0  ;;  %v7831_v49 = vld [vmem:[%s9297_s1 + $0xc] sm:$0x3]  ;;  %vm1476_vm3 = vcmask 1046528   ;;  %s5682_s19 = sshll.u32 %s9472_s12, 8 }
  0x12   : > { %s8980_s21 = scalar_lea.vmem %s9299_s3, %s5682_s19 }
  0x13   : > { %s7771_s27 = scalar_lea.vmem %s9296_s0, %s7353_s24 }
  0x14   : > { %v224_v6 = vld [vmem:[%s7771_s27] sm:$0xf]  ;;  %v7775_v7 = vld [vmem:[%s7771_s27 + $0x4] sm:$0xf]  ;;  %v7781_v9 = vld [vmem:[%s7771_s27 + $0x8] sm:$0xff]  }
  0x15   : > { %v7778_v8 = vcombine.low %v224_v6, %v7775_v7  ;;  %v473_v12 = vshll.u32 %v7781_v9, 16  ;;  %v477_v13 = vshrl.u32 %v7781_v9, 16  ;;  %v7788_v14 = vld [vmem:[%s7771_s27 + $0x10] sm:$0xff]   ;;  %v7791_v15 = vld [vmem:[%s7771_s27 + $0x18] sm:$0xff]   ;;  %v7795_v17 = vld [vmem:[%s7771_s27 + $0x20] sm:$0xff]  }
  0x16   : > { %v481_v20 = vshll.u32 %v7788_v14, 16  ;;  %v485_v21 = vshrl.u32 %v7788_v14, 16  ;;  %v489_v22 = vshll.u32 %v7791_v15, 16  ;;  %v493_v23 = vshrl.u32 %v7791_v15, 16  ;;  %v7803_v25 = vld [vmem:[%s7771_s27 + $0x28] sm:$0xff]   ;;  %v7808_v33 = vld [vmem:[%s7771_s27 + $0x30] sm:$0xff]  }
  0x17   : > { %v466_v10 = vshrl.u32 %v7778_v8, 16  ;;  %v468_v11 = vshll.u32 %v7778_v8, 16  ;;  %v475_v19 = vrot.slane %v473_v12, 1  ;;  %v497_v24 = vshll.u32 %v7795_v17, 16  ;;  %v7812_v35 = vld [vmem:[%s7771_s27 + $0x38] sm:$0xff]   ;;  %v7836_v51 = vld [vmem:[%s7771_s27 + $0x40] sm:$0xff]  }
  0x18   : > { %v483_v28 = vrot.slane %v481_v20, 1  ;;  %v501_v29 = vshrl.u32 %v7795_v17, 16  ;;  %v491_v30 = vrot.slane %v489_v22, 1  ;;  %v505_v32 = vshll.u32 %v7803_v25, 16  ;;  %v7841_v55 = vld [vmem:[%s7771_s27 + $0x48] sm:$0xff]   ;;  %v7861_v63 = vld [vmem:[%s7771_s27 + $0x50] sm:$0xff]  }
  0x19   : > { %v470_v18 = vrot.slane %v468_v11, 1  ;;  %v479_v27 = vor.u32 %v477_v13, %v475_v19  ;;  %v499_v31 = vrot.slane %v497_v24, 1  ;;  %v509_v34 = vshrl.u32 %v7803_v25, 16  ;;  %v7866_v4 = vld [vmem:[%s7771_s27 + $0x58] sm:$0xff]   ;;  %v7890_v22 = vld [vmem:[%s7771_s27 + $0x68] sm:$0xff]  }
  0x1a   : > { %v487_v37 = vor.u32 %v485_v21, %v483_v28  ;;  %v495_v39 = vor.u32 %v493_v23, %v491_v30  ;;  %v507_v41 = vrot.slane %v505_v32, 1  ;;  %v513_v42 = vshll.u32 %v7808_v33, 16 }
  0x1b   : > { %v471_v26 = vor.u32 %v470_v18, %v466_v10  ;;  %v484_v38 = vsel %vm464_vm1, %v479_v27, %v483_v28  ;;  %v503_v40 = vor.u32 %v501_v29, %v499_v31  ;;  %v517_v45 = vshrl.u32 %v7808_v33, 16  ;;  %v7885_v18 = vld [vmem:[%s7771_s27 + $0x60] sm:$0xff]  }
  0x1c   : > { %v492_v43 = vsel %vm464_vm1, %v487_v37, %v491_v30  ;;  %v521_v46 = vshll.u32 %v7812_v35, 16  ;;  %v500_v47 = vsel %vm464_vm1, %v495_v39, %v499_v31  ;;  %v515_v50 = vrot.slane %v513_v42, 1  ;;  %v7909_v31 = vld [vmem:[%s7771_s27 + $0x70] sm:$0xff]   ;;  %v7914_v37 = vld [vmem:[%s7771_s27 + $0x78] sm:$0xff]  }
  0x1d   : > { %v476_v36 = vsel %vm464_vm1, %v471_v26, %v475_v19  ;;  %6501 = vmatprep.mubr.msk.bf16.mxu0 %vm725_vm2, %v492_v43  ;;  %v7826_v48 = vsel %vm464_vm1, %v503_v40, %v507_v41  ;;  %v511_v52 = vor.u32 %v509_v34, %v507_v41  ;;  %v529_v56 = vshll.u32 %v7836_v51, 16 }
  0x1e   : > { %6237 = vmatprep.mubr.msk.bf16.mxu1 %vm725_vm2, %v476_v36  ;;  %6502 = vmatmul.mubr.msk.bf16.vlgmr.msra.gmra.mrb[0].mxu0 %vm725_vm2, %v500_v47  ;;  %v519_v53 = vor.u32 %v517_v45, %v515_v50  ;;  %v523_v54 = vrot.slane %v521_v46, 1  ;;  %v525_v58 = vshrl.u32 %v7812_v35, 16  ;;  %v533_v60 = vshrl.u32 %v7836_v51, 16  ;;  %v7940_v46 = vld [vmem:[%s7771_s27 + $0x80] sm:$0xff]  }
  0x1f   : > { %6238 = vmatmul.mubr.msk.bf16.vlgmr.msra.gmra.mrb[0].mxu1 %vm725_vm2, %v484_v38  ;;  %6566 = vmatpush3.bf16.msra.mxu0 %v2773_v44  ;;  %v7847_v57 = vsel %vm464_vm1, %v511_v52, %v515_v50  ;;  %v537_v61 = vshll.u32 %v7841_v55, 16  ;;  %v531_v62 = vrot.slane %v529_v56, 1  ;;  %v545_v5 = vshll.u32 %v7861_v63, 16  ;;  %v7931_v44 = vld [vmem:[%s9297_s1 + $0x4] sm:$0x3] }
  0x20   : > { %6302 = vmatpush3.bf16.msra.mxu1 %v1180_v16  ;;  %6241 = vmatprep.mubr.msk.bf16.mxu1 %vm725_vm2, %v492_v43  ;;  %9368 = vst [vmem:[#allocation3_spill] sm:$0xff] %v7847_v57  ;;  %v7852_v59 = vsel %vm464_vm1, %v519_v53, %v523_v54  ;;  %v527_v0 = vor.u32 %v525_v58, %v523_v54  ;;  %v541_v10 = vshrl.u32 %v7841_v55, 16  ;;  %v549_v12 = vshrl.u32 %v7861_v63, 16  ;;  %v7945_v53 = vld [vmem:[%s7771_s27 + $0x88] sm:$0xff]  }
  0x21   : > { %6505 = vmatprep.mubr.msk.bf16.mxu0 %vm725_vm2, %v7826_v48  ;;  %7350 = vmatprep.subr.msk.bf16.mxu0 %vm822_vm0, %v7831_v49  ;;  %9369 = vst [vmem:[#allocation4_spill] sm:$0xff] %v7852_v59  ;;  %v535_v1 = vor.u32 %v533_v60, %v531_v62  ;;  %v539_v2 = vrot.slane %v537_v61, 1  ;;  %v553_v13 = vshll.u32 %v7866_v4, 16  ;;  %v547_v16 = vrot.slane %v545_v5, 1 }
  0x22   : > { %v7870_v6 = vsel %vm464_vm1, %v527_v0, %v531_v62  ;;  %v561_v23 = vshll.u32 %v7885_v18, 16  ;;  %v557_v26 = vshrl.u32 %v7866_v4, 16  ;;  %v565_v28 = vshrl.u32 %v7885_v18, 16  ;;  %7345 = vmatprep.subr.msk.bf16.mxu1 %vm822_vm0, %v7931_v44 }
  0x23   : > { %9370 = vst [vmem:[#allocation5_spill] sm:$0xff] %v7870_v6  ;;  %v7876_v11 = vsel %vm464_vm1, %v535_v1, %v539_v2  ;;  %v543_v19 = vor.u32 %v541_v10, %v539_v2  ;;  %v551_v20 = vor.u32 %v549_v12, %v547_v16  ;;  %v555_v21 = vrot.slane %v553_v13, 1  ;;  %v7966_v2 = vld [vmem:[%s7771_s27 + $0x90] sm:$0xff]  }
  0x24   : > { %9371 = vst [vmem:[#allocation6_spill] sm:$0xff] %v7876_v11  ;;  %v569_v29 = vshll.u32 %v7890_v22, 16  ;;  %v563_v30 = vrot.slane %v561_v23, 1  ;;  %v577_v38 = vshll.u32 %v7909_v31, 16  ;;  %v573_v40 = vshrl.u32 %v7890_v22, 16 }
  0x25   : > { %v7894_v24 = vsel %vm464_vm1, %v543_v19, %v547_v16  ;;  %v7900_v27 = vsel %vm464_vm1, %v551_v20, %v555_v21  ;;  %v559_v32 = vor.u32 %v557_v26, %v555_v21  ;;  %v581_v42 = vshrl.u32 %v7909_v31, 16  ;;  %v7983_v20 = vld [vmem:[%s7771_s27 + $0x98] sm:$0xff]  }
  0x26   : > { %6506 = vmatmul.mubr.msk.bf16.gmra.mrb[4].mxu0 %vm725_vm2, %v7847_v57  ;;  %9372 = vst [vmem:[#allocation7_spill] sm:$0xff] %v7894_v24  ;;  %9373 = vst [vmem:[#allocation8_spill] sm:$0xff] %v7900_v27  ;;  %v567_v34 = vor.u32 %v565_v28, %v563_v30  ;;  %v571_v36 = vrot.slane %v569_v29, 1  ;;  %v585_v43 = vshll.u32 %v7914_v37, 16  ;;  %v579_v45 = vrot.slane %v577_v38, 1 }
  0x27   : > { %6242 = vmatmul.mubr.msk.bf16.gmra.mrb[4].mxu1 %vm725_vm2, %v500_v47  ;;  %6509 = vmatprep.mubr.msk.bf16.mxu0 %vm725_vm2, %v7852_v59  ;;  %v7918_v39 = vsel %vm464_vm1, %v559_v32, %v563_v30  ;;  %v593_v54 = vshll.u32 %v7940_v46, 16  ;;  %v589_v58 = vshrl.u32 %v7914_v37, 16  ;;  %v597_v61 = vshrl.u32 %v7940_v46, 16 }
  0x28   : > { %6245 = vmatprep.mubr.msk.bf16.mxu1 %vm725_vm2, %v7826_v48  ;;  %9374 = vst [vmem:[#allocation9_spill] sm:$0xff] %v7918_v39  ;;  %v7924_v41 = vsel %vm464_vm1, %v567_v34, %v571_v36  ;;  %v575_v47 = vor.u32 %v573_v40, %v571_v36  ;;  %v583_v50 = vor.u32 %v581_v42, %v579_v45  ;;  %v587_v52 = vrot.slane %v585_v43, 1  ;;  %v8002_v36 = vld [vmem:[%s7771_s27 + $0xa0] sm:$0xff]   ;;  %v8009_v42 = vld [vmem:[%s7771_s27 + $0xa8] sm:$0xff]  }
  0x29   : > { %9375 = vst [vmem:[#allocation10_spill] sm:$0xff] %v7924_v41  ;;  %v601_v62 = vshll.u32 %v7945_v53, 16  ;;  %v595_v0 = vrot.slane %v593_v54, 1  ;;  %v605_v13 = vshrl.u32 %v7945_v53, 16  ;;  %v609_v16 = vshll.u32 %v7966_v2, 16 }
  0x2a   : > { %v7949_v56 = vsel %vm464_vm1, %v575_v47, %v579_v45  ;;  %v7955_v60 = vsel %vm464_vm1, %v583_v50, %v587_v52  ;;  %v591_v1 = vor.u32 %v589_v58, %v587_v52  ;;  %v9300_v26 = vrot.slane %v7788_v14, 1 }
  0x2b   : > { %9376 = vst [vmem:[#allocation11_spill] sm:$0xff] %v7949_v56  ;;  %9377 = vst [vmem:[#allocation12_spill] sm:$0xff] %v7955_v60  ;;  %v599_v5 = vor.u32 %v597_v61, %v595_v0  ;;  %v603_v10 = vrot.slane %v601_v62, 1  ;;  %v611_v23 = vrot.slane %v609_v16, 1  ;;  %v1482_v28 = vrot.slane %v7791_v15, 1 }
  0x2c   : > { %v7969_v12 = vsel %vm464_vm1, %v591_v1, %v595_v0  ;;  %v613_v29 = vshrl.u32 %v7966_v2, 16  ;;  %v617_v30 = vshll.u32 %v7983_v20, 16  ;;  %v1484_v43 = vrot.slane %v7795_v17, 1 }
  0x2d   : > { %9378 = vst [vmem:[#allocation13_spill] sm:$0xff] %v7969_v12  ;;  %v7976_v19 = vsel %vm464_vm1, %v599_v5, %v603_v10  ;;  %v607_v21 = vor.u32 %v605_v13, %v603_v10  ;;  %v7999_v34 = vsel %vm1476_vm3, %v9300_v26, %v1482_v28  ;;  %v1486_v45 = vrot.slane %v7803_v25, 1  ;;  %v8033_v5 = vld [vmem:[%s7771_s27 + $0xb0] sm:$0xff]   ;;  %v8040_v13 = vld [vmem:[%s9297_s1 + $0xe] sm:$0x3] }
  0x2e   : > { %6510 = vmatmul.mubr.msk.bf16.gmra.mrb[8].mxu0 %vm725_vm2, %v7870_v6  ;;  %9379 = vst [vmem:[#allocation14_spill] sm:$0xff] %v7976_v19  ;;  %v615_v38 = vor.u32 %v613_v29, %v611_v23  ;;  %v619_v40 = vrot.slane %v617_v30, 1  ;;  %v625_v47 = vshll.u32 %v8002_v36, 16  ;;  %v621_v50 = vshrl.u32 %v7983_v20, 16 }
  0x2f   : > { %6246 = vmatmul.mubr.msk.bf16.gmra.mrb[8].mxu1 %vm725_vm2, %v7847_v57  ;;  %6513 = vmatprep.mubr.msk.bf16.mxu0 %vm725_vm2, %v7876_v11  ;;  %v7992_v32 = vsel %vm464_vm1, %v607_v21, %v611_v23  ;;  %v629_v54 = vshrl.u32 %v8002_v36, 16  ;;  %v633_v58 = vshll.u32 %v8009_v42, 16  ;;  %v8023_v61 = vsel %vm1476_vm3, %v1482_v28, %v1484_v43  ;;  %v8045_v21 = vld [vmem:[%s7771_s27 + $0xb8] sm:$0xff]  }
  0x30   : > { %6249 = vmatprep.mubr.msk.bf16.mxu1 %vm725_vm2, %v7852_v59  ;;  %9380 = vst [vmem:[#allocation15_spill] sm:$0xff] %v7992_v32  ;;  %v8018_v52 = vsel %vm464_vm1, %v615_v38, %v619_v40  ;;  %v3145_v62 = vsel %vm822_vm0, %v7831_v49, 0  ;;  %v8030_v0 = vsel %vm1476_vm3, %v1484_v43, %v1486_v45  ;;  %v627_v1 = vrot.slane %v625_v47, 1 }
  0x31   : > { %9381 = vst [vmem:[#allocation16_spill] sm:$0xff] %v8018_v52  ;;  %v623_v10 = vor.u32 %v621_v50, %v619_v40  ;;  %v635_v49 = vrot.slane %v633_v58, 1  ;;  %v1488_v23 = vrot.slane %v7808_v33, 1  ;;  %v1490_v28 = vrot.slane %v7812_v35, 1 }
  0x32   : > { %v631_v16 = vor.u32 %v629_v54, %v627_v1  ;;  %v641_v29 = vshll.u32 %v8033_v5, 16  ;;  %v637_v38 = vshrl.u32 %v8009_v42, 16  ;;  %v645_v43 = vshrl.u32 %v8033_v5, 16 }
  0x33   : > { %v8055_v30 = vsel %vm464_vm1, %v623_v10, %v627_v1  ;;  %v649_v47 = vshll.u32 %v8045_v21, 16  ;;  %v8064_v50 = vsel %vm1476_vm3, %v1486_v45, %v1488_v23  ;;  %v8069_v54 = vsel %vm1476_vm3, %v1488_v23, %v1490_v28 }
  0x34   : > { %9382 = vst [vmem:[#allocation17_spill] sm:$0xff] %v8055_v30  ;;  %v8059_v40 = vsel %vm464_vm1, %v631_v16, %v635_v49  ;;  %v643_v58 = vrot.slane %v641_v29, 1  ;;  %v639_v1 = vor.u32 %v637_v38, %v635_v49  ;;  %v8079_v16 = vld [vmem:[%s7771_s27 + $0xc8] sm:$0xff]   ;;  %v1492_v23 = vrot.slane %v7836_v51, 1 }
  0x35   : > { %9383 = vst [vmem:[#allocation18_spill] sm:$0xff] %v8059_v40  ;;  %v651_v45 = vrot.slane %v649_v47, 1  ;;  %v1494_v29 = vrot.slane %v7841_v55, 1  ;;  %v653_v38 = vshrl.u32 %v8045_v21, 16  ;;  %v665_v3 = vshll.u32 %v8079_v16, 16 }
  0x36   : > { %6514 = vmatmul.mubr.msk.bf16.gmra.mrb[12].mxu0 %vm725_vm2, %v7894_v24  ;;  %v647_v10 = vor.u32 %v645_v43, %v643_v58  ;;  %v8087_v49 = vsel %vm464_vm1, %v639_v1, %v643_v58  ;;  %v8104_v1 = vld [vmem:[%s7771_s27 + $0xd0] sm:$0xff]  }
  0x37   : > { %6250 = vmatmul.mubr.msk.bf16.gmra.mrb[12].mxu1 %vm725_vm2, %v7870_v6  ;;  %6517 = vmatprep.mubr.msk.bf16.mxu0 %vm725_vm2, %v7900_v27  ;;  %9384 = vst [vmem:[#allocation19_spill] sm:$0xff] %v8087_v49 }
  0x38   : > { %6253 = vmatprep.mubr.msk.bf16.mxu1 %vm725_vm2, %v7876_v11  ;;  %v8091_v43 = vsel %vm464_vm1, %v647_v10, %v651_v45  ;;  %v655_v10 = vor.u32 %v653_v38, %v651_v45  ;;  %v669_v38 = vshrl.u32 %v8079_v16, 16 }
  0x39   : > { %9385 = vst [vmem:[#allocation20_spill] sm:$0xff] %v8091_v43 }
  0x3e   : > { %6518 = vmatmul.mubr.msk.bf16.gmra.mrb[16].mxu0 %vm725_vm2, %v7918_v39 }
  0x3f   : > { %6254 = vmatmul.mubr.msk.bf16.gmra.mrb[16].mxu1 %vm725_vm2, %v7894_v24  ;;  %6521 = vmatprep.mubr.msk.bf16.mxu0 %vm725_vm2, %v7924_v41  ;;  %v8175_v24 = vld [vmem:[%s7771_s27 + $0xf8] sm:$0xff]  }
  0x40   : > { %6257 = vmatprep.mubr.msk.bf16.mxu1 %vm725_vm2, %v7900_v27 }
  0x46   : > { %6522 = vmatmul.mubr.msk.bf16.gmra.mrb[20].mxu0 %vm725_vm2, %v7949_v56 }
  0x47   : > { %6258 = vmatmul.mubr.msk.bf16.gmra.mrb[20].mxu1 %vm725_vm2, %v7918_v39  ;;  %6525 = vmatprep.mubr.msk.bf16.mxu0 %vm725_vm2, %v7955_v60 }
  0x48   : > { %6261 = vmatprep.mubr.msk.bf16.mxu1 %vm725_vm2, %v7924_v41 }
  0x4e   : > { %6526 = vmatmul.mubr.msk.bf16.gmra.mrb[24].mxu0 %vm725_vm2, %v7969_v12 }
  0x4f   : > { %6262 = vmatmul.mubr.msk.bf16.gmra.mrb[24].mxu1 %vm725_vm2, %v7949_v56  ;;  %6529 = vmatprep.mubr.msk.bf16.mxu0 %vm725_vm2, %v7976_v19  ;;  %v8143_v56 = vld [vmem:[%s7771_s27 + $0xe8] sm:$0xff]  }
  0x50   : > { %6265 = vmatprep.mubr.msk.bf16.mxu1 %vm725_vm2, %v7955_v60 }
  0x56   : > { %6530 = vmatmul.mubr.msk.bf16.gmra.mrb[28].mxu0 %vm725_vm2, %v7992_v32 }
  0x57   : > { %6266 = vmatmul.mubr.msk.bf16.gmra.mrb[28].mxu1 %vm725_vm2, %v7969_v12  ;;  %6567 = vmatprep.mubr.msk.bf16.mxu0 %vm725_vm2, %v7999_v34 }
  0x58   : > { %6269 = vmatprep.mubr.msk.bf16.mxu1 %vm725_vm2, %v7976_v19 }
  0x5e   : > { %6568 = vmatmul.mubr.msk.bf16.vlgmr.msra.gmra.mrb[0].mxu0 %vm725_vm2, %v8023_v61 }
  0x5f   : > { %6270 = vmatmul.mubr.msk.bf16.gmra.mrb[32].mxu1 %vm725_vm2, %v7992_v32  ;;  %6632 = vmatpush3.bf16.msra.mxu0 %v3145_v62  ;;  %v8072_v62 = vld [vmem:[%s7771_s27 + $0xc0] sm:$0xff]   ;;  %v8111_v32 = vld [vmem:[%s7771_s27 + $0xd8] sm:$0xff]  }
  0x60   : > { %6273 = vmatprep.mubr.msk.bf16.mxu1 %vm725_vm2, %v8018_v52  ;;  %6571 = vmatprep.mubr.msk.bf16.mxu0 %vm725_vm2, %v8030_v0  ;;  %v657_v26 = vshll.u32 %v8072_v62, 16  ;;  %v661_v47 = vshrl.u32 %v8072_v62, 16 }
  0x61   : > { %7351 = vmatprep.subr.msk.bf16.mxu0 %vm822_vm0, %v8040_v13 }
  0x62   : > { %v659_v58 = vrot.slane %v657_v26, 1  ;;  %v1498_v26 = vrot.slane %v7866_v4, 1 }
  0x64   : > { %v663_v52 = vor.u32 %v661_v47, %v659_v58  ;;  %v8119_v45 = vsel %vm464_vm1, %v655_v10, %v659_v58  ;;  %v8136_v10 = vld [vmem:[%s7771_s27 + $0xe0] sm:$0xff]  }
  0x65   : > { %9386 = vst [vmem:[#allocation21_spill] sm:$0xff] %v8119_v45 }
  0x66   : > { %6572 = vmatmul.mubr.msk.bf16.gmra.mrb[4].mxu0 %vm725_vm2, %v8064_v50 }
  0x67   : > { %6274 = vmatmul.mubr.msk.bf16.gmra.mrb[36].mxu1 %vm725_vm2, %v8055_v30  ;;  %6575 = vmatprep.mubr.msk.bf16.mxu0 %vm725_vm2, %v8069_v54  ;;  %v8101_v30 = vsel %vm1476_vm3, %v1492_v23, %v1494_v29 }
  0x68   : > { %6277 = vmatprep.mubr.msk.bf16.mxu1 %vm725_vm2, %v8059_v40  ;;  %v8096_v40 = vsel %vm1476_vm3, %v1490_v28, %v1492_v23  ;;  %v667_v28 = vrot.slane %v665_v3, 1  ;;  %v1496_v23 = vrot.slane %v7861_v63, 1  ;;  %v677_v3 = vshrl.u32 %v8104_v1, 16 }
  0x6a   : > { %v8123_v47 = vsel %vm464_vm1, %v663_v52, %v667_v28  ;;  %v8128_v19 = vsel %vm1476_vm3, %v1494_v29, %v1496_v23  ;;  %v8133_v12 = vsel %vm1476_vm3, %v1496_v23, %v1498_v26  ;;  %v671_v52 = vor.u32 %v669_v38, %v667_v28 }
  0x6b   : > { %9387 = vst [vmem:[#allocation22_spill] sm:$0xff] %v8123_v47  ;;  %v1500_v23 = vrot.slane %v7885_v18, 1  ;;  %v685_v38 = vshrl.u32 %v8111_v32, 16 }
  0x6d   : > { %v8160_v41 = vsel %vm1476_vm3, %v1498_v26, %v1500_v23 }
  0x6e   : > { %6576 = vmatmul.mubr.msk.bf16.gmra.mrb[8].mxu0 %vm725_vm2, %v8096_v40 }
  0x6f   : > { %6278 = vmatmul.mubr.msk.bf16.gmra.mrb[40].mxu1 %vm725_vm2, %v8087_v49  ;;  %6579 = vmatprep.mubr.msk.bf16.mxu0 %vm725_vm2, %v8101_v30  ;;  %v673_v49 = vshll.u32 %v8104_v1, 16 }
  0x70   : > { %6281 = vmatprep.mubr.msk.bf16.mxu1 %vm725_vm2, %v8091_v43  ;;  %v681_v43 = vshll.u32 %v8111_v32, 16 }
  0x71   : > { %v675_v58 = vrot.slane %v673_v49, 1  ;;  %v1502_v49 = vrot.slane %v7890_v22, 1 }
  0x72   : > { %v683_v29 = vrot.slane %v681_v43, 1  ;;  %v693_v43 = vshrl.u32 %v8136_v10, 16 }
  0x73   : > { %v679_v60 = vor.u32 %v677_v3, %v675_v58  ;;  %v8151_v28 = vsel %vm464_vm1, %v671_v52, %v675_v58  ;;  %v8165_v39 = vsel %vm1476_vm3, %v1500_v23, %v1502_v49  ;;  %v8168_v52 = vld [vmem:[%s7771_s27 + $0xf0] sm:$0xff]   ;;  %v1504_v23 = vrot.slane %v7909_v31, 1 }
  0x74   : > { %9388 = vst [vmem:[#allocation23_spill] sm:$0xff] %v8151_v28 }
  0x75   : > { %v8155_v3 = vsel %vm464_vm1, %v679_v60, %v683_v29  ;;  %v687_v60 = vor.u32 %v685_v38, %v683_v29  ;;  %v701_v29 = vshrl.u32 %v8143_v56, 16  ;;  %v8195_v6 = vsel %vm1476_vm3, %v1502_v49, %v1504_v23 }
  0x76   : > { %6580 = vmatmul.mubr.msk.bf16.gmra.mrb[12].mxu0 %vm725_vm2, %v8128_v19  ;;  %9389 = vst [vmem:[#allocation24_spill] sm:$0xff] %v8155_v3 }
  0x77   : > { %6282 = vmatmul.mubr.msk.bf16.gmra.mrb[44].mxu1 %vm725_vm2, %v8119_v45  ;;  %6583 = vmatprep.mubr.msk.bf16.mxu0 %vm725_vm2, %v8133_v12  ;;  %v689_v45 = vshll.u32 %v8136_v10, 16 }
  0x78   : > { %6285 = vmatprep.mubr.msk.bf16.mxu1 %vm725_vm2, %v8123_v47  ;;  %v697_v47 = vshll.u32 %v8143_v56, 16 }
  0x79   : > { %v691_v58 = vrot.slane %v689_v45, 1  ;;  %v1506_v45 = vrot.slane %v7914_v37, 1 }
  0x7a   : > { %v699_v26 = vrot.slane %v697_v47, 1  ;;  %v709_v47 = vshrl.u32 %v8168_v52, 16 }
  0x7b   : > { %v695_v27 = vor.u32 %v693_v43, %v691_v58  ;;  %v8183_v11 = vsel %vm464_vm1, %v687_v60, %v691_v58  ;;  %v713_v43 = vshll.u32 %v8175_v24, 16  ;;  %v8200_v58 = vsel %vm1476_vm3, %v1504_v23, %v1506_v45 }
  0x7c   : > { %9390 = vst [vmem:[#allocation25_spill] sm:$0xff] %v8183_v11  ;;  %v1508_v23 = vrot.slane %v7940_v46, 1 }
  0x7d   : > { %v8187_v38 = vsel %vm464_vm1, %v695_v27, %v699_v26  ;;  %v703_v27 = vor.u32 %v701_v29, %v699_v26  ;;  %v715_v57 = vrot.slane %v713_v43, 1  ;;  %v717_v26 = vshrl.u32 %v8175_v24, 16 }
  0x7e   : > { %6584 = vmatmul.mubr.msk.bf16.gmra.mrb[16].mxu0 %vm725_vm2, %v8160_v41  ;;  %9391 = vst [vmem:[#allocation26_spill] sm:$0xff] %v8187_v38 }
  0x7f   : > { %6286 = vmatmul.mubr.msk.bf16.gmra.mrb[48].mxu1 %vm725_vm2, %v8151_v28  ;;  %6587 = vmatprep.mubr.msk.bf16.mxu0 %vm725_vm2, %v8165_v39  ;;  %v705_v28 = vshll.u32 %v8168_v52, 16 }
  0x80   : > { %6289 = vmatprep.mubr.msk.bf16.mxu1 %vm725_vm2, %v8155_v3  ;;  %v8192_v3 = vld [vmem:[%s7771_s27 + $0x100] sm:$0xf] }
  0x81   : > { %v707_v60 = vrot.slane %v705_v28, 1  ;;  %v8206_v59 = vcombine.low %v8192_v3, %v8192_v3  ;;  %v1510_v28 = vrot.slane %v7945_v53, 1 }
  0x83   : > { %9392 = vst [vmem:[#allocation27_spill] sm:$0xff] %v8206_v59  ;;  %v711_v49 = vor.u32 %v709_v47, %v707_v60  ;;  %v721_v29 = vshll.u32 %v8206_v59, 16  ;;  %v8223_v47 = vsel %vm1476_vm3, %v1506_v45, %v1508_v23  ;;  %v8228_v43 = vsel %vm1476_vm3, %v1508_v23, %v1510_v28 }
  0x84   : > { %v1512_v45 = vrot.slane %v7966_v2, 1  ;;  %v1532_v59 = vrot.slane %v8136_v10, 1 }
  0x86   : > { %6588 = vmatmul.mubr.msk.bf16.gmra.mrb[20].mxu0 %vm725_vm2, %v8195_v6 }
  0x87   : > { %6290 = vmatmul.mubr.msk.bf16.gmra.mrb[52].mxu1 %vm725_vm2, %v8183_v11  ;;  %6591 = vmatprep.mubr.msk.bf16.mxu0 %vm725_vm2, %v8200_v58  ;;  %v8215_v11 = vsel %vm464_vm1, %v703_v27, %v707_v60  ;;  %v8232_v60 = vor.u32 %v717_v26, %v715_v57  ;;  %v723_v27 = vrot.slane %v721_v29, 1  ;;  %v1516_v26 = vrot.slane %v8002_v36, 1 }
  0x88   : > { %6293 = vmatprep.mubr.msk.bf16.mxu1 %vm725_vm2, %v8187_v38  ;;  %9393 = vst [vmem:[#allocation28_spill] sm:$0xff] %v8215_v11  ;;  %v8220_v38 = vsel %vm464_vm1, %v711_v49, %v715_v57  ;;  %v1514_v49 = vrot.slane %v7983_v20, 1  ;;  %v1518_v29 = vrot.slane %v8009_v42, 1 }
  0x89   : > { %9394 = vst [vmem:[#allocation29_spill] sm:$0xff] %v8220_v38  ;;  %9395 = vst [vmem:[#allocation30_spill] sm:$0xff] %v8232_v60  ;;  %v724_v23 = vsel %vm464_vm1, %v8232_v60, %v723_v27 }
  0x8a   : > { %v8247_v57 = vsel %vm1476_vm3, %v1512_v45, %v1514_v49  ;;  %v8260_v27 = vsel %vm1476_vm3, %v1514_v49, %v1516_v26  ;;  %v1522_v49 = vrot.slane %v8045_v21, 1 }
  0x8e   : > { %6592 = vmatmul.mubr.msk.bf16.gmra.mrb[24].mxu0 %vm725_vm2, %v8223_v47 }
  0x8f   : > { %6294 = vmatmul.mubr.msk.bf16.gmra.mrb[56].mxu1 %vm725_vm2, %v8215_v11  ;;  %6595 = vmatprep.mubr.msk.bf16.mxu0 %vm725_vm2, %v8228_v43  ;;  %v8243_v11 = vsel %vm1476_vm3, %v1510_v28, %v1512_v45  ;;  %v1639_v28 = vsel %vm822_vm0, %v7931_v44, 0  ;;  %v8270_v45 = vsel %vm1476_vm3, %v1516_v26, %v1518_v29  ;;  %v1520_v44 = vrot.slane %v8033_v5, 1 }
  0x90   : > { %6297 = vmatprep.mubr.msk.bf16.mxu1 %vm725_vm2, %v8220_v38 }
  0x91   : > { %v8288_v26 = vsel %vm1476_vm3, %v1520_v44, %v1522_v49 }
  0x92   : > { %9396 = vst [vmem:[#allocation31_spill] sm:$0xff] %v8288_v26 }
  0x96   : > { %6596 = vmatmul.mubr.msk.bf16.gmra.mrb[28].mxu0 %vm725_vm2, %v8243_v11 }
  0x97   : > { %6298 = vmatmul.mubr.msk.bf16.gmra.mrb[60].mxu1 %vm725_vm2, %v724_v23  ;;  %6599 = vmatprep.mubr.msk.bf16.mxu0 %vm725_vm2, %v8247_v57  ;;  %v8283_v23 = vsel %vm1476_vm3, %v1518_v29, %v1520_v44  ;;  %v1526_v29 = vrot.slane %v8079_v16, 1  ;;  %v1528_v44 = vrot.slane %v8104_v1, 1 }
  0x98   : > { %6303 = vmatprep.mubr.msk.bf16.mxu1 %vm725_vm2, %v7778_v8  ;;  %v8265_v8 = vld [vmem:[%s9297_s1 + $0x6] sm:$0x3] }
  0x99   : > { %v8315_v38 = vsel %vm1476_vm3, %v1526_v29, %v1528_v44 }
  0x9a   : > { %9399 = vst [vmem:[#allocation34_spill] sm:$0xff] %v8315_v38 }
  0x9e   : > { %6600 = vmatmul.mubr.msk.bf16.gmra.mrb[32].mxu0 %vm725_vm2, %v8260_v27 }
  0x9f   : > { %6304 = vmatmul.mubr.msk.bf16.vlgmr.msra.gmra.mrb[0].mxu1 %vm725_vm2, %v7781_v9  ;;  %6603 = vmatprep.mubr.msk.bf16.mxu0 %vm725_vm2, %v8270_v45 }
  0xa0   : > { %6368 = vmatpush3.bf16.msra.mxu1 %v1639_v28  ;;  %6307 = vmatprep.mubr.msk.bf16.mxu1 %vm725_vm2, %v7788_v14  ;;  %v1524_v28 = vrot.slane %v8072_v62, 1 }
  0xa1   : > { %7346 = vmatprep.subr.msk.bf16.mxu1 %vm822_vm0, %v8265_v8 }
  0xa2   : > { %v8299_v60 = vsel %vm1476_vm3, %v1522_v49, %v1524_v28  ;;  %v1530_v49 = vrot.slane %v8111_v32, 1 }
  0xa3   : > { %9397 = vst [vmem:[#allocation32_spill] sm:$0xff] %v8299_v60 }
  0xa6   : > { %6604 = vmatmul.mubr.msk.bf16.gmra.mrb[36].mxu0 %vm725_vm2, %v8283_v23 }
  0xa7   : > { %6308 = vmatmul.mubr.msk.bf16.gmra.mrb[4].mxu1 %vm725_vm2, %v7791_v15  ;;  %6607 = vmatprep.mubr.msk.bf16.mxu0 %vm725_vm2, %v8288_v26  ;;  %v8304_v15 = vsel %vm1476_vm3, %v1524_v28, %v1526_v29  ;;  %v8320_v28 = vsel %vm1476_vm3, %v1528_v44, %v1530_v49  ;;  %v1534_v29 = vrot.slane %v8143_v56, 1 }
  0xa8   : > { %6311 = vmatprep.mubr.msk.bf16.mxu1 %vm725_vm2, %v7795_v17  ;;  %9398 = vst [vmem:[#allocation33_spill] sm:$0xff] %v8304_v15  ;;  %9400 = vst [vmem:[#allocation35_spill] sm:$0xff] %v8320_v28 }
  0xa9   : > { %v8336_v44 = vsel %vm1476_vm3, %v1532_v59, %v1534_v29 }
  0xaa   : > { %9402 = vst [vmem:[#allocation37_spill] sm:$0xff] %v8336_v44 }
  0xae   : > { %6608 = vmatmul.mubr.msk.bf16.gmra.mrb[40].mxu0 %vm725_vm2, %v8299_v60 }
  0xaf   : > { %6312 = vmatmul.mubr.msk.bf16.gmra.mrb[8].mxu1 %vm725_vm2, %v7803_v25  ;;  %6611 = vmatprep.mubr.msk.bf16.mxu0 %vm725_vm2, %v8304_v15  ;;  %v8331_v15 = vsel %vm1476_vm3, %v1530_v49, %v1532_v59  ;;  %v289_v49 = vld [vmem:[%s7771_s27 + $0x104] sm:$0xf] }
  0xb0   : > { %6315 = vmatprep.mubr.msk.bf16.mxu1 %vm725_vm2, %v7808_v33  ;;  %9401 = vst [vmem:[#allocation36_spill] sm:$0xff] %v8331_v15  ;;  %v8350_v60 = vcombine.low %v8192_v3, %v289_v49  ;;  %v8375_v49 = vld [vmem:[%s7771_s27 + $0x110] sm:$0xf] }
  0xb1   : > { %v8383_v26 = vcombine.low %v8375_v49, %v8375_v49 }
  0xb2   : > { %v2757_v3 = vrot.slane %v8350_v60, 1 }
  0xb3   : > { %9408 = vst [vmem:[#allocation43_spill] sm:$0xff] %v8383_v26 }
  0xb6   : > { %6612 = vmatmul.mubr.msk.bf16.gmra.mrb[44].mxu0 %vm725_vm2, %v8315_v38  ;;  %v8347_v38 = vrot.slane %v8175_v24, 1 }
  0xb7   : > { %6316 = vmatmul.mubr.msk.bf16.gmra.mrb[12].mxu1 %vm725_vm2, %v7812_v35  ;;  %6615 = vmatprep.mubr.msk.bf16.mxu0 %vm725_vm2, %v8320_v28  ;;  %v1536_v28 = vrot.slane %v8168_v52, 1 }
  0xb8   : > { %6319 = vmatprep.mubr.msk.bf16.mxu1 %vm725_vm2, %v7836_v51  ;;  %9403 = vst [vmem:[#allocation38_spill] sm:$0xff] %v8347_v38 }
  0xb9   : > { %v8353_v59 = vsel %vm1476_vm3, %v1534_v29, %v1536_v28 }
  0xba   : > { %9404 = vst [vmem:[#allocation39_spill] sm:$0xff] %v8353_v59 }
  0xbe   : > { %6616 = vmatmul.mubr.msk.bf16.gmra.mrb[48].mxu0 %vm725_vm2, %v8331_v15  ;;  %v8359_v15 = vsel %vm1476_vm3, %v1536_v28, %v8347_v38  ;;  %v8379_v28 = vsel %vm1476_vm3, %v8347_v38, %v2757_v3  ;;  %v2761_v38 = vrot.slane %v8383_v26, 1 }
  0xbf   : > { %6320 = vmatmul.mubr.msk.bf16.gmra.mrb[16].mxu1 %vm725_vm2, %v7841_v55  ;;  %6619 = vmatprep.mubr.msk.bf16.mxu0 %vm725_vm2, %v8336_v44  ;;  %9405 = vst [vmem:[#allocation40_spill] sm:$0xff] %v8359_v15  ;;  %v8362_v44 = vld [vmem:[%s7771_s27 + $0x108] sm:$0xff]   ;;  %9407 = vst [vmem:[#allocation42_spill] sm:$0xff] %v8379_v28 }
  0xc0   : > { %6323 = vmatprep.mubr.msk.bf16.mxu1 %vm725_vm2, %v7861_v63  ;;  %v8372_v29 = vrot.slane %v8362_v44, 1 }
  0xc2   : > { %9406 = vst [vmem:[#allocation41_spill] sm:$0xff] %v8372_v29 }
  0xc6   : > { %6620 = vmatmul.mubr.msk.bf16.gmra.mrb[52].mxu0 %vm725_vm2, %v8353_v59  ;;  %v2762_v59 = vsel %vm1476_vm3, %v8372_v29, %v2761_v38  ;;  %v8416_v38 = vld [vmem:[%s9297_s1 + $0x10] sm:$0x3] }
  0xc7   : > { %6324 = vmatmul.mubr.msk.bf16.gmra.mrb[20].mxu1 %vm725_vm2, %v7866_v4  ;;  %6623 = vmatprep.mubr.msk.bf16.mxu0 %vm725_vm2, %v8359_v15  ;;  %v8389_v15 = vsel %vm1476_vm3, %v2757_v3, %v8372_v29  ;;  %v3534_v3 = vsel %vm822_vm0, %v8040_v13, 0  ;;  %v9435_v29 = vld [vmem:[#allocation16_spill] sm:$0xff] }
  0xc8   : > { %6327 = vmatprep.mubr.msk.bf16.mxu1 %vm725_vm2, %v7885_v18  ;;  %9409 = vst [vmem:[#allocation44_spill] sm:$0xff] %v8389_v15 }
  0xce   : > { %6624 = vmatmul.mubr.msk.bf16.gmra.mrb[56].mxu0 %vm725_vm2, %v8379_v28  ;;  %v9439_v28 = vld [vmem:[#allocation2_spill] sm:$0xff] }
  0xcf   : > { %6328 = vmatmul.mubr.msk.bf16.gmra.mrb[24].mxu1 %vm725_vm2, %v7890_v22  ;;  %6627 = vmatprep.mubr.msk.bf16.mxu0 %vm725_vm2, %v8389_v15  ;;  %v9437_v15 = vld [vmem:[#allocation17_spill] sm:$0xff] }
  0xd0   : > { %6331 = vmatprep.mubr.msk.bf16.mxu1 %vm725_vm2, %v7909_v31 }
  0xd6   : > { %6628 = vmatmul.mubr.msk.bf16.gmra.mrb[60].mxu0 %vm725_vm2, %v2762_v59  ;;  %v2011_v59 = vsel %vm822_vm0, %v8265_v8, 0  ;;  %v3907_v8 = vsel %vm822_vm0, %v8416_v38, 0 }
  0xd7   : > { %6332 = vmatmul.mubr.msk.bf16.gmra.mrb[28].mxu1 %vm725_vm2, %v7914_v37  ;;  %6633 = vmatprep.mubr.msk.bf16.mxu0 %vm725_vm2, %v7795_v17  ;;  %v297_v17 = vld [vmem:[%s7771_s27] sm:$0xe] }
  0xd8   : > { %6335 = vmatprep.mubr.msk.bf16.mxu1 %vm725_vm2, %v7940_v46 }
  0xde   : > { %6634 = vmatmul.mubr.msk.bf16.vlgmr.msra.gmra.mrb[0].mxu0 %vm725_vm2, %v7803_v25  ;;  %v5314_v25 = vcombine.low %v297_v17, %v7775_v7  ;;  %v9410_v7 = vrot.slane %v7788_v14, 1  ;;  %v293_v14 = vld [vmem:[%s7771_s27 + $0x114] sm:$0xf] }
  0xdf   : > { %6336 = vmatmul.mubr.msk.bf16.gmra.mrb[32].mxu1 %vm725_vm2, %v7945_v53  ;;  %6698 = vmatpush3.bf16.msra.mxu0 %v3534_v3  ;;  %v7674_v3 = vld [vmem:[%s9297_s1 + $0x8] sm:$0x3]  ;;  %v9413_v17 = vld [vmem:[#allocation4_spill] sm:$0xff] }
  0xe0   : > { %6339 = vmatprep.mubr.msk.bf16.mxu1 %vm725_vm2, %v7966_v2  ;;  %6637 = vmatprep.mubr.msk.bf16.mxu0 %vm725_vm2, %v7808_v33  ;;  %v1477_v33 = vrot.slane %v5314_v25, 1  ;;  %v9416_v25 = vld [vmem:[#allocation31_spill] sm:$0xff] }
  0xe1   : > { %7352 = vmatprep.subr.msk.bf16.mxu0 %vm822_vm0, %v8416_v38  ;;  %v9415_v38 = vld [vmem:[#allocation6_spill] sm:$0xff] }
  0xe6   : > { %6638 = vmatmul.mubr.msk.bf16.gmra.mrb[4].mxu0 %vm725_vm2, %v7812_v35  ;;  %v1478_v35 = vrot.slane %v7781_v9, 1 }
  0xe7   : > { %6340 = vmatmul.mubr.msk.bf16.gmra.mrb[36].mxu1 %vm725_vm2, %v7983_v20  ;;  %6641 = vmatprep.mubr.msk.bf16.mxu0 %vm725_vm2, %v7836_v51 }
  0xe8   : > { %6343 = vmatprep.mubr.msk.bf16.mxu1 %vm725_vm2, %v8002_v36  ;;  %v1479_v13 = vsel %vm1476_vm3, %v1477_v33, %v1478_v35  ;;  %v1481_v9 = vsel %vm1476_vm3, %v1478_v35, %v9410_v7  ;;  %v9417_v33 = vld [vmem:[#allocation7_spill] sm:$0xff]  ;;  %v9418_v35 = vld [vmem:[#allocation8_spill] sm:$0xff]  ;;  %v9420_v7 = vld [vmem:[#allocation33_spill] sm:$0xff] }
  0xee   : > { %6642 = vmatmul.mubr.msk.bf16.gmra.mrb[8].mxu0 %vm725_vm2, %v7841_v55 }
  0xef   : > { %6344 = vmatmul.mubr.msk.bf16.gmra.mrb[40].mxu1 %vm725_vm2, %v8009_v42  ;;  %6645 = vmatprep.mubr.msk.bf16.mxu0 %vm725_vm2, %v7861_v63 }
  0xf0   : > { %6347 = vmatprep.mubr.msk.bf16.mxu1 %vm725_vm2, %v8033_v5 }
  0xf6   : > { %6646 = vmatmul.mubr.msk.bf16.gmra.mrb[12].mxu0 %vm725_vm2, %v7866_v4 }
  0xf7   : > { %6348 = vmatmul.mubr.msk.bf16.gmra.mrb[44].mxu1 %vm725_vm2, %v8045_v21  ;;  %6649 = vmatprep.mubr.msk.bf16.mxu0 %vm725_vm2, %v7885_v18 }
  0xf8   : > { %6351 = vmatprep.mubr.msk.bf16.mxu1 %vm725_vm2, %v8072_v62 }
  0xfe   : > { %6650 = vmatmul.mubr.msk.bf16.gmra.mrb[16].mxu0 %vm725_vm2, %v7890_v22 }
  0xff   : > { %6352 = vmatmul.mubr.msk.bf16.gmra.mrb[48].mxu1 %vm725_vm2, %v8079_v16  ;;  %6653 = vmatprep.mubr.msk.bf16.mxu0 %vm725_vm2, %v7909_v31 }
 0x100   : > { %6355 = vmatprep.mubr.msk.bf16.mxu1 %vm725_vm2, %v8104_v1 }
 0x106   : > { %6654 = vmatmul.mubr.msk.bf16.gmra.mrb[20].mxu0 %vm725_vm2, %v7914_v37 }
 0x107   : > { %6356 = vmatmul.mubr.msk.bf16.gmra.mrb[52].mxu1 %vm725_vm2, %v8111_v32  ;;  %6657 = vmatprep.mubr.msk.bf16.mxu0 %vm725_vm2, %v7940_v46 }
 0x108   : > { %6359 = vmatprep.mubr.msk.bf16.mxu1 %vm725_vm2, %v8136_v10 }
 0x10e   : > { %6658 = vmatmul.mubr.msk.bf16.gmra.mrb[24].mxu0 %vm725_vm2, %v7945_v53 }
 0x10f   : > { %6360 = vmatmul.mubr.msk.bf16.gmra.mrb[56].mxu1 %vm725_vm2, %v8143_v56  ;;  %6661 = vmatprep.mubr.msk.bf16.mxu0 %vm725_vm2, %v7966_v2 }
 0x110   : > { %6363 = vmatprep.mubr.msk.bf16.mxu1 %vm725_vm2, %v8168_v52 }
 0x116   : > { %6662 = vmatmul.mubr.msk.bf16.gmra.mrb[28].mxu0 %vm725_vm2, %v7983_v20 }
 0x117   : > { %6364 = vmatmul.mubr.msk.bf16.gmra.mrb[60].mxu1 %vm725_vm2, %v8175_v24  ;;  %6665 = vmatprep.mubr.msk.bf16.mxu0 %vm725_vm2, %v8002_v36 }
 0x118   : > { %6369 = vmatprep.mubr.msk.bf16.mxu1 %vm725_vm2, %v1479_v13  ;;  %v9419_v13 = vld [vmem:[#allocation32_spill] sm:$0xff] }
 0x11e   : > { %6666 = vmatmul.mubr.msk.bf16.gmra.mrb[32].mxu0 %vm725_vm2, %v8009_v42 }
 0x11f   : > { %6370 = vmatmul.mubr.msk.bf16.vlgmr.msra.gmra.mrb[0].mxu1 %vm725_vm2, %v1481_v9  ;;  %6669 = vmatprep.mubr.msk.bf16.mxu0 %vm725_vm2, %v8033_v5  ;;  %v9421_v9 = vld [vmem:[#allocation9_spill] sm:$0xff] }
 0x120   : > { %6434 = vmatpush3.bf16.msra.mxu1 %v2011_v59  ;;  %6373 = vmatprep.mubr.msk.bf16.mxu1 %vm725_vm2, %v7999_v34  ;;  %v8541_v34 = vcombine.low %v8375_v49, %v293_v14  ;;  %v9412_v49 = vld [vmem:[#allocation3_spill] sm:$0xff]  ;;  %v9422_v59 = vld [vmem:[#allocation10_spill] sm:$0xff] }
 0x121   : > { %7348 = vmatprep.subr.msk.bf16.mxu1 %vm822_vm0, %v7674_v3  ;;  %v9423_v3 = vld [vmem:[#allocation34_spill] sm:$0xff]  ;;  %v9424_v14 = vld [vmem:[#allocation35_spill] sm:$0xff] }
 0x122   : > { %9411 = vst [vmem:[#allocation45_spill] sm:$0xff] %v8541_v34 }
 0x126   : > { %6670 = vmatmul.mubr.msk.bf16.gmra.mrb[36].mxu0 %vm725_vm2, %v8045_v21 }
 0x127   : > { %6374 = vmatmul.mubr.msk.bf16.gmra.mrb[4].mxu1 %vm725_vm2, %v8023_v61  ;;  %6673 = vmatprep.mubr.msk.bf16.mxu0 %vm725_vm2, %v8072_v62  ;;  %v8552_v61 = vld [vmem:[%s7771_s27 + $0x118] sm:$0xff]  }
 0x128   : > { %6377 = vmatprep.mubr.msk.bf16.mxu1 %vm725_vm2, %v8030_v0 }
 0x12e   : > { %6674 = vmatmul.mubr.msk.bf16.gmra.mrb[40].mxu0 %vm725_vm2, %v8079_v16 }
 0x12f   : > { %6378 = vmatmul.mubr.msk.bf16.gmra.mrb[8].mxu1 %vm725_vm2, %v8064_v50  ;;  %6677 = vmatprep.mubr.msk.bf16.mxu0 %vm725_vm2, %v8104_v1 }
 0x130   : > { %6381 = vmatprep.mubr.msk.bf16.mxu1 %vm725_vm2, %v8069_v54 }
 0x136   : > { %6678 = vmatmul.mubr.msk.bf16.gmra.mrb[44].mxu0 %vm725_vm2, %v8111_v32 }
 0x137   : > { %6382 = vmatmul.mubr.msk.bf16.gmra.mrb[12].mxu1 %vm725_vm2, %v8096_v40  ;;  %6681 = vmatprep.mubr.msk.bf16.mxu0 %vm725_vm2, %v8136_v10 }
 0x138   : > { %6385 = vmatprep.mubr.msk.bf16.mxu1 %vm725_vm2, %v8101_v30 }
 0x13e   : > { %6682 = vmatmul.mubr.msk.bf16.gmra.mrb[48].mxu0 %vm725_vm2, %v8143_v56 }
 0x13f   : > { %6386 = vmatmul.mubr.msk.bf16.gmra.mrb[16].mxu1 %vm725_vm2, %v8128_v19  ;;  %6685 = vmatprep.mubr.msk.bf16.mxu0 %vm725_vm2, %v8168_v52 }
 0x140   : > { %6389 = vmatprep.mubr.msk.bf16.mxu1 %vm725_vm2, %v8133_v12 }
 0x146   : > { %6686 = vmatmul.mubr.msk.bf16.gmra.mrb[52].mxu0 %vm725_vm2, %v8175_v24 }
 0x147   : > { %6390 = vmatmul.mubr.msk.bf16.gmra.mrb[20].mxu1 %vm725_vm2, %v8160_v41  ;;  %6689 = vmatprep.mubr.msk.bf16.mxu0 %vm725_vm2, %v8350_v60 }
 0x148   : > { %6393 = vmatprep.mubr.msk.bf16.mxu1 %vm725_vm2, %v8165_v39 }
 0x14e   : > { %6690 = vmatmul.mubr.msk.bf16.gmra.mrb[56].mxu0 %vm725_vm2, %v8362_v44 }
 0x14f   : > { %6394 = vmatmul.mubr.msk.bf16.gmra.mrb[24].mxu1 %vm725_vm2, %v8195_v6  ;;  %6693 = vmatprep.mubr.msk.bf16.mxu0 %vm725_vm2, %v8541_v34 }
 0x150   : > { %6397 = vmatprep.mubr.msk.bf16.mxu1 %vm725_vm2, %v8200_v58 }
 0x156   : > { %6694 = vmatmul.mubr.msk.bf16.gmra.mrb[60].mxu0 %vm725_vm2, %v8552_v61 }
 0x157   : > { %6398 = vmatmul.mubr.msk.bf16.gmra.mrb[28].mxu1 %vm725_vm2, %v8223_v47  ;;  %6699 = vmatprep.mubr.msk.bf16.mxu0 %vm725_vm2, %v7826_v48  ;;  %v9414_v48 = vld [vmem:[#allocation5_spill] sm:$0xff] }
 0x158   : > { %6401 = vmatprep.mubr.msk.bf16.mxu1 %vm725_vm2, %v8228_v43 }
 0x15e   : > { %6700 = vmatmul.mubr.msk.bf16.vlgmr.msra.gmra.mrb[0].mxu0 %vm725_vm2, %v9412_v49  ;;  %v9426_v49 = vld [vmem:[#allocation12_spill] sm:$0xff] }
 0x15f   : > { %6402 = vmatmul.mubr.msk.bf16.gmra.mrb[32].mxu1 %vm725_vm2, %v8243_v11  ;;  %6764 = vmatpush3.bf16.msra.mxu0 %v3907_v8  ;;  %v9425_v8 = vld [vmem:[#allocation11_spill] sm:$0xff] }
 0x160   : > { %6405 = vmatprep.mubr.msk.bf16.mxu1 %vm725_vm2, %v8247_v57  ;;  %6703 = vmatprep.mubr.msk.bf16.mxu0 %vm725_vm2, %v9413_v17  ;;  %v9427_v17 = vld [vmem:[#allocation36_spill] sm:$0xff] }
 0x166   : > { %6704 = vmatmul.mubr.msk.bf16.gmra.mrb[4].mxu0 %vm725_vm2, %v9414_v48  ;;  %v9428_v48 = vld [vmem:[#allocation37_spill] sm:$0xff] }
 0x167   : > { %6406 = vmatmul.mubr.msk.bf16.gmra.mrb[36].mxu1 %vm725_vm2, %v8260_v27  ;;  %6707 = vmatprep.mubr.msk.bf16.mxu0 %vm725_vm2, %v9415_v38  ;;  %v9429_v38 = vld [vmem:[#allocation13_spill] sm:$0xff] }
 0x168   : > { %6409 = vmatprep.mubr.msk.bf16.mxu1 %vm725_vm2, %v8270_v45 }
 0x16e   : > { %6708 = vmatmul.mubr.msk.bf16.gmra.mrb[8].mxu0 %vm725_vm2, %v9417_v33  ;;  %v9430_v33 = vld [vmem:[#allocation14_spill] sm:$0xff] }
 0x16f   : > { %6410 = vmatmul.mubr.msk.bf16.gmra.mrb[40].mxu1 %vm725_vm2, %v8283_v23  ;;  %6711 = vmatprep.mubr.msk.bf16.mxu0 %vm725_vm2, %v9418_v35  ;;  %v9431_v35 = vld [vmem:[#allocation39_spill] sm:$0xff] }
 0x170   : > { %6413 = vmatprep.mubr.msk.bf16.mxu1 %vm725_vm2, %v9416_v25 }
 0x176   : > { %6712 = vmatmul.mubr.msk.bf16.gmra.mrb[12].mxu0 %vm725_vm2, %v9421_v9  ;;  %v9432_v9 = vld [vmem:[#allocation40_spill] sm:$0xff] }
 0x177   : > { %6414 = vmatmul.mubr.msk.bf16.gmra.mrb[44].mxu1 %vm725_vm2, %v9419_v13  ;;  %6715 = vmatprep.mubr.msk.bf16.mxu0 %vm725_vm2, %v9422_v59  ;;  %v9433_v59 = vld [vmem:[#allocation27_spill] sm:$0xff] }
 0x178   : > { %6417 = vmatprep.mubr.msk.bf16.mxu1 %vm725_vm2, %v9420_v7 }
 0x17e   : > { %6716 = vmatmul.mubr.msk.bf16.gmra.mrb[16].mxu0 %vm725_vm2, %v9425_v8  ;;  %v1540_v8 = vrot.slane %v9433_v59, 1  ;;  %v9438_v59 = vld [vmem:[#allocation18_spill] sm:$0xff] }
 0x17f   : > { %6418 = vmatmul.mubr.msk.bf16.gmra.mrb[48].mxu1 %vm725_vm2, %v9423_v3  ;;  %6719 = vmatprep.mubr.msk.bf16.mxu0 %vm725_vm2, %v9426_v49  ;;  %v9434_v49 = vld [vmem:[#allocation15_spill] sm:$0xff]  ;;  %v2382_v3 = vshrl.u32 %v8362_v44, 16 }
 0x180   : > { %6421 = vmatprep.mubr.msk.bf16.mxu1 %vm725_vm2, %v9424_v14 }
 0x186   : > { %6720 = vmatmul.mubr.msk.bf16.gmra.mrb[20].mxu0 %vm725_vm2, %v9429_v38  ;;  %v9436_v38 = vld [vmem:[#allocation38_spill] sm:$0xff] }
 0x187   : > { %6422 = vmatmul.mubr.msk.bf16.gmra.mrb[52].mxu1 %vm725_vm2, %v9427_v17  ;;  %6723 = vmatprep.mubr.msk.bf16.mxu0 %vm725_vm2, %v9430_v33  ;;  %v1541_v26 = vsel %vm1476_vm3, %v9436_v38, %v1540_v8  ;;  %v7675_v33 = vld [vmem:[%s7771_s27 + $0x10] sm:$0xff]   ;;  %v9440_v8 = vld [vmem:[#allocation19_spill] sm:$0xff]  ;;  %v2378_v17 = vshll.u32 %v8362_v44, 16 }
 0x188   : > { %6425 = vmatprep.mubr.msk.bf16.mxu1 %vm725_vm2, %v9428_v48  ;;  %v7678_v38 = vld [vmem:[%s7771_s27 + $0x28] sm:$0xff]   ;;  %v9445_v48 = vld [vmem:[#allocation24_spill] sm:$0xff] }
 0x18e   : > { %6724 = vmatmul.mubr.msk.bf16.gmra.mrb[24].mxu0 %vm725_vm2, %v9434_v49  ;;  %v7676_v49 = vld [vmem:[%s7771_s27 + $0x18] sm:$0xff]  }
 0x18f   : > { %6426 = vmatmul.mubr.msk.bf16.gmra.mrb[56].mxu1 %vm725_vm2, %v9431_v35  ;;  %6727 = vmatprep.mubr.msk.bf16.mxu0 %vm725_vm2, %v9435_v29  ;;  %v9442_v35 = vld [vmem:[#allocation21_spill] sm:$0xff] }
 0x190   : > { %6429 = vmatprep.mubr.msk.bf16.mxu1 %vm725_vm2, %v9432_v9  ;;  %v7677_v9 = vld [vmem:[%s7771_s27 + $0x20] sm:$0xff]  }
 0x196   : > { %6728 = vmatmul.mubr.msk.bf16.gmra.mrb[28].mxu0 %vm725_vm2, %v9437_v15 }
 0x197   : > { %6430 = vmatmul.mubr.msk.bf16.gmra.mrb[60].mxu1 %vm725_vm2, %v1541_v26  ;;  %6731 = vmatprep.mubr.msk.bf16.mxu0 %vm725_vm2, %v9438_v59  ;;  %v9441_v26 = vld [vmem:[#allocation20_spill] sm:$0xff] }
 0x198   : > { %6435 = vmatprep.mubr.msk.bf16.mxu1 %vm725_vm2, %v7675_v33  ;;  %v7679_v33 = vld [vmem:[%s7771_s27 + $0x30] sm:$0xff]  }
 0x19e   : > { %6732 = vmatmul.mubr.msk.bf16.gmra.mrb[32].mxu0 %vm725_vm2, %v9440_v8 }
 0x19f   : > { %6436 = vmatmul.mubr.msk.bf16.vlgmr.msra.gmra.mrb[0].mxu1 %vm725_vm2, %v7676_v49  ;;  %6735 = vmatprep.mubr.msk.bf16.mxu0 %vm725_vm2, %v9441_v26  ;;  %v9443_v49 = vld [vmem:[#allocation22_spill] sm:$0xff] }
 0x1a0   : > { %6830 = vmatpush3.bf16.msra.mxu1 %v9439_v28  ;;  %6439 = vmatprep.mubr.msk.bf16.mxu1 %vm725_vm2, %v7677_v9  ;;  %v7680_v28 = vld [vmem:[%s7771_s27 + $0x38] sm:$0xff]   ;;  %v9444_v9 = vld [vmem:[#allocation23_spill] sm:$0xff] }
 0x1a6   : > { %6736 = vmatmul.mubr.msk.bf16.gmra.mrb[36].mxu0 %vm725_vm2, %v9442_v35 }
 0x1a7   : > { %6440 = vmatmul.mubr.msk.bf16.gmra.mrb[4].mxu1 %vm725_vm2, %v7678_v38  ;;  %6739 = vmatprep.mubr.msk.bf16.mxu0 %vm725_vm2, %v9443_v49  ;;  %v9446_v38 = vld [vmem:[#allocation25_spill] sm:$0xff] }
 0x1a8   : > { %6443 = vmatprep.mubr.msk.bf16.mxu1 %vm725_vm2, %v7679_v33  ;;  %v9447_v33 = vld [vmem:[#allocation26_spill] sm:$0xff] }
 0x1ae   : > { %6740 = vmatmul.mubr.msk.bf16.gmra.mrb[40].mxu0 %vm725_vm2, %v9444_v9  ;;  %v3505_v9 = vshll.u32 %v8541_v34, 16 }
 0x1af   : > { %6444 = vmatmul.mubr.msk.bf16.gmra.mrb[8].mxu1 %vm725_vm2, %v7680_v28  ;;  %6743 = vmatprep.mubr.msk.bf16.mxu0 %vm725_vm2, %v9445_v48  ;;  %v2375_v28 = vshrl.u32 %v8350_v60, 16  ;;  %v2380_v48 = vrot.slane %v2378_v17, 1 }
 0x1b0   : > { %6447 = vmatprep.mubr.msk.bf16.mxu1 %vm725_vm2, %v7836_v51  ;;  %v2371_v51 = vshll.u32 %v8350_v60, 16  ;;  %v3507_v17 = vrot.slane %v3505_v9, 1 }
 0x1b6   : > { %6744 = vmatmul.mubr.msk.bf16.gmra.mrb[44].mxu0 %vm725_vm2, %v9446_v38  ;;  %v9449_v38 = vld [vmem:[#allocation29_spill] sm:$0xff] }
 0x1b7   : > { %6448 = vmatmul.mubr.msk.bf16.gmra.mrb[12].mxu1 %vm725_vm2, %v7841_v55  ;;  %6747 = vmatprep.mubr.msk.bf16.mxu0 %vm725_vm2, %v9447_v33  ;;  %v9448_v55 = vld [vmem:[#allocation28_spill] sm:$0xff] }
 0x1b8   : > { %6451 = vmatprep.mubr.msk.bf16.mxu1 %vm725_vm2, %v7861_v63  ;;  %v2373_v63 = vrot.slane %v2371_v51, 1  ;;  %v3509_v51 = vshrl.u32 %v8541_v34, 16  ;;  %v3516_v34 = vshrl.u32 %v8552_v61, 16 }
 0x1ba   : > { %v2377_v33 = vor.u32 %v2375_v28, %v2373_v63  ;;  %v8693_v28 = vor.u32 %v2382_v3, %v2380_v48 }
 0x1be   : > { %6748 = vmatmul.mubr.msk.bf16.gmra.mrb[48].mxu0 %vm725_vm2, %v9448_v55 }
 0x1bf   : > { %6452 = vmatmul.mubr.msk.bf16.gmra.mrb[16].mxu1 %vm725_vm2, %v7866_v4  ;;  %6751 = vmatprep.mubr.msk.bf16.mxu0 %vm725_vm2, %v9449_v38  ;;  %v9450_v4 = vld [vmem:[#allocation30_spill] sm:$0xff]  ;;  %v3512_v38 = vshll.u32 %v8552_v61, 16 }
 0x1c0   : > { %6455 = vmatprep.mubr.msk.bf16.mxu1 %vm725_vm2, %v7885_v18  ;;  %v8677_v14 = vsel %vm464_vm1, %v9450_v4, %v2373_v63  ;;  %v8683_v18 = vsel %vm464_vm1, %v2377_v33, %v2380_v48  ;;  %v3511_v33 = vor.u32 %v3509_v51, %v3507_v17  ;;  %v3508_v4 = vsel %vm464_vm1, %v8693_v28, %v3507_v17 }
 0x1c1   : > { %v3514_v63 = vrot.slane %v3512_v38, 1 }
 0x1c3   : > { %v3515_v9 = vsel %vm464_vm1, %v3511_v33, %v3514_v63  ;;  %v3518_v3 = vor.u32 %v3516_v34, %v3514_v63  ;;  %v8898_v63 = vld [vmem:[%s9298_s2] ss:$0 sm:$0xff] }
 0x1c6   : > { %6752 = vmatmul.mubr.msk.bf16.gmra.mrb[52].mxu0 %vm725_vm2, %v8677_v14 }
 0x1c7   : > { %6456 = vmatmul.mubr.msk.bf16.gmra.mrb[20].mxu1 %vm725_vm2, %v7890_v22  ;;  %6755 = vmatprep.mubr.msk.bf16.mxu0 %vm725_vm2, %v8683_v18  ;;  %v8696_v22 = vld [vmem:[%s7771_s27 + $0x120] ss:$0 sps:$4 sm:$0x11]  }
 0x1c8   : > { %6459 = vmatprep.mubr.msk.bf16.mxu1 %vm725_vm2, %v7909_v31  ;;  %v3520_v31 = vshll.u32 %v8696_v22, 16 }
 0x1ca   : > { %v3522_v48 = vrot.slane %v3520_v31, 1 }
 0x1cc   : > { %v3523_v38 = vsel %vm464_vm1, %v3518_v3, %v3522_v48 }
 0x1ce   : > { %6756 = vmatmul.mubr.msk.bf16.gmra.mrb[56].mxu0 %vm725_vm2, %v3508_v4 }
 0x1cf   : > { %6460 = vmatmul.mubr.msk.bf16.gmra.mrb[24].mxu1 %vm725_vm2, %v7914_v37  ;;  %6759 = vmatprep.mubr.msk.bf16.mxu0 %vm725_vm2, %v3515_v9  ;;  %v9454_v37 = vld [vmem:[#allocation24_spill] sm:$0xff] }
 0x1d0   : > { %6463 = vmatprep.mubr.msk.bf16.mxu1 %vm725_vm2, %v7940_v46  ;;  %v9457_v46 = vld [vmem:[#allocation25_spill] sm:$0xff] }
 0x1d6   : > { %6760 = vmatmul.mubr.msk.bf16.gmra.mrb[60].mxu0 %vm725_vm2, %v3523_v38 }
 0x1d7   : > { %6464 = vmatmul.mubr.msk.bf16.gmra.mrb[28].mxu1 %vm725_vm2, %v7945_v53  ;;  %6765 = vmatprep.mubr.msk.bf16.mxu0 %vm725_vm2, %v8030_v0  ;;  %v9458_v53 = vld [vmem:[#allocation26_spill] sm:$0xff]  ;;  %v9465_v0 = vld [vmem:[#allocation43_spill] sm:$0xff] }
 0x1d8   : > { %6467 = vmatprep.mubr.msk.bf16.mxu1 %vm725_vm2, %v7966_v2  ;;  %v9460_v2 = vld [vmem:[#allocation40_spill] sm:$0xff] }
 0x1de   : > { %6766 = vmatmul.mubr.msk.bf16.vlgmr.msra.gmra.mrb[0].mxu0 %vm725_vm2, %v8064_v50 }
 0x1df   : > { %6468 = vmatmul.mubr.msk.bf16.gmra.mrb[32].mxu1 %vm725_vm2, %v7983_v20  ;;  %6769 = vmatprep.mubr.msk.bf16.mxu0 %vm725_vm2, %v8069_v54  ;;  %v9463_v20 = vld [vmem:[#allocation44_spill] sm:$0xff]  ;;  %v3895_v54 = vrot.slane %v8696_v22, 1 }
 0x1e0   : > { %6471 = vmatprep.mubr.msk.bf16.mxu1 %vm725_vm2, %v8002_v36 }
 0x1e6   : > { %6770 = vmatmul.mubr.msk.bf16.gmra.mrb[4].mxu0 %vm725_vm2, %v8096_v40 }
 0x1e7   : > { %6472 = vmatmul.mubr.msk.bf16.gmra.mrb[36].mxu1 %vm725_vm2, %v8009_v42  ;;  %6773 = vmatprep.mubr.msk.bf16.mxu0 %vm725_vm2, %v8101_v30  ;;  %v3893_v42 = vrot.slane %v8552_v61, 1 }
 0x1e8   : > { %6475 = vmatprep.mubr.msk.bf16.mxu1 %vm725_vm2, %v8033_v5  ;;  %v2386_v5 = vshll.u32 %v9465_v0, 16 }
 0x1ea   : > { %v2388_v50 = vrot.slane %v2386_v5, 1 }
 0x1ee   : > { %6774 = vmatmul.mubr.msk.bf16.gmra.mrb[8].mxu0 %vm725_vm2, %v8128_v19  ;;  %v9462_v19 = vld [vmem:[#allocation42_spill] sm:$0xff] }
 0x1ef   : > { %6476 = vmatmul.mubr.msk.bf16.gmra.mrb[40].mxu1 %vm725_vm2, %v8045_v21  ;;  %6777 = vmatprep.mubr.msk.bf16.mxu0 %vm725_vm2, %v8133_v12  ;;  %v9461_v12 = vld [vmem:[#allocation29_spill] sm:$0xff] }
 0x1f0   : > { %6479 = vmatprep.mubr.msk.bf16.mxu1 %vm725_vm2, %v8072_v62  ;;  %v9466_v21 = vld [vmem:[#allocation41_spill] sm:$0xff]  ;;  %v2389_v62 = vsel %vm464_vm1, %v8693_v28, %v2388_v50 }
 0x1f6   : > { %6778 = vmatmul.mubr.msk.bf16.gmra.mrb[12].mxu0 %vm725_vm2, %v8160_v41  ;;  %v9456_v41 = vld [vmem:[#allocation37_spill] sm:$0xff] }
 0x1f7   : > { %6480 = vmatmul.mubr.msk.bf16.gmra.mrb[44].mxu1 %vm725_vm2, %v8079_v16  ;;  %6781 = vmatprep.mubr.msk.bf16.mxu0 %vm725_vm2, %v8165_v39  ;;  %v9455_v39 = vld [vmem:[#allocation36_spill] sm:$0xff]  ;;  %v3896_v16 = vsel %vm1476_vm3, %v3893_v42, %v3895_v54 }
 0x1f8   : > { %6483 = vmatprep.mubr.msk.bf16.mxu1 %vm725_vm2, %v8104_v1 }
 0x1fe   : > { %6782 = vmatmul.mubr.msk.bf16.gmra.mrb[16].mxu0 %vm725_vm2, %v8195_v6  ;;  %v9451_v6 = vld [vmem:[#allocation34_spill] sm:$0xff] }
 0x1ff   : > { %6484 = vmatmul.mubr.msk.bf16.gmra.mrb[48].mxu1 %vm725_vm2, %v8111_v32  ;;  %6785 = vmatprep.mubr.msk.bf16.mxu0 %vm725_vm2, %v8200_v58  ;;  %v9464_v32 = vld [vmem:[#allocation45_spill] sm:$0xff] }
 0x200   : > { %6487 = vmatprep.mubr.msk.bf16.mxu1 %vm725_vm2, %v8136_v10  ;;  %v3891_v36 = vrot.slane %v9464_v32, 1 }
 0x202   : > { %v3892_v30 = vsel %vm1476_vm3, %v9466_v21, %v3891_v36  ;;  %v3894_v40 = vsel %vm1476_vm3, %v3891_v36, %v3893_v42 }
 0x206   : > { %6786 = vmatmul.mubr.msk.bf16.gmra.mrb[20].mxu0 %vm725_vm2, %v8223_v47 }
 0x207   : > { %6488 = vmatmul.mubr.msk.bf16.gmra.mrb[52].mxu1 %vm725_vm2, %v8143_v56  ;;  %6789 = vmatprep.mubr.msk.bf16.mxu0 %vm725_vm2, %v8228_v43  ;;  %v9459_v56 = vld [vmem:[#allocation39_spill] sm:$0xff] }
 0x208   : > { %6491 = vmatprep.mubr.msk.bf16.mxu1 %vm725_vm2, %v8168_v52 }
 0x20e   : > { %6790 = vmatmul.mubr.msk.bf16.gmra.mrb[24].mxu0 %vm725_vm2, %v8243_v11  ;;  %v9452_v11 = vld [vmem:[#allocation35_spill] sm:$0xff] }
 0x20f   : > { %6492 = vmatmul.mubr.msk.bf16.gmra.mrb[56].mxu1 %vm725_vm2, %v8175_v24  ;;  %6793 = vmatprep.mubr.msk.bf16.mxu0 %vm725_vm2, %v8247_v57  ;;  %v9453_v24 = vld [vmem:[#allocation23_spill] sm:$0xff] }
 0x210   : > { %6495 = vmatprep.mubr.msk.bf16.mxu1 %vm725_vm2, %v8350_v60 }
 0x216   : > { %6794 = vmatmul.mubr.msk.bf16.gmra.mrb[28].mxu0 %vm725_vm2, %v8260_v27 }
 0x217   : > { %6496 = vmatmul.mubr.msk.bf16.gmra.mrb[60].mxu1 %vm725_vm2, %v8362_v44  ;;  %6797 = vmatprep.mubr.msk.bf16.mxu0 %vm725_vm2, %v8270_v45 }
 0x218   : > { %6533 = vmatprep.mubr.msk.bf16.mxu1 %vm725_vm2, %v9435_v29 }
 0x21e   : > { %6798 = vmatmul.mubr.msk.bf16.gmra.mrb[32].mxu0 %vm725_vm2, %v8283_v23 }
 0x21f   : > { %6534 = vmatmul.mubr.msk.bf16.vlgmr.msra.gmra.mrb[32].mxu1 %vm725_vm2, %v9437_v15  ;;  %6801 = vmatprep.mubr.msk.bf16.mxu0 %vm725_vm2, %v9416_v25 }
 0x220   : > { %6537 = vmatprep.mubr.msk.bf16.mxu1 %vm725_vm2, %v9438_v59 }
 0x226   : > { %6802 = vmatmul.mubr.msk.bf16.gmra.mrb[36].mxu0 %vm725_vm2, %v9419_v13 }
 0x227   : > { %6538 = vmatmul.mubr.msk.bf16.gmra.mrb[36].mxu1 %vm725_vm2, %v9440_v8  ;;  %6805 = vmatprep.mubr.msk.bf16.mxu0 %vm725_vm2, %v9420_v7 }
 0x228   : > { %6541 = vmatprep.mubr.msk.bf16.mxu1 %vm725_vm2, %v9441_v26 }
 0x22e   : > { %6806 = vmatmul.mubr.msk.bf16.gmra.mrb[40].mxu0 %vm725_vm2, %v9451_v6 }
 0x22f   : > { %6542 = vmatmul.mubr.msk.bf16.gmra.mrb[40].mxu1 %vm725_vm2, %v9442_v35  ;;  %6809 = vmatprep.mubr.msk.bf16.mxu0 %vm725_vm2, %v9452_v11 }
 0x230   : > { %6545 = vmatprep.mubr.msk.bf16.mxu1 %vm725_vm2, %v9443_v49 }
 0x236   : > { %6810 = vmatmul.mubr.msk.bf16.gmra.mrb[44].mxu0 %vm725_vm2, %v9455_v39 }
 0x237   : > { %6546 = vmatmul.mubr.msk.bf16.gmra.mrb[44].mxu1 %vm725_vm2, %v9453_v24  ;;  %6813 = vmatprep.mubr.msk.bf16.mxu0 %vm725_vm2, %v9456_v41 }
 0x238   : > { %6549 = vmatprep.mubr.msk.bf16.mxu1 %vm725_vm2, %v9454_v37 }
 0x23e   : > { %6814 = vmatmul.mubr.msk.bf16.gmra.mrb[48].mxu0 %vm725_vm2, %v9459_v56 }
 0x23f   : > { %6550 = vmatmul.mubr.msk.bf16.gmra.mrb[48].mxu1 %vm725_vm2, %v9457_v46  ;;  %6817 = vmatprep.mubr.msk.bf16.mxu0 %vm725_vm2, %v9460_v2 }
 0x240   : > { %6553 = vmatprep.mubr.msk.bf16.mxu1 %vm725_vm2, %v9458_v53 }
 0x246   : > { %6818 = vmatmul.mubr.msk.bf16.gmra.mrb[52].mxu0 %vm725_vm2, %v9462_v19 }
 0x247   : > { %6554 = vmatmul.mubr.msk.bf16.gmra.mrb[52].mxu1 %vm725_vm2, %v9448_v55  ;;  %6821 = vmatprep.mubr.msk.bf16.mxu0 %vm725_vm2, %v9463_v20 }
 0x248   : > { %6557 = vmatprep.mubr.msk.bf16.mxu1 %vm725_vm2, %v9461_v12 }
 0x24e   : > { %6822 = vmatmul.mubr.msk.bf16.gmra.mrb[56].mxu0 %vm725_vm2, %v3892_v30 }
 0x24f   : > { %6558 = vmatmul.mubr.msk.bf16.gmra.mrb[56].mxu1 %vm725_vm2, %v8677_v14  ;;  %6825 = vmatprep.mubr.msk.bf16.mxu0 %vm725_vm2, %v3894_v40 }
 0x250   : > { %6561 = vmatprep.mubr.msk.bf16.mxu1 %vm725_vm2, %v8683_v18 }
 0x256   : > { %6826 = vmatmul.mubr.msk.bf16.gmra.mrb[60].mxu0 %vm725_vm2, %v3896_v16 }
 0x257   : > { %6562 = vmatmul.mubr.msk.bf16.gmra.mrb[60].mxu1 %vm725_vm2, %v2389_v62 }
 0x272   : > { %v6437_v1 = vpop.f32.mrb[0].mxu1 }
 0x273   : > { %v2047_v10 = vpop.f32.mrb[1].mxu1 }
 0x274   : > { %v6438_v52 = vpop.f32.mrb[2].mxu1 }
 0x275   : > { %v2050_v58 = vpop.f32.mrb[3].mxu1 }
 0x27a   : > { %v6441_v47 = vpop.f32.mrb[4].mxu1 }
 0x27b   : > { %v2063_v43 = vpop.f32.mrb[5].mxu1 }
 0x27c   : > { %v6442_v60 = vpop.f32.mrb[6].mxu1 }
 0x27d   : > { %v2066_v57 = vpop.f32.mrb[7].mxu1 }
 0x282   : > { %v8847_v27 = vpop.f32.mrb[8].mxu1 }
 0x283   : > { %v8849_v45 = vpop.f32.mrb[9].mxu1 }
 0x284   : > { %v8851_v23 = vpop.f32.mrb[10].mxu1 }
 0x285   : > { %v8853_v15 = vpop.f32.mrb[11].mxu1 }
 0x28a   : > { %v8855_v44 = vpop.f32.mrb[12].mxu1 }
 0x28b   : > { %v8857_v29 = vpop.f32.mrb[13].mxu1 }
 0x28c   : > { %v8859_v34 = vpop.f32.mrb[14].mxu1 }
 0x28d   : > { %v8861_v61 = vpop.f32.mrb[15].mxu1 }
 0x292   : > { %v8863_v25 = vpop.f32.mrb[16].mxu1 }
 0x293   : > { %v8865_v13 = vpop.f32.mrb[17].mxu1 }
 0x294   : > { %v8867_v7 = vpop.f32.mrb[18].mxu1 }
 0x295   : > { %v8869_v14 = vpop.f32.mrb[19].mxu1 }
 0x29a   : > { %v8871_v35 = vpop.f32.mrb[20].mxu1 }
 0x29b   : > { %v8873_v59 = vpop.f32.mrb[21].mxu1 }
 0x29c   : > { %v8875_v8 = vpop.f32.mrb[22].mxu1 }
 0x29d   : > { %v8877_v26 = vpop.f32.mrb[23].mxu1 }
 0x2a2   : > { %v8879_v49 = vpop.f32.mrb[24].mxu1 }
 0x2a3   : > { %v8881_v55 = vpop.f32.mrb[25].mxu1 }
 0x2a4   : > { %v8883_v18 = vpop.f32.mrb[26].mxu1 }
 0x2a5   : > { %v8885_v51 = vpop.f32.mrb[27].mxu1 }
 0x2aa   : > { %v8887_v17 = vpop.f32.mrb[28].mxu1 }
 0x2ab   : > { %v8889_v28 = vpop.f32.mrb[29].mxu1 }
 0x2ac   : > { %v8891_v22 = vpop.f32.mrb[30].mxu1 }
 0x2ad   : > { %v8893_v33 = vpop.f32.mrb[31].mxu1 }
 0x2b1   : > { %v6767_v4 = vpop.f32.mrb[0].mxu0 }
 0x2b2   : > { %v6831_v31 = vadd.f32 %v6767_v4, %v6437_v1  ;;  %v3943_v9 = vpop.f32.mrb[1].mxu0 }
 0x2b3   : > { %v6832_v3 = vadd.f32 %v3943_v9, %v2047_v10  ;;  %v6768_v48 = vpop.f32.mrb[2].mxu0 }
 0x2b4   : > { %v8901_v38 = vadd.f32 %v6831_v31, %v8898_v63  ;;  %v6833_v6 = vadd.f32 %v6768_v48, %v6438_v52  ;;  %v3946_v11 = vpop.f32.mrb[3].mxu0 }
 0x2b5   : > { %v8904_v24 = vadd.f32 %v6832_v3, %v8898_v63  ;;  %v6834_v37 = vadd.f32 %v3946_v11, %v2050_v58 }
 0x2b6   : > { %v5554_v39 = vmul.f32 -1.442695, %v8901_v38  ;;  %v8908_v41 = vadd.f32 %v6833_v6, %v8898_v63 }
 0x2b7   : > { %v5552_v46 = vmul.f32 -1.442695, %v8904_v24  ;;  %v8912_v53 = vadd.f32 %v6834_v37, %v8898_v63 }
 0x2b8   : > { %7418 = vpow2.f32 %v5554_v39  ;;  %v5555_v56 = vmul.f32 -1.442695, %v8908_v41 }
 0x2b9   : > { %7420 = vpow2.f32 %v5552_v46  ;;  %v5553_v2 = vmul.f32 -1.442695, %v8912_v53  ;;  %v6771_v12 = vpop.f32.mrb[4].mxu0 }
 0x2ba   : > { %7422 = vpow2.f32 %v5555_v56  ;;  %v6835_v19 = vadd.f32 %v6771_v12, %v6441_v47  ;;  %v3959_v20 = vpop.f32.mrb[5].mxu0 }
 0x2bb   : > { %7424 = vpow2.f32 %v5553_v2  ;;  %v6836_v32 = vadd.f32 %v3959_v20, %v2063_v43  ;;  %v6772_v36 = vpop.f32.mrb[6].mxu0 }
 0x2bc   : > { %v8917_v42 = vadd.f32 %v6835_v19, %v8898_v63  ;;  %v6837_v0 = vadd.f32 %v6772_v36, %v6442_v60  ;;  %v3962_v5 = vpop.f32.mrb[7].mxu0 }
 0x2bd   : > { %v8920_v21 = vadd.f32 %v6836_v32, %v8898_v63  ;;  %v6838_v30 = vadd.f32 %v3962_v5, %v2066_v57 }
 0x2be   : > { %v5558_v40 = vmul.f32 -1.442695, %v8917_v42  ;;  %v8924_v50 = vadd.f32 %v6837_v0, %v8898_v63 }
 0x2bf   : > { %v5556_v54 = vmul.f32 -1.442695, %v8920_v21  ;;  %v8928_v62 = vadd.f32 %v6838_v30, %v8898_v63 }
 0x2c0   : > { %7426 = vpow2.f32 %v5558_v40  ;;  %v5559_v16 = vmul.f32 -1.442695, %v8924_v50 }
 0x2c1   : > { %7428 = vpow2.f32 %v5556_v54  ;;  %v5557_v1 = vmul.f32 -1.442695, %v8928_v62  ;;  %v6775_v10 = vpop.f32.mrb[8].mxu0 }
 0x2c2   : > { %v7419_v52 = vpop.eup %7418  ;;  %7430 = vpow2.f32 %v5559_v16  ;;  %v6839_v58 = vadd.f32 %v6775_v10, %v8847_v27  ;;  %v3975_v47 = vpop.f32.mrb[9].mxu0 }
 0x2c3   : > { %v7421_v43 = vpop.eup %7420  ;;  %v4526_v60 = vadd.f32 1.0, %v7419_v52  ;;  %7432 = vpow2.f32 %v5557_v1  ;;  %v6840_v57 = vadd.f32 %v3975_v47, %v8849_v45  ;;  %v6776_v4 = vpop.f32.mrb[10].mxu0 }
 0x2c4   : > { %v7423_v31 = vpop.eup %7422  ;;  %v4524_v9 = vadd.f32 1.0, %v7421_v43  ;;  %v8935_v3 = vadd.f32 %v6839_v58, %v8898_v63  ;;  %v6841_v48 = vadd.f32 %v6776_v4, %v8851_v23  ;;  %v3978_v6 = vpop.f32.mrb[11].mxu0 }
 0x2c5   : > { %v7425_v11 = vpop.eup %7424  ;;  %7434 = vrcp.f32 %v4526_v60  ;;  %v4527_v37 = vadd.f32 1.0, %v7423_v31  ;;  %v8939_v27 = vadd.f32 %v6840_v57, %v8898_v63  ;;  %v6842_v39 = vadd.f32 %v3978_v6, %v8853_v15 }
 0x2c6   : > { %7436 = vrcp.f32 %v4524_v9  ;;  %v4525_v46 = vadd.f32 1.0, %v7425_v11  ;;  %v5562_v45 = vmul.f32 -1.442695, %v8935_v3  ;;  %v8944_v56 = vadd.f32 %v6841_v48, %v8898_v63 }
 0x2c7   : > { %7438 = vrcp.f32 %v4527_v37  ;;  %v5560_v2 = vmul.f32 -1.442695, %v8939_v27  ;;  %v8948_v23 = vadd.f32 %v6842_v39, %v8898_v63 }
 0x2c8   : > { %7440 = vrcp.f32 %v4525_v46  ;;  %v5563_v12 = vmul.f32 -1.442695, %v8944_v56 }
 0x2c9   : > { %7442 = vpow2.f32 %v5562_v45  ;;  %v5561_v19 = vmul.f32 -1.442695, %v8948_v23  ;;  %v6779_v15 = vpop.f32.mrb[12].mxu0 }
 0x2ca   : > { %v7427_v20 = vpop.eup %7426  ;;  %7444 = vpow2.f32 %v5560_v2  ;;  %v6843_v32 = vadd.f32 %v6779_v15, %v8855_v44  ;;  %v3991_v36 = vpop.f32.mrb[13].mxu0 }
 0x2cb   : > { %v7429_v0 = vpop.eup %7428  ;;  %v4530_v5 = vadd.f32 1.0, %v7427_v20  ;;  %7446 = vpow2.f32 %v5563_v12  ;;  %v6844_v30 = vadd.f32 %v3991_v36, %v8857_v29  ;;  %v6780_v40 = vpop.f32.mrb[14].mxu0 }
 0x2cc   : > { %v7431_v54 = vpop.eup %7430  ;;  %v4528_v16 = vadd.f32 1.0, %v7429_v0  ;;  %7448 = vpow2.f32 %v5561_v19  ;;  %v8955_v1 = vadd.f32 %v6843_v32, %v8898_v63  ;;  %v6845_v10 = vadd.f32 %v6780_v40, %v8859_v34  ;;  %v3994_v52 = vpop.f32.mrb[15].mxu0 }
 0x2cd   : > { %v7433_v58 = vpop.eup %7432  ;;  %7450 = vrcp.f32 %v4530_v5  ;;  %v4531_v44 = vadd.f32 1.0, %v7431_v54  ;;  %v8959_v47 = vadd.f32 %v6844_v30, %v8898_v63  ;;  %v6846_v43 = vadd.f32 %v3994_v52, %v8861_v61 }
 0x2ce   : > { %7452 = vrcp.f32 %v4528_v16  ;;  %v4529_v29 = vadd.f32 1.0, %v7433_v58  ;;  %v5566_v60 = vmul.f32 -1.442695, %v8955_v1  ;;  %v8964_v57 = vadd.f32 %v6845_v10, %v8898_v63 }
 0x2cf   : > { %v7435_v4 = vpop.eup %7434  ;;  %7454 = vrcp.f32 %v4531_v44  ;;  %v5564_v34 = vmul.f32 -1.442695, %v8959_v47  ;;  %v8968_v31 = vadd.f32 %v6846_v43, %v8898_v63 }
 0x2d0   : > { %v7437_v9 = vpop.eup %7436  ;;  %7456 = vrcp.f32 %v4529_v29  ;;  %v5567_v48 = vmul.f32 -1.442695, %v8964_v57  ;;  %v4718_v39 = vmul.f32 %v7435_v4, %v8901_v38 }
 0x2d1   : > { %v7439_v61 = vpop.eup %7438  ;;  %7458 = vpow2.f32 %v5566_v60  ;;  %v5565_v6 = vmul.f32 -1.442695, %v8968_v31  ;;  %v6783_v11 = vpop.f32.mrb[16].mxu0  ;;  %v4716_v19 = vmul.f32 %v7437_v9, %v8904_v24 }
 0x2d2   : > { %v7441_v37 = vpop.eup %7440  ;;  %v4719_v46 = vmul.f32 %v7439_v61, %v8908_v41  ;;  %7460 = vpow2.f32 %v5564_v34  ;;  %v6847_v45 = vadd.f32 %v6783_v11, %v8863_v25  ;;  %v4007_v2 = vpop.f32.mrb[17].mxu0 }
 0x2d3   : > { %v7443_v12 = vpop.eup %7442  ;;  %v4717_v15 = vmul.f32 %v7441_v37, %v8912_v53  ;;  %7462 = vpow2.f32 %v5567_v48  ;;  %v6848_v38 = vadd.f32 %v4007_v2, %v8865_v13  ;;  %v6784_v20 = vpop.f32.mrb[18].mxu0 }
 0x2d4   : > { %v7445_v41 = vpop.eup %7444  ;;  %v5755_v32 = vpack.c.bf16 %v4719_v46, %v4718_v39  ;;  %v4534_v36 = vadd.f32 1.0, %v7443_v12  ;;  %7464 = vpow2.f32 %v5565_v6  ;;  %v8985_v25 = vadd.f32 %v6847_v45, %v8898_v63  ;;  %v4010_v24 = vpop.f32.mrb[19].mxu0 }
 0x2d5   : > { %v7447_v0 = vpop.eup %7446  ;;  %v5750_v5 = vpack.c.bf16 %v4717_v15, %v4716_v19  ;;  %v4532_v30 = vadd.f32 1.0, %v7445_v41  ;;  %v8988_v40 = vadd.f32 %v6848_v38, %v8898_v63  ;;  %v6849_v53 = vadd.f32 %v6784_v20, %v8867_v7 }
 0x2d6   : > { %v7449_v54 = vpop.eup %7448  ;;  %5907 = vst [vmem:[%s8980_s21 + $0x8] sm:$0xff] %v5755_v32   ;;  %7466 = vrcp.f32 %v4534_v36  ;;  %v4535_v13 = vadd.f32 1.0, %v7447_v0  ;;  %v5570_v16 = vmul.f32 -1.442695, %v8985_v25  ;;  %v6850_v10 = vadd.f32 %v4010_v24, %v8869_v14 }
 0x2d7   : > { %v7451_v52 = vpop.eup %7450  ;;  %5751 = vst [vmem:[%s8980_s21] sm:$0xff] %v5750_v5   ;;  %7468 = vrcp.f32 %v4532_v30  ;;  %v4533_v58 = vadd.f32 1.0, %v7449_v54  ;;  %v5568_v44 = vmul.f32 -1.442695, %v8988_v40  ;;  %v8997_v43 = vadd.f32 %v6849_v53, %v8898_v63 }
 0x2d8   : > { %v7453_v29 = vpop.eup %7452  ;;  %7470 = vrcp.f32 %v4535_v13  ;;  %v9000_v7 = vadd.f32 %v6850_v10, %v8898_v63  ;;  %v4722_v4 = vmul.f32 %v7451_v52, %v8917_v42 }
 0x2d9   : > { %v7455_v60 = vpop.eup %7454  ;;  %7472 = vrcp.f32 %v4533_v58  ;;  %v5571_v14 = vmul.f32 -1.442695, %v8997_v43  ;;  %v6787_v34 = vpop.f32.mrb[20].mxu0  ;;  %v4720_v39 = vmul.f32 %v7453_v29, %v8920_v21 }
 0x2da   : > { %v7457_v9 = vpop.eup %7456  ;;  %v4723_v48 = vmul.f32 %v7455_v60, %v8924_v50  ;;  %7474 = vpow2.f32 %v5570_v16  ;;  %v5569_v61 = vmul.f32 -1.442695, %v9000_v7  ;;  %v6851_v6 = vadd.f32 %v6787_v34, %v8871_v35  ;;  %v4023_v11 = vpop.f32.mrb[21].mxu0 }
 0x2db   : > { %v7459_v37 = vpop.eup %7458  ;;  %v4721_v46 = vmul.f32 %v7457_v9, %v8928_v62  ;;  %7476 = vpow2.f32 %v5568_v44  ;;  %v6852_v42 = vadd.f32 %v4023_v11, %v8873_v59  ;;  %v6788_v45 = vpop.f32.mrb[22].mxu0 }
 0x2dc   : > { %v7461_v2 = vpop.eup %7460  ;;  %v5765_v12 = vpack.c.bf16 %v4723_v48, %v4722_v4  ;;  %v4538_v50 = vadd.f32 1.0, %v7459_v37  ;;  %7478 = vpow2.f32 %v5571_v14  ;;  %v9011_v19 = vadd.f32 %v6851_v6, %v8898_v63  ;;  %v4026_v35 = vpop.f32.mrb[23].mxu0 }
 0x2dd   : > { %v7463_v15 = vpop.eup %7462  ;;  %v5760_v38 = vpack.c.bf16 %v4721_v46, %v4720_v39  ;;  %v4536_v20 = vadd.f32 1.0, %v7461_v2  ;;  %7480 = vpow2.f32 %v5569_v61  ;;  %v9014_v21 = vadd.f32 %v6852_v42, %v8898_v63 }
 0x2de   : > { %v7465_v62 = vpop.eup %7464  ;;  %5909 = vst [vmem:[%s8980_s21 + $0x18] sm:$0xff] %v5765_v12   ;;  %7482 = vrcp.f32 %v4538_v50  ;;  %v4539_v59 = vadd.f32 1.0, %v7463_v15  ;;  %v5574_v41 = vmul.f32 -1.442695, %v9011_v19  ;;  %v6853_v32 = vadd.f32 %v6788_v45, %v8875_v8 }
 0x2df   : > { %5908 = vst [vmem:[%s8980_s21 + $0x10] sm:$0xff] %v5760_v38   ;;  %7484 = vrcp.f32 %v4536_v20  ;;  %v4537_v36 = vadd.f32 1.0, %v7465_v62  ;;  %v5572_v24 = vmul.f32 -1.442695, %v9014_v21  ;;  %v6854_v0 = vadd.f32 %v4026_v35, %v8877_v26 }
 0x2e0   : > { %v7467_v5 = vpop.eup %7466  ;;  %7486 = vrcp.f32 %v4539_v59  ;;  %v9023_v30 = vadd.f32 %v6853_v32, %v8898_v63 }
 0x2e1   : > { %v7469_v53 = vpop.eup %7468  ;;  %v4726_v54 = vmul.f32 %v7467_v5, %v8935_v3  ;;  %7488 = vrcp.f32 %v4537_v36  ;;  %v9027_v13 = vadd.f32 %v6854_v0, %v8898_v63  ;;  %v6791_v8 = vpop.f32.mrb[24].mxu0 }
 0x2e2   : > { %v7471_v16 = vpop.eup %7470  ;;  %v4724_v10 = vmul.f32 %v7469_v53, %v8939_v27  ;;  %7490 = vpow2.f32 %v5574_v41  ;;  %v5575_v52 = vmul.f32 -1.442695, %v9023_v30  ;;  %v6855_v26 = vadd.f32 %v6791_v8, %v8879_v49  ;;  %v4039_v58 = vpop.f32.mrb[25].mxu0 }
 0x2e3   : > { %v7473_v44 = vpop.eup %7472  ;;  %v4727_v29 = vmul.f32 %v7471_v16, %v8944_v56  ;;  %7492 = vpow2.f32 %v5572_v24  ;;  %v5573_v3 = vmul.f32 -1.442695, %v9027_v13  ;;  %v6856_v60 = vadd.f32 %v4039_v58, %v8881_v55  ;;  %v6792_v4 = vpop.f32.mrb[26].mxu0 }
 0x2e4   : > { %v7475_v14 = vpop.eup %7474  ;;  %v4725_v34 = vmul.f32 %v7473_v44, %v8948_v23  ;;  %7494 = vpow2.f32 %v5575_v52  ;;  %v9037_v27 = vadd.f32 %v6855_v26, %v8898_v63  ;;  %v6857_v49 = vadd.f32 %v6792_v4, %v8883_v18  ;;  %v4042_v9 = vpop.f32.mrb[27].mxu0 }
 0x2e5   : > { %v7477_v48 = vpop.eup %7476  ;;  %v5775_v56 = vpack.c.bf16 %v4727_v29, %v4726_v54  ;;  %v4542_v61 = vadd.f32 1.0, %v7475_v14  ;;  %7496 = vpow2.f32 %v5573_v3  ;;  %v9041_v6 = vadd.f32 %v6856_v60, %v8898_v63 }
 0x2e6   : > { %v7479_v55 = vpop.eup %7478  ;;  %v5770_v11 = vpack.c.bf16 %v4725_v34, %v4724_v10  ;;  %v4540_v37 = vadd.f32 1.0, %v7477_v48  ;;  %v9044_v23 = vadd.f32 %v6857_v49, %v8898_v63  ;;  %v5578_v18 = vmul.f32 -1.442695, %v9037_v27 }
 0x2e7   : > { %v7481_v39 = vpop.eup %7480  ;;  %5911 = vst [vmem:[%s8980_s21 + $0x28] sm:$0xff] %v5775_v56   ;;  %7498 = vrcp.f32 %v4542_v61  ;;  %v4543_v46 = vadd.f32 1.0, %v7479_v55  ;;  %v6858_v42 = vadd.f32 %v4042_v9, %v8885_v51  ;;  %v5576_v12 = vmul.f32 -1.442695, %v9041_v6 }
 0x2e8   : > { %v7483_v45 = vpop.eup %7482  ;;  %5910 = vst [vmem:[%s8980_s21 + $0x20] sm:$0xff] %v5770_v11   ;;  %7500 = vrcp.f32 %v4540_v37  ;;  %v4541_v2 = vadd.f32 1.0, %v7481_v39  ;;  %v5579_v35 = vmul.f32 -1.442695, %v9044_v23 }
 0x2e9   : > { %v7485_v50 = vpop.eup %7484  ;;  %7502 = vrcp.f32 %v4543_v46  ;;  %v9053_v15 = vadd.f32 %v6858_v42, %v8898_v63  ;;  %v6795_v38 = vpop.f32.mrb[28].mxu0  ;;  %v4730_v62 = vmul.f32 %v7483_v45, %v8955_v1 }
 0x2ea   : > { %v7487_v20 = vpop.eup %7486  ;;  %v4728_v59 = vmul.f32 %v7485_v50, %v8959_v47  ;;  %7504 = vrcp.f32 %v4541_v2  ;;  %v6859_v51 = vadd.f32 %v6795_v38, %v8887_v17  ;;  %v4055_v41 = vpop.f32.mrb[29].mxu0 }
 0x2eb   : > { %v7489_v32 = vpop.eup %7488  ;;  %v4731_v36 = vmul.f32 %v7487_v20, %v8964_v57  ;;  %7506 = vpow2.f32 %v5578_v18  ;;  %v5577_v24 = vmul.f32 -1.442695, %v9053_v15  ;;  %v6860_v0 = vadd.f32 %v4055_v41, %v8889_v28  ;;  %v6796_v5 = vpop.f32.mrb[30].mxu0 }
 0x2ec   : > { %v7491_v53 = vpop.eup %7490  ;;  %v4729_v54 = vmul.f32 %v7489_v32, %v8968_v31  ;;  %7508 = vpow2.f32 %v5576_v12  ;;  %v9063_v1 = vadd.f32 %v6859_v51, %v8898_v63  ;;  %v6861_v17 = vadd.f32 %v6796_v5, %v8891_v22  ;;  %v4058_v47 = vpop.f32.mrb[31].mxu0 }
 0x2ed   : > { %v7493_v8 = vpop.eup %7492  ;;  %v5785_v57 = vpack.c.bf16 %v4731_v36, %v4730_v62  ;;  %v4546_v16 = vadd.f32 1.0, %v7491_v53  ;;  %7510 = vpow2.f32 %v5579_v35  ;;  %v9067_v10 = vadd.f32 %v6860_v0, %v8898_v63 }
 0x2ee   : > { %v7495_v28 = vpop.eup %7494  ;;  %v5780_v52 = vpack.c.bf16 %v4729_v54, %v4728_v59  ;;  %v4544_v26 = vadd.f32 1.0, %v7493_v8  ;;  %7512 = vpow2.f32 %v5577_v24  ;;  %v5582_v44 = vmul.f32 -1.442695, %v9063_v1 }
 0x2ef   : > { %v7497_v31 = vpop.eup %7496  ;;  %5913 = vst [vmem:[%s8980_s21 + $0x38] sm:$0xff] %v5785_v57   ;;  %7514 = vrcp.f32 %v4546_v16  ;;  %v4547_v58 = vadd.f32 1.0, %v7495_v28  ;;  %v9072_v22 = vadd.f32 %v6861_v17, %v8898_v63  ;;  %v5580_v60 = vmul.f32 -1.442695, %v9067_v10 }
 0x2f0   : > { %5912 = vst [vmem:[%s8980_s21 + $0x30] sm:$0xff] %v5780_v52   ;;  %7516 = vrcp.f32 %v4544_v26  ;;  %v4545_v3 = vadd.f32 1.0, %v7497_v31  ;;  %v6862_v4 = vadd.f32 %v4058_v47, %v8893_v33 }
 0x2f1   : > { %v7499_v34 = vpop.eup %7498  ;;  %7518 = vrcp.f32 %v4547_v58  ;;  %v5583_v49 = vmul.f32 -1.442695, %v9072_v22  ;;  %v6799_v9 = vpop.f32.mrb[32].mxu0 }
 0x2f2   : > { %v6535_v29 = vpop.f32.mrb[32].mxu1  ;;  %v7501_v56 = vpop.eup %7500  ;;  %7520 = vrcp.f32 %v4545_v3  ;;  %v9079_v61 = vadd.f32 %v6862_v4, %v8898_v63  ;;  %v4734_v46 = vmul.f32 %v7499_v34, %v8985_v25 }
 0x2f3   : > { %v2564_v14 = vpop.f32.mrb[33].mxu1  ;;  %v6863_v55 = vadd.f32 %v6799_v9, %v6535_v29  ;;  %v4071_v11 = vpop.f32.mrb[33].mxu0  ;;  %v4732_v33 = vmul.f32 %v7501_v56, %v8988_v40  ;;  %7522 = vpow2.f32 %v5582_v44 }
 0x2f4   : > { %v6536_v48 = vpop.f32.mrb[34].mxu1  ;;  %v7503_v39 = vpop.eup %7502  ;;  %v6864_v18 = vadd.f32 %v4071_v11, %v2564_v14  ;;  %7524 = vpow2.f32 %v5580_v60  ;;  %v5581_v12 = vmul.f32 -1.442695, %v9079_v61 }
 0x2f5   : > { %v2567_v37 = vpop.f32.mrb[35].mxu1  ;;  %v6800_v42 = vpop.f32.mrb[34].mxu0  ;;  %v4735_v2 = vmul.f32 %v7503_v39, %v8997_v43  ;;  %v9086_v50 = vadd.f32 %v6863_v55, %v8898_v63  ;;  %7526 = vpow2.f32 %v5583_v49 }
 0x2f6   : > { %v7505_v45 = vpop.eup %7504  ;;  %v4074_v35 = vpop.f32.mrb[35].mxu0  ;;  %v9090_v25 = vadd.f32 %v6864_v18, %v8898_v63  ;;  %v6865_v40 = vadd.f32 %v6800_v42, %v6536_v48  ;;  %7528 = vpow2.f32 %v5581_v12 }
 0x2f7   : > { %v7507_v38 = vpop.eup %7506  ;;  %v4733_v20 = vmul.f32 %v7505_v45, %v9000_v7  ;;  %v5795_v59 = vpack.c.bf16 %v4735_v2, %v4734_v46  ;;  %v5586_v5 = vmul.f32 -1.442695, %v9086_v50  ;;  %v6866_v53 = vadd.f32 %v4074_v35, %v2567_v37 }
 0x2f8   : > { %v7509_v62 = vpop.eup %7508  ;;  %v4550_v43 = vadd.f32 1.0, %v7507_v38  ;;  %v9093_v36 = vadd.f32 %v6865_v40, %v8898_v63  ;;  %v5584_v8 = vmul.f32 -1.442695, %v9090_v25 }
 0x2f9   : > { %v7511_v51 = vpop.eup %7510  ;;  %v5790_v41 = vpack.c.bf16 %v4733_v20, %v4732_v33  ;;  %v4548_v32 = vadd.f32 1.0, %v7509_v62  ;;  %5915 = vst [vmem:[%s8980_s21 + $0x48] sm:$0xff] %v5795_v59   ;;  %v6803_v57 = vpop.f32.mrb[36].mxu0  ;;  %v9101_v26 = vadd.f32 %v6866_v53, %v8898_v63 }
 0x2fa   : > { %v6539_v24 = vpop.f32.mrb[36].mxu1  ;;  %v7513_v0 = vpop.eup %7512  ;;  %7530 = vrcp.f32 %v4550_v43  ;;  %v4551_v7 = vadd.f32 1.0, %v7511_v51  ;;  %v5587_v52 = vmul.f32 -1.442695, %v9093_v36 }
 0x2fb   : > { %v2580_v54 = vpop.f32.mrb[37].mxu1  ;;  %v7515_v17 = vpop.eup %7514  ;;  %5914 = vst [vmem:[%s8980_s21 + $0x40] sm:$0xff] %v5790_v41   ;;  %7532 = vrcp.f32 %v4548_v32  ;;  %v4549_v47 = vadd.f32 1.0, %v7513_v0  ;;  %v6867_v31 = vadd.f32 %v6803_v57, %v6539_v24  ;;  %v5585_v9 = vmul.f32 -1.442695, %v9101_v26 }
 0x2fc   : > { %v6540_v16 = vpop.f32.mrb[38].mxu1  ;;  %v7517_v28 = vpop.eup %7516  ;;  %7534 = vrcp.f32 %v4551_v7  ;;  %v4738_v3 = vmul.f32 %v7515_v17, %v9011_v19 }
 0x2fd   : > { %v4087_v58 = vpop.f32.mrb[37].mxu0  ;;  %v2583_v44 = vpop.f32.mrb[39].mxu1  ;;  %v4736_v60 = vmul.f32 %v7517_v28, %v9014_v21  ;;  %7536 = vrcp.f32 %v4549_v47  ;;  %v9108_v48 = vadd.f32 %v6867_v31, %v8898_v63 }
 0x2fe   : > { %v7519_v29 = vpop.eup %7518  ;;  %v6868_v4 = vadd.f32 %v4087_v58, %v2580_v54  ;;  %v6804_v14 = vpop.f32.mrb[38].mxu0  ;;  %7538 = vpow2.f32 %v5586_v5 }
 0x2ff   : > { %v7521_v34 = vpop.eup %7520  ;;  %v4739_v49 = vmul.f32 %v7519_v29, %v9023_v30  ;;  %v4090_v56 = vpop.f32.mrb[39].mxu0  ;;  %7540 = vpow2.f32 %v5584_v8  ;;  %v6869_v21 = vadd.f32 %v6804_v14, %v6540_v16  ;;  %v5590_v42 = vmul.f32 -1.442695, %v9108_v48 }
 0x300   : > { %v7523_v55 = vpop.eup %7522  ;;  %v4737_v11 = vmul.f32 %v7521_v34, %v9027_v13  ;;  %v9112_v19 = vadd.f32 %v6868_v4, %v8898_v63  ;;  %7542 = vpow2.f32 %v5587_v52  ;;  %v6870_v35 = vadd.f32 %v4090_v56, %v2583_v44 }
 0x301   : > { %v7525_v37 = vpop.eup %7524  ;;  %v5805_v39 = vpack.c.bf16 %v4739_v49, %v4738_v3  ;;  %v4554_v30 = vadd.f32 1.0, %v7523_v55  ;;  %7544 = vpow2.f32 %v5585_v9  ;;  %v9117_v12 = vadd.f32 %v6869_v21, %v8898_v63  ;;  %v6807_v62 = vpop.f32.mrb[40].mxu0 }
 0x302   : > { %v7527_v46 = vpop.eup %7526  ;;  %v5800_v33 = vpack.c.bf16 %v4737_v11, %v4736_v60  ;;  %v4552_v18 = vadd.f32 1.0, %v7525_v37  ;;  %v6543_v45 = vpop.f32.mrb[40].mxu1  ;;  %v5588_v40 = vmul.f32 -1.442695, %v9112_v19  ;;  %v9123_v41 = vadd.f32 %v6870_v35, %v8898_v63 }
 0x303   : > { %v7529_v2 = vpop.eup %7528  ;;  %5917 = vst [vmem:[%s8980_s21 + $0x58] sm:$0xff] %v5805_v39   ;;  %7546 = vrcp.f32 %v4554_v30  ;;  %v4555_v13 = vadd.f32 1.0, %v7527_v46  ;;  %v2596_v38 = vpop.f32.mrb[41].mxu1  ;;  %v5591_v51 = vmul.f32 -1.442695, %v9117_v12  ;;  %v6871_v32 = vadd.f32 %v6807_v62, %v6543_v45 }
 0x304   : > { %5916 = vst [vmem:[%s8980_s21 + $0x50] sm:$0xff] %v5800_v33   ;;  %7548 = vrcp.f32 %v4552_v18  ;;  %v4553_v20 = vadd.f32 1.0, %v7529_v2  ;;  %v6544_v59 = vpop.f32.mrb[42].mxu1  ;;  %v7531_v43 = vpop.eup %7530  ;;  %v5589_v8 = vmul.f32 -1.442695, %v9123_v41 }
 0x305   : > { %7550 = vrcp.f32 %v4555_v13  ;;  %v4103_v24 = vpop.f32.mrb[41].mxu0  ;;  %v2599_v0 = vpop.f32.mrb[43].mxu1  ;;  %v4742_v5 = vmul.f32 %v7531_v43, %v9037_v27  ;;  %v9129_v57 = vadd.f32 %v6871_v32, %v8898_v63 }
 0x306   : > { %v7533_v7 = vpop.eup %7532  ;;  %7552 = vrcp.f32 %v4553_v20  ;;  %v6872_v53 = vadd.f32 %v4103_v24, %v2596_v38  ;;  %v6808_v54 = vpop.f32.mrb[42].mxu0 }
 0x307   : > { %v7535_v17 = vpop.eup %7534  ;;  %v4740_v47 = vmul.f32 %v7533_v7, %v9041_v6  ;;  %7554 = vpow2.f32 %v5590_v42  ;;  %v4106_v16 = vpop.f32.mrb[43].mxu0  ;;  %v6873_v27 = vadd.f32 %v6808_v54, %v6544_v59  ;;  %v5594_v6 = vmul.f32 -1.442695, %v9129_v57 }
 0x308   : > { %v7537_v28 = vpop.eup %7536  ;;  %v4743_v52 = vmul.f32 %v7535_v17, %v9044_v23  ;;  %7556 = vpow2.f32 %v5588_v40  ;;  %v9133_v31 = vadd.f32 %v6872_v53, %v8898_v63  ;;  %v6874_v29 = vadd.f32 %v4106_v16, %v2599_v0 }
 0x309   : > { %v7539_v58 = vpop.eup %7538  ;;  %v4741_v44 = vmul.f32 %v7537_v28, %v9053_v15  ;;  %7558 = vpow2.f32 %v5591_v51  ;;  %v9138_v9 = vadd.f32 %v6873_v27, %v8898_v63  ;;  %v6811_v37 = vpop.f32.mrb[44].mxu0 }
 0x30a   : > { %v7541_v3 = vpop.eup %7540  ;;  %v5815_v60 = vpack.c.bf16 %v4743_v52, %v4742_v5  ;;  %v4558_v4 = vadd.f32 1.0, %v7539_v58  ;;  %7560 = vpow2.f32 %v5589_v8  ;;  %v6547_v14 = vpop.f32.mrb[44].mxu1  ;;  %v5592_v11 = vmul.f32 -1.442695, %v9133_v31 }
 0x30b   : > { %v7543_v23 = vpop.eup %7542  ;;  %v5810_v34 = vpack.c.bf16 %v4741_v44, %v4740_v47  ;;  %v4556_v49 = vadd.f32 1.0, %v7541_v3  ;;  %7562 = vpow2.f32 %v5594_v6  ;;  %v2612_v56 = vpop.f32.mrb[45].mxu1  ;;  %v9143_v21 = vadd.f32 %v6874_v29, %v8898_v63 }
 0x30c   : > { %v7545_v15 = vpop.eup %7544  ;;  %5919 = vst [vmem:[%s8980_s21 + $0x68] sm:$0xff] %v5815_v60   ;;  %7564 = vrcp.f32 %v4558_v4  ;;  %v4559_v55 = vadd.f32 1.0, %v7543_v23  ;;  %v6548_v39 = vpop.f32.mrb[46].mxu1  ;;  %v5595_v33 = vmul.f32 -1.442695, %v9138_v9  ;;  %v6875_v18 = vadd.f32 %v6811_v37, %v6547_v14 }
 0x30d   : > { %v7547_v30 = vpop.eup %7546  ;;  %5918 = vst [vmem:[%s8980_s21 + $0x60] sm:$0xff] %v5810_v34   ;;  %7566 = vrcp.f32 %v4556_v49  ;;  %v4557_v46 = vadd.f32 1.0, %v7545_v15  ;;  %v4119_v42 = vpop.f32.mrb[45].mxu0  ;;  %v5593_v13 = vmul.f32 -1.442695, %v9143_v21 }
 0x30e   : > { %v2615_v45 = vpop.f32.mrb[47].mxu1  ;;  %v7549_v2 = vpop.eup %7548  ;;  %7568 = vrcp.f32 %v4559_v55  ;;  %v6876_v35 = vadd.f32 %v4119_v42, %v2612_v56  ;;  %v4746_v40 = vmul.f32 %v7547_v30, %v9063_v1  ;;  %v9150_v62 = vadd.f32 %v6875_v18, %v8898_v63 }
 0x30f   : > { %v6812_v38 = vpop.f32.mrb[46].mxu0  ;;  %v7551_v20 = vpop.eup %7550  ;;  %7570 = vrcp.f32 %v4557_v46  ;;  %v4744_v32 = vmul.f32 %v7549_v2, %v9067_v10 }
 0x310   : > { %v6877_v59 = vadd.f32 %v6812_v38, %v6548_v39  ;;  %v4122_v43 = vpop.f32.mrb[47].mxu0  ;;  %v7553_v51 = vpop.eup %7552  ;;  %v4747_v24 = vmul.f32 %v7551_v20, %v9072_v22  ;;  %7572 = vpow2.f32 %v5592_v11  ;;  %v5598_v1 = vmul.f32 -1.442695, %v9150_v62 }
 0x311   : > { %v6878_v0 = vadd.f32 %v4122_v43, %v2615_v45  ;;  %v7555_v7 = vpop.eup %7554  ;;  %v4745_v5 = vmul.f32 %v7553_v51, %v9079_v61  ;;  %7574 = vpow2.f32 %v5595_v33  ;;  %v9157_v53 = vadd.f32 %v6876_v35, %v8898_v63  ;;  %v6815_v44 = vpop.f32.mrb[48].mxu0 }
 0x312   : > { %v7557_v54 = vpop.eup %7556  ;;  %v5825_v17 = vpack.c.bf16 %v4747_v24, %v4746_v40  ;;  %v4562_v47 = vadd.f32 1.0, %v7555_v7  ;;  %7576 = vpow2.f32 %v5593_v13  ;;  %v9160_v10 = vadd.f32 %v6877_v59, %v8898_v63  ;;  %v6551_v22 = vpop.f32.mrb[48].mxu1 }
 0x313   : > { %v7559_v8 = vpop.eup %7558  ;;  %v5820_v16 = vpack.c.bf16 %v4745_v5, %v4744_v32  ;;  %v4560_v28 = vadd.f32 1.0, %v7557_v54  ;;  %7578 = vpow2.f32 %v5598_v1  ;;  %v2628_v61 = vpop.f32.mrb[49].mxu1  ;;  %v9164_v58 = vadd.f32 %v6878_v0, %v8898_v63 }
 0x314   : > { %v7561_v52 = vpop.eup %7560  ;;  %5921 = vst [vmem:[%s8980_s21 + $0x78] sm:$0xff] %v5825_v17   ;;  %7580 = vrcp.f32 %v4562_v47  ;;  %v4563_v27 = vadd.f32 1.0, %v7559_v8  ;;  %v6552_v6 = vpop.f32.mrb[50].mxu1  ;;  %v5596_v60 = vmul.f32 -1.442695, %v9157_v53  ;;  %v6879_v4 = vadd.f32 %v6815_v44, %v6551_v22 }
 0x315   : > { %v7563_v29 = vpop.eup %7562  ;;  %5920 = vst [vmem:[%s8980_s21 + $0x70] sm:$0xff] %v5820_v16   ;;  %7582 = vrcp.f32 %v4560_v28  ;;  %v4561_v3 = vadd.f32 1.0, %v7561_v52  ;;  %v4135_v14 = vpop.f32.mrb[49].mxu0  ;;  %v5599_v56 = vmul.f32 -1.442695, %v9160_v10 }
 0x316   : > { %v2631_v23 = vpop.f32.mrb[51].mxu1  ;;  %v7565_v34 = vpop.eup %7564  ;;  %7584 = vrcp.f32 %v4563_v27  ;;  %v4566_v49 = vadd.f32 1.0, %v7563_v29  ;;  %v6880_v15 = vadd.f32 %v4135_v14, %v2628_v61  ;;  %v5597_v37 = vmul.f32 -1.442695, %v9164_v58  ;;  %v9196_v29 = vld [vmem:[%s9298_s2] ss:$0 sm:$0xff] }
 0x317   : > { %v6816_v55 = vpop.f32.mrb[50].mxu0  ;;  %v7567_v11 = vpop.eup %7566  ;;  %7586 = vrcp.f32 %v4561_v3  ;;  %v9171_v39 = vadd.f32 %v6879_v4, %v8898_v63  ;;  %v4750_v18 = vmul.f32 %v7565_v34, %v9086_v50 }
 0x318   : > { %v6881_v30 = vadd.f32 %v6816_v55, %v6552_v6  ;;  %v4138_v46 = vpop.f32.mrb[51].mxu0  ;;  %v7569_v33 = vpop.eup %7568  ;;  %7588 = vrcp.f32 %v4566_v49  ;;  %v9175_v42 = vadd.f32 %v6880_v15, %v8898_v63  ;;  %v4748_v40 = vmul.f32 %v7567_v11, %v9090_v25 }
 0x319   : > { %v6882_v45 = vadd.f32 %v4138_v46, %v2631_v23  ;;  %v7571_v2 = vpop.eup %7570  ;;  %v4751_v13 = vmul.f32 %v7569_v33, %v9093_v36  ;;  %7590 = vpow2.f32 %v5596_v60  ;;  %v5602_v35 = vmul.f32 -1.442695, %v9171_v39  ;;  %v6819_v1 = vpop.f32.mrb[52].mxu0 }
 0x31a   : > { %v9180_v38 = vadd.f32 %v6881_v30, %v8898_v63  ;;  %v7573_v20 = vpop.eup %7572  ;;  %v4749_v59 = vmul.f32 %v7571_v2, %v9101_v26  ;;  %7592 = vpow2.f32 %v5599_v56  ;;  %v6555_v43 = vpop.f32.mrb[52].mxu1  ;;  %v5600_v25 = vmul.f32 -1.442695, %v9175_v42 }
 0x31b   : > { %v9185_v50 = vadd.f32 %v6882_v45, %v8898_v63  ;;  %v7575_v51 = vpop.eup %7574  ;;  %v5835_v32 = vpack.c.bf16 %v4751_v13, %v4750_v18  ;;  %v4564_v36 = vadd.f32 1.0, %v7573_v20  ;;  %7594 = vpow2.f32 %v5597_v37  ;;  %v2644_v24 = vpop.f32.mrb[53].mxu1 }
 0x31c   : > { %v7577_v0 = vpop.eup %7576  ;;  %v5830_v7 = vpack.c.bf16 %v4749_v59, %v4748_v40  ;;  %v4567_v5 = vadd.f32 1.0, %v7575_v51  ;;  %7596 = vpow2.f32 %v5602_v35  ;;  %v6556_v26 = vpop.f32.mrb[54].mxu1  ;;  %v5603_v17 = vmul.f32 -1.442695, %v9180_v38 }
 0x31d   : > { %v7579_v54 = vpop.eup %7578  ;;  %5923 = vst [vmem:[%s8980_s21 + $0x88] sm:$0xff] %v5835_v32   ;;  %7598 = vrcp.f32 %v4564_v36  ;;  %v4565_v63 = vadd.f32 1.0, %v7577_v0  ;;  %v6883_v47 = vadd.f32 %v6819_v1, %v6555_v43  ;;  %v4151_v22 = vpop.f32.mrb[53].mxu0  ;;  %v5601_v61 = vmul.f32 -1.442695, %v9185_v50 }
 0x31e   : > { %v2647_v8 = vpop.f32.mrb[55].mxu1  ;;  %v7581_v16 = vpop.eup %7580  ;;  %5922 = vst [vmem:[%s8980_s21 + $0x80] sm:$0xff] %v5830_v7   ;;  %7600 = vrcp.f32 %v4567_v5  ;;  %v4570_v28 = vadd.f32 1.0, %v7579_v54  ;;  %v6884_v52 = vadd.f32 %v4151_v22, %v2644_v24 }
 0x31f   : > { %v6820_v27 = vpop.f32.mrb[54].mxu0  ;;  %v7583_v44 = vpop.eup %7582  ;;  %v4754_v6 = vmul.f32 %v7581_v16, %v9108_v48  ;;  %7602 = vrcp.f32 %v4565_v63  ;;  %v9199_v3 = vadd.f32 %v9196_v29, %v6883_v47 }
 0x320   : > { %v6885_v60 = vadd.f32 %v6820_v27, %v6556_v26  ;;  %v4154_v4 = vpop.f32.mrb[55].mxu0  ;;  %v7585_v14 = vpop.eup %7584  ;;  %v4752_v23 = vmul.f32 %v7583_v44, %v9112_v19  ;;  %7604 = vrcp.f32 %v4570_v28  ;;  %v9203_v34 = vadd.f32 %v9196_v29, %v6884_v52 }
 0x321   : > { %v6886_v49 = vadd.f32 %v4154_v4, %v2647_v8  ;;  %v7587_v48 = vpop.eup %7586  ;;  %v4755_v56 = vmul.f32 %v7585_v14, %v9117_v12  ;;  %7606 = vpow2.f32 %v5600_v25  ;;  %v5606_v15 = vmul.f32 -1.442695, %v9199_v3 }
 0x322   : > { %v9208_v55 = vadd.f32 %v9196_v29, %v6885_v60  ;;  %v7589_v11 = vpop.eup %7588  ;;  %v4753_v37 = vmul.f32 %v7587_v48, %v9123_v41  ;;  %7608 = vpow2.f32 %v5603_v17  ;;  %v5604_v19 = vmul.f32 -1.442695, %v9203_v34  ;;  %v6559_v46 = vpop.f32.mrb[56].mxu1 }
 0x323   : > { %v9213_v30 = vadd.f32 %v9196_v29, %v6886_v49  ;;  %v7591_v33 = vpop.eup %7590  ;;  %v5845_v18 = vpack.c.bf16 %v4755_v56, %v4754_v6  ;;  %7610 = vpow2.f32 %v5601_v61  ;;  %v2660_v12 = vpop.f32.mrb[57].mxu1  ;;  %v4758_v13 = vmul.f32 %v7589_v11, %v9129_v57 }
 0x324   : > { %v7593_v45 = vpop.eup %7592  ;;  %v5840_v2 = vpack.c.bf16 %v4753_v37, %v4752_v23  ;;  %v4568_v35 = vadd.f32 1.0, %v7591_v33  ;;  %7612 = vpow2.f32 %v5606_v15  ;;  %v6823_v41 = vpop.f32.mrb[56].mxu0  ;;  %v5607_v43 = vmul.f32 -1.442695, %v9208_v55 }
 0x325   : > { %v6560_v20 = vpop.f32.mrb[58].mxu1  ;;  %v7595_v40 = vpop.eup %7594  ;;  %5925 = vst [vmem:[%s8980_s21 + $0x98] sm:$0xff] %v5845_v18   ;;  %v4571_v59 = vadd.f32 1.0, %v7593_v45  ;;  %7614 = vpow2.f32 %v5604_v19  ;;  %v6887_v51 = vadd.f32 %v6823_v41, %v6559_v46  ;;  %v5605_v7 = vmul.f32 -1.442695, %v9213_v30 }
 0x326   : > { %v4167_v32 = vpop.f32.mrb[57].mxu0  ;;  %v2663_v36 = vpop.f32.mrb[59].mxu1  ;;  %5924 = vst [vmem:[%s8980_s21 + $0x90] sm:$0xff] %v5840_v2   ;;  %7616 = vrcp.f32 %v4568_v35  ;;  %v4569_v0 = vadd.f32 1.0, %v7595_v40 }
 0x327   : > { %v7597_v24 = vpop.eup %7596  ;;  %v6888_v57 = vadd.f32 %v4167_v32, %v2660_v12  ;;  %v6824_v5 = vpop.f32.mrb[58].mxu0  ;;  %7618 = vrcp.f32 %v4571_v59  ;;  %v9221_v26 = vadd.f32 %v9196_v29, %v6887_v51 }
 0x328   : > { %v7599_v25 = vpop.eup %7598  ;;  %v4574_v1 = vadd.f32 1.0, %v7597_v24  ;;  %v6889_v54 = vadd.f32 %v6824_v5, %v6560_v20  ;;  %v4170_v63 = vpop.f32.mrb[59].mxu0  ;;  %7620 = vrcp.f32 %v4569_v0 }
 0x329   : > { %v7601_v17 = vpop.eup %7600  ;;  %v4756_v47 = vmul.f32 %v7599_v25, %v9133_v31  ;;  %v9225_v22 = vadd.f32 %v9196_v29, %v6888_v57  ;;  %v6890_v8 = vadd.f32 %v4170_v63, %v2663_v36  ;;  %v5610_v61 = vmul.f32 -1.442695, %v9221_v26  ;;  %v6827_v56 = vpop.f32.mrb[60].mxu0 }
 0x32a   : > { %v7603_v16 = vpop.eup %7602  ;;  %v4759_v28 = vmul.f32 %v7601_v17, %v9138_v9  ;;  %7622 = vrcp.f32 %v4574_v1  ;;  %v9230_v52 = vadd.f32 %v9196_v29, %v6889_v54  ;;  %v6563_v60 = vpop.f32.mrb[60].mxu1 }
 0x32b   : > { %v7605_v27 = vpop.eup %7604  ;;  %v4757_v44 = vmul.f32 %v7603_v16, %v9143_v21  ;;  %7624 = vpow2.f32 %v5607_v43  ;;  %v5608_v31 = vmul.f32 -1.442695, %v9225_v22  ;;  %v9235_v6 = vadd.f32 %v9196_v29, %v6890_v8  ;;  %v2676_v9 = vpop.f32.mrb[61].mxu1 }
 0x32c   : > { %v7607_v4 = vpop.eup %7606  ;;  %v5855_v14 = vpack.c.bf16 %v4759_v28, %v4758_v13  ;;  %7626 = vpow2.f32 %v5605_v7  ;;  %v6564_v15 = vpop.f32.mrb[62].mxu1  ;;  %v5611_v37 = vmul.f32 -1.442695, %v9230_v52  ;;  %v6891_v19 = vadd.f32 %v6827_v56, %v6563_v60 }
 0x32d   : > { %v7609_v23 = vpop.eup %7608  ;;  %v5850_v49 = vpack.c.bf16 %v4757_v44, %v4756_v47  ;;  %v4572_v48 = vadd.f32 1.0, %v7607_v4  ;;  %7628 = vpow2.f32 %v5610_v61  ;;  %v4183_v46 = vpop.f32.mrb[61].mxu0  ;;  %v5609_v45 = vmul.f32 -1.442695, %v9235_v6 }
 0x32e   : > { %v7611_v21 = vpop.eup %7610  ;;  %5927 = vst [vmem:[%s8980_s21 + $0xa8] sm:$0xff] %v5855_v14   ;;  %v4575_v11 = vadd.f32 1.0, %v7609_v23  ;;  %7630 = vpow2.f32 %v5608_v31  ;;  %v2679_v33 = vpop.f32.mrb[63].mxu1  ;;  %v6892_v2 = vadd.f32 %v4183_v46, %v2676_v9  ;;  %v9242_v20 = vadd.f32 %v9196_v29, %v6891_v19 }
 0x32f   : > { %v7613_v18 = vpop.eup %7612  ;;  %5926 = vst [vmem:[%s8980_s21 + $0xa0] sm:$0xff] %v5850_v49   ;;  %7632 = vrcp.f32 %v4572_v48  ;;  %v4573_v12 = vadd.f32 1.0, %v7611_v21  ;;  %v6828_v13 = vpop.f32.mrb[62].mxu0  ;;  %v4762_v57 = vmul.f32 %v7605_v27, %v9150_v62 }
 0x330   : > { %v7615_v35 = vpop.eup %7614  ;;  %7634 = vrcp.f32 %v4575_v11  ;;  %v4578_v41 = vadd.f32 1.0, %v7613_v18  ;;  %v6893_v40 = vadd.f32 %v6828_v13, %v6564_v15  ;;  %v4186_v59 = vpop.f32.mrb[63].mxu0  ;;  %v9245_v32 = vadd.f32 %v9196_v29, %v6892_v2 }
 0x331   : > { %v7617_v43 = vpop.eup %7616  ;;  %7636 = vrcp.f32 %v4573_v12  ;;  %v4576_v51 = vadd.f32 1.0, %v7615_v35  ;;  %v6894_v36 = vadd.f32 %v4186_v59, %v2679_v33  ;;  %v5614_v0 = vmul.f32 -1.442695, %v9242_v20 }
 0x332   : > { %v7619_v24 = vpop.eup %7618  ;;  %7638 = vrcp.f32 %v4578_v41  ;;  %v5612_v25 = vmul.f32 -1.442695, %v9245_v32  ;;  %v4760_v54 = vmul.f32 %v7617_v43, %v9157_v53  ;;  %v9254_v17 = vadd.f32 %v9196_v29, %v6893_v40 }
 0x333   : > { %v7621_v7 = vpop.eup %7620  ;;  %v4763_v5 = vmul.f32 %v7619_v24, %v9160_v10  ;;  %7640 = vrcp.f32 %v4576_v51  ;;  %v9257_v62 = vadd.f32 %v9196_v29, %v6894_v36 }
 0x334   : > { %v7623_v1 = vpop.eup %7622  ;;  %v4761_v63 = vmul.f32 %v7621_v7, %v9164_v58  ;;  %7642 = vpow2.f32 %v5611_v37  ;;  %v5615_v27 = vmul.f32 -1.442695, %v9254_v17 }
 0x335   : > { %v7625_v47 = vpop.eup %7624  ;;  %v5865_v8 = vpack.c.bf16 %v4763_v5, %v4762_v57  ;;  %7644 = vpow2.f32 %v5609_v45  ;;  %v5613_v31 = vmul.f32 -1.442695, %v9257_v62  ;;  %v4766_v4 = vmul.f32 %v7623_v1, %v9171_v39 }
 0x336   : > { %v7627_v10 = vpop.eup %7626  ;;  %v5860_v16 = vpack.c.bf16 %v4761_v63, %v4760_v54  ;;  %v4579_v28 = vadd.f32 1.0, %v7625_v47  ;;  %7646 = vpow2.f32 %v5614_v0 }
 0x337   : > { %v7629_v61 = vpop.eup %7628  ;;  %5929 = vst [vmem:[%s8980_s21 + $0xb8] sm:$0xff] %v5865_v8   ;;  %v4577_v53 = vadd.f32 1.0, %v7627_v10  ;;  %7648 = vpow2.f32 %v5612_v25 }
 0x338   : > { %v7631_v58 = vpop.eup %7630  ;;  %5928 = vst [vmem:[%s8980_s21 + $0xb0] sm:$0xff] %v5860_v16   ;;  %7650 = vrcp.f32 %v4579_v28  ;;  %v4582_v9 = vadd.f32 1.0, %v7629_v61 }
 0x339   : > { %v7633_v44 = vpop.eup %7632  ;;  %7652 = vrcp.f32 %v4577_v53  ;;  %v4580_v56 = vadd.f32 1.0, %v7631_v58 }
 0x33a   : > { %v7635_v60 = vpop.eup %7634  ;;  %v4764_v49 = vmul.f32 %v7633_v44, %v9175_v42  ;;  %7654 = vpow2.f32 %v5615_v27 }
 0x33b   : > { %v7637_v29 = vpop.eup %7636  ;;  %v4767_v14 = vmul.f32 %v7635_v60, %v9180_v38  ;;  %7656 = vpow2.f32 %v5613_v31 }
 0x33c   : > { %v7639_v23 = vpop.eup %7638  ;;  %v4765_v48 = vmul.f32 %v7637_v29, %v9185_v50  ;;  %7658 = vrcp.f32 %v4582_v9 }
 0x33d   : > { %v7641_v15 = vpop.eup %7640  ;;  %v5875_v21 = vpack.c.bf16 %v4767_v14, %v4766_v4  ;;  %7660 = vrcp.f32 %v4580_v56  ;;  %v4770_v18 = vmul.f32 %v7639_v23, %v9199_v3 }
 0x33e   : > { %v7643_v11 = vpop.eup %7642  ;;  %v5870_v37 = vpack.c.bf16 %v4765_v48, %v4764_v49  ;;  %v4768_v2 = vmul.f32 %v7641_v15, %v9203_v34 }
 0x33f   : > { %v7645_v19 = vpop.eup %7644  ;;  %5931 = vst [vmem:[%s8980_s21 + $0xc8] sm:$0xff] %v5875_v21   ;;  %v4583_v39 = vadd.f32 1.0, %v7643_v11 }
 0x340   : > { %v7647_v46 = vpop.eup %7646  ;;  %5930 = vst [vmem:[%s8980_s21 + $0xc0] sm:$0xff] %v5870_v37   ;;  %v4581_v38 = vadd.f32 1.0, %v7645_v19 }
 0x341   : > { %v7649_v33 = vpop.eup %7648  ;;  %7662 = vrcp.f32 %v4583_v39  ;;  %v4586_v45 = vadd.f32 1.0, %v7647_v46 }
 0x342   : > { %v7651_v42 = vpop.eup %7650  ;;  %7664 = vrcp.f32 %v4581_v38  ;;  %v4584_v35 = vadd.f32 1.0, %v7649_v33 }
 0x343   : > { %v7653_v50 = vpop.eup %7652  ;;  %v4771_v12 = vmul.f32 %v7651_v42, %v9208_v55  ;;  %7666 = vrcp.f32 %v4586_v45 }
 0x344   : > { %v4769_v13 = vmul.f32 %v7653_v50, %v9213_v30  ;;  %v7655_v40 = vpop.eup %7654  ;;  %7668 = vrcp.f32 %v4584_v35 }
 0x345   : > { %v5885_v41 = vpack.c.bf16 %v4771_v12, %v4770_v18  ;;  %v7657_v43 = vpop.eup %7656  ;;  %v4587_v51 = vadd.f32 1.0, %v7655_v40 }
 0x346   : > { %v5880_v59 = vpack.c.bf16 %v4769_v13, %v4768_v2  ;;  %v4585_v3 = vadd.f32 1.0, %v7657_v43  ;;  %v7659_v36 = vpop.eup %7658 }
 0x347   : > { %5933 = vst [vmem:[%s8980_s21 + $0xd8] sm:$0xff] %v5885_v41   ;;  %7670 = vrcp.f32 %v4587_v51  ;;  %v7661_v55 = vpop.eup %7660  ;;  %v4774_v30 = vmul.f32 %v7659_v36, %v9221_v26 }
 0x348   : > { %5932 = vst [vmem:[%s8980_s21 + $0xd0] sm:$0xff] %v5880_v59   ;;  %7672 = vrcp.f32 %v4585_v3  ;;  %v4772_v7 = vmul.f32 %v7661_v55, %v9225_v22 }
 0x34b   : > { %v7663_v34 = vpop.eup %7662 }
 0x34c   : > { %v7665_v24 = vpop.eup %7664  ;;  %v4775_v0 = vmul.f32 %v7663_v34, %v9230_v52 }
 0x34d   : > { %v4773_v57 = vmul.f32 %v7665_v24, %v9235_v6  ;;  %v7667_v1 = vpop.eup %7666 }
 0x34e   : > { %v5895_v5 = vpack.c.bf16 %v4775_v0, %v4774_v30  ;;  %v7669_v54 = vpop.eup %7668  ;;  %v4778_v8 = vmul.f32 %v7667_v1, %v9242_v20 }
 0x34f   : > { %v5890_v25 = vpack.c.bf16 %v4773_v57, %v4772_v7  ;;  %v4776_v52 = vmul.f32 %v7669_v54, %v9245_v32 }
 0x350   : > { %5935 = vst [vmem:[%s8980_s21 + $0xe8] sm:$0xff] %v5895_v5  }
 0x351   : > { %5934 = vst [vmem:[%s8980_s21 + $0xe0] sm:$0xff] %v5890_v25   ;;  %v7671_v63 = vpop.eup %7670 }
 0x352   : > { %v7673_v47 = vpop.eup %7672  ;;  %v4779_v26 = vmul.f32 %v7671_v63, %v9254_v17 }
 0x353   : > { %v4777_v22 = vmul.f32 %v7673_v47, %v9257_v62 }
 0x354   : > { %v5905_v10 = vpack.c.bf16 %v4779_v26, %v4778_v8 }
 0x355   : > { %v5900_v16 = vpack.c.bf16 %v4777_v22, %v4776_v52 }
 0x356   : > { %5937 = vst [vmem:[%s8980_s21 + $0xf8] sm:$0xff] %v5905_v10  }
 0x357   : > { %5936 = vst [vmem:[%s8980_s21 + $0xf0] sm:$0xff] %v5900_v16  }
 0x358 PF: > { %s13_s14 = sadd.s32 1, %s7704_s14   ;;  %s9467_s12 = smov %s7700_s13 }
 0x359   : > { %p10_p5 = scmp.ge.s32.totalorder %s13_s14, 4   ;;  %s9468_s13 = smov %s9470_s15 }
 0x35b   :  { %12 = sbr.rel (!%p10_p5) target bundleno = 2 (0x2), region = 76 }

</bundles_post_ra>
